<compile_context>
chip_gen: v7x
topology: tpu7x:2x2x1
jax: 0.10.0
libtpu: 0.0.40
codegen_flags: <defaults>
</compile_context>

<pallas_src>
import math

import jax
import jax.numpy as jnp
from jax.experimental import pallas as pl
from jax.experimental.pallas import tpu as pltpu

# ---------------- config ----------------
B = 2
CIN = 3
IMG = 32
PATCH = 16
NPATCH = (IMG // PATCH) ** 2            # 4
SEQ = NPATCH + 1                        # 5 (CLS + patches)
SEQ_PAD = 8                             # padded to one sublane tile
HIDDEN = 64
NHEADS = 4
HEAD_DIM = HIDDEN // NHEADS             # 16
INTER = 128
LAYERS = 2
NCLASSES = 8
LN_EPS = 1e-12                          # HF ViT LayerNorm eps
CPP = CIN * PATCH * PATCH               # 768 (im2col'd patch length)
BS = B * SEQ_PAD                        # flattened token count
BH = B * NHEADS                         # heads stacked onto the batch axis


# ---------------- in-kernel math helpers (all f32) ----------------
def _erf(x):
    # TODO(synk): HF 'gelu' uses exact erf; Mosaic-safe Abramowitz&Stegun 7.1.26
    # rational approximation used here (|err| < 1.5e-7, below f32 noise).
    a1, a2, a3, a4, a5 = 0.254829592, -0.284496736, 1.421413741, -1.453152027, 1.061405429
    p = 0.3275911
    sgn = jnp.where(x >= 0.0, 1.0, -1.0)
    ax = jnp.abs(x)
    t = 1.0 / (1.0 + p * ax)
    poly = ((((a5 * t + a4) * t + a3) * t + a2) * t + a1) * t
    return sgn * (1.0 - poly * jnp.exp(-ax * ax))


def _gelu(x):
    return 0.5 * x * (1.0 + _erf(x * (1.0 / math.sqrt(2.0))))


def _layernorm(x, g, b):
    # x: (rows, H); g, b: (1, H)
    mu = jnp.mean(x, axis=-1, keepdims=True)
    var = jnp.mean((x - mu) ** 2, axis=-1, keepdims=True)
    return (x - mu) * jax.lax.rsqrt(var + LN_EPS) * g + b


def _split_heads(t):
    # (B, SEQ_PAD, HIDDEN) -> (NHEADS*B, SEQ_PAD, HEAD_DIM), head-major on axis 0.
    return jnp.concatenate(
        [t[:, :, h * HEAD_DIM:(h + 1) * HEAD_DIM] for h in range(NHEADS)], axis=0)


# ---------------- fused ViT forward kernel (no grid, all weights VMEM-resident) ----------------
def vit_kernel(patches_ref, patch_w_ref, tok_add_ref,
               ln1_g_ref, ln1_b_ref,
               wqkv_ref, bqkv_ref, wo_ref, bo_ref,
               ln2_g_ref, ln2_b_ref,
               w1_ref, b1_ref, w2_ref, b2_ref,
               lnf_g_ref, lnf_b_ref, clf_w_ref, clf_b_ref,
               out_ref):
    # ---- patch embedding (Conv2d(kernel=stride=patch) == im2col'd patches @ W) ----
    # CLS / pad rows of `patches` are zero, so their matmul output is zero; `tok_add`
    # (pre-tiled to (BS, H)) carries cls_token + pos[0] for CLS rows and
    # conv-bias + pos for the patch rows.
    emb = jnp.dot(patches_ref[...], patch_w_ref[...],
                  preferred_element_type=jnp.float32)                       # (BS, H) f32
    x = emb + tok_add_ref[...]

    # ---- key-padding mask: padded keys (idx >= SEQ) get -inf before softmax ----
    kidx = jax.lax.broadcasted_iota(jnp.int32, (SEQ_PAD, SEQ_PAD), 1)
    bias2d = jnp.where(kidx < SEQ, jnp.float32(0.0), jnp.float32(-1e30))
    attn_bias = jnp.broadcast_to(bias2d[None, :, :], (BH, SEQ_PAD, SEQ_PAD))

    scale = 1.0 / math.sqrt(HEAD_DIM)

    # ---- encoder layers (unrolled Python loop; weights indexed statically) ----
    # TODO(synk): switch to a layer grid axis / fori_loop over stacked weights when
    # LAYERS grows (12-layer real config); at 2 layers the unroll is fine.
    for l in range(LAYERS):
        # --- self-attention block (pre-LayerNorm, residual) ---
        h = _layernorm(x, ln1_g_ref[l], ln1_b_ref[l])                       # (BS, H) f32
        qkv = jnp.dot(h.astype(jnp.bfloat16), wqkv_ref[l],
                      preferred_element_type=jnp.float32) + bqkv_ref[l]     # (BS, 3H) f32
        q3 = qkv[:, 0:HIDDEN].reshape(B, SEQ_PAD, HIDDEN)
        k3 = qkv[:, HIDDEN:2 * HIDDEN].reshape(B, SEQ_PAD, HIDDEN)
        v3 = qkv[:, 2 * HIDDEN:3 * HIDDEN].reshape(B, SEQ_PAD, HIDDEN)

        # Heads stacked along the leading axis -> one batched einsum pair per layer.
        qh = (_split_heads(q3) * scale).astype(jnp.bfloat16)                # (BH, S, d)
        kh = _split_heads(k3).astype(jnp.bfloat16)
        vh = _split_heads(v3).astype(jnp.bfloat16)

        s = jnp.einsum('bqd,bkd->bqk', qh, kh,
                       preferred_element_type=jnp.float32)                  # (BH, S, S) f32
        s = s + attn_bias
        m = jnp.max(s, axis=-1, keepdims=True)
        e = jnp.exp(s - m)
        p = e * pl.reciprocal(jnp.sum(e, axis=-1, keepdims=True), approx=True)
        ctxh = jnp.einsum('bqk,bkd->bqd', p.astype(jnp.bfloat16), vh,
                          preferred_element_type=jnp.float32)               # (BH, S, d) f32
        # merge heads back onto lanes: head h -> lanes [h*d, (h+1)*d)
        ctx = jnp.concatenate([ctxh[hh * B:(hh + 1) * B] for hh in range(NHEADS)],
                              axis=-1).reshape(BS, HIDDEN)

        x = x + jnp.dot(ctx.astype(jnp.bfloat16), wo_ref[l],
                        preferred_element_type=jnp.float32) + bo_ref[l]

        # --- MLP block (pre-LayerNorm, residual) ---
        h2 = _layernorm(x, ln2_g_ref[l], ln2_b_ref[l])
        mlp = _gelu(jnp.dot(h2.astype(jnp.bfloat16), w1_ref[l],
                            preferred_element_type=jnp.float32) + b1_ref[l])
        x = x + jnp.dot(mlp.astype(jnp.bfloat16), w2_ref[l],
                        preferred_element_type=jnp.float32) + b2_ref[l]

    # ---- CLS rows only -> final LayerNorm + classifier + sigmoid ----
    cls = jnp.concatenate([x[b * SEQ_PAD:b * SEQ_PAD + 1, :] for b in range(B)],
                          axis=0)                                           # (B, H)
    cls = _layernorm(cls, lnf_g_ref[...], lnf_b_ref[...])
    logits = jnp.dot(cls.astype(jnp.bfloat16), clf_w_ref[...],
                     preferred_element_type=jnp.float32) + clf_b_ref[...]   # (B, C)
    out_ref[...] = jax.nn.sigmoid(logits)


# ---------------- parameter prep (one-time: fuse QKV, tile tok_add, bf16 weights) ----------------
def prepare_params(p):
    f = {}
    f['patch_w'] = p['patch_w'].astype(jnp.bfloat16)                        # (CPP, H)

    tok_add = jnp.zeros((SEQ_PAD, HIDDEN), jnp.float32)
    tok_add = tok_add.at[0].set(p['cls'][0, 0] + p['pos'][0, 0])
    tok_add = tok_add.at[1:SEQ].set(p['patch_b'][0, 0] + p['pos'][0, 1:SEQ])
    f['tok_add'] = jnp.tile(tok_add, (B, 1))                                # (BS, H)

    f['ln1_g'], f['ln1_b'] = p['ln1_g'], p['ln1_b']
    f['wqkv'] = jnp.concatenate([p['wq'], p['wk'], p['wv']],
                                axis=-1).astype(jnp.bfloat16)               # (L, H, 3H)
    f['bqkv'] = jnp.concatenate([p['bq'], p['bk'], p['bv']], axis=-1)       # (L, 1, 3H)
    f['wo'] = p['wo'].astype(jnp.bfloat16)
    f['bo'] = p['bo']
    f['ln2_g'], f['ln2_b'] = p['ln2_g'], p['ln2_b']
    f['w1'] = p['w1'].astype(jnp.bfloat16)
    f['b1'] = p['b1']
    f['w2'] = p['w2'].astype(jnp.bfloat16)
    f['b2'] = p['b2']
    f['lnf_g'], f['lnf_b'] = p['lnf_g'], p['lnf_b']
    f['clf_w'] = p['clf_w'].astype(jnp.bfloat16)
    f['clf_b'] = p['clf_b']
    return f


# ---------------- wrapper ----------------
@jax.jit
def vit_forward(pixel_values, f):
    # im2col: NCHW -> (B, NPATCH, C*P*P), row-major over (patch_h, patch_w)
    x = pixel_values.reshape(B, CIN, IMG // PATCH, PATCH, IMG // PATCH, PATCH)
    x = x.transpose(0, 2, 4, 1, 3, 5)
    patches = x.reshape(B, NPATCH, CPP)

    # Pad tokens to SEQ_PAD: row 0 is the CLS slot (zeros), rows SEQ..SEQ_PAD-1 are
    # padding (zeros). Flatten to (BS, CPP) and cast to bf16 (MXU operand).
    patches_pad = jnp.pad(patches, ((0, 0), (1, SEQ_PAD - SEQ), (0, 0)))
    patches_flat = patches_pad.reshape(BS, CPP).astype(jnp.bfloat16)

    vspec = pl.BlockSpec(memory_space=pltpu.MemorySpace.VMEM)
    probs = pl.pallas_call(
        vit_kernel,
        out_shape=jax.ShapeDtypeStruct((B, NCLASSES), jnp.float32),
        in_specs=[vspec] * 19,
        out_specs=vspec,
    )(patches_flat, f['patch_w'], f['tok_add'],
      f['ln1_g'], f['ln1_b'],
      f['wqkv'], f['bqkv'], f['wo'], f['bo'],
      f['ln2_g'], f['ln2_b'],
      f['w1'], f['b1'], f['w2'], f['b2'],
      f['lnf_g'], f['lnf_b'], f['clf_w'], f['clf_b'])
    return probs


# ---------------- deterministic parameter init ----------------
def init_params(key):
    keys = jax.random.split(key, 18)
    ki = iter(keys)

    def nrm(shape):
        return jax.random.normal(next(ki), shape, dtype=jnp.float32) * 0.02

    p = {}
    p['patch_w'] = nrm((CPP, HIDDEN))                   # conv weight, flattened, [in, out]
    p['patch_b'] = nrm((1, 1, HIDDEN))
    p['cls'] = nrm((1, 1, HIDDEN))
    p['pos'] = nrm((1, SEQ, HIDDEN))

    p['ln1_g'] = jnp.ones((LAYERS, 1, HIDDEN), jnp.float32)
    p['ln1_b'] = jnp.zeros((LAYERS, 1, HIDDEN), jnp.float32)
    p['wq'] = nrm((LAYERS, HIDDEN, HIDDEN)); p['bq'] = nrm((LAYERS, 1, HIDDEN))
    p['wk'] = nrm((LAYERS, HIDDEN, HIDDEN)); p['bk'] = nrm((LAYERS, 1, HIDDEN))
    p['wv'] = nrm((LAYERS, HIDDEN, HIDDEN)); p['bv'] = nrm((LAYERS, 1, HIDDEN))
    p['wo'] = nrm((LAYERS, HIDDEN, HIDDEN)); p['bo'] = nrm((LAYERS, 1, HIDDEN))
    p['ln2_g'] = jnp.ones((LAYERS, 1, HIDDEN), jnp.float32)
    p['ln2_b'] = jnp.zeros((LAYERS, 1, HIDDEN), jnp.float32)
    p['w1'] = nrm((LAYERS, HIDDEN, INTER)); p['b1'] = nrm((LAYERS, 1, INTER))
    p['w2'] = nrm((LAYERS, INTER, HIDDEN)); p['b2'] = nrm((LAYERS, 1, HIDDEN))

    p['lnf_g'] = jnp.ones((1, HIDDEN), jnp.float32)
    p['lnf_b'] = jnp.zeros((1, HIDDEN), jnp.float32)
    p['clf_w'] = nrm((HIDDEN, NCLASSES))
    p['clf_b'] = nrm((1, NCLASSES))
    return p


if __name__ == "__main__":
    key = jax.random.PRNGKey(0)
    pkey, xkey = jax.random.split(key)
    params = init_params(pkey)
    fused = prepare_params(params)
    pixel_values = jax.random.normal(xkey, (B, CIN, IMG, IMG), dtype=jnp.float32)

    out = vit_forward(pixel_values, fused)
    out = jax.block_until_ready(out)

    assert out.shape == (B, NCLASSES), out.shape
    assert bool(jnp.all(jnp.isfinite(out)))
    assert bool(jnp.all((out >= 0.0) & (out <= 1.0)))  # sigmoid range
    print("KERNEL_OK")
</pallas_src>

<mosaic_0001>
module attributes {stable_mosaic.version = 11 : i64} {
  func.func @vit_kernel(%arg0: memref<16x768xbf16, #tpu.memory_space<vmem>>, %arg1: memref<768x64xbf16, #tpu.memory_space<vmem>>, %arg2: memref<16x64xf32, #tpu.memory_space<vmem>>, %arg3: memref<2x1x64xf32, #tpu.memory_space<vmem>>, %arg4: memref<2x1x64xf32, #tpu.memory_space<vmem>>, %arg5: memref<2x64x192xbf16, #tpu.memory_space<vmem>>, %arg6: memref<2x1x192xf32, #tpu.memory_space<vmem>>, %arg7: memref<2x64x64xbf16, #tpu.memory_space<vmem>>, %arg8: memref<2x1x64xf32, #tpu.memory_space<vmem>>, %arg9: memref<2x1x64xf32, #tpu.memory_space<vmem>>, %arg10: memref<2x1x64xf32, #tpu.memory_space<vmem>>, %arg11: memref<2x64x128xbf16, #tpu.memory_space<vmem>>, %arg12: memref<2x1x128xf32, #tpu.memory_space<vmem>>, %arg13: memref<2x128x64xbf16, #tpu.memory_space<vmem>>, %arg14: memref<2x1x64xf32, #tpu.memory_space<vmem>>, %arg15: memref<1x64xf32, #tpu.memory_space<vmem>>, %arg16: memref<1x64xf32, #tpu.memory_space<vmem>>, %arg17: memref<64x8xbf16, #tpu.memory_space<vmem>>, %arg18: memref<1x8xf32, #tpu.memory_space<vmem>>, %arg19: memref<2x8xf32, #tpu.memory_space<vmem>>) attributes {dimension_semantics = [], scalar_prefetch = 0 : i64, scratch_operands = 0 : i64, tpu.core_type = #tpu.core_type<tc>} {
    %c0 = arith.constant 0 : index
    %c0_0 = arith.constant 0 : index
    %0 = vector.load %arg0[%c0, %c0_0] : memref<16x768xbf16, #tpu.memory_space<vmem>>, vector<16x768xbf16>
    %c0_1 = arith.constant 0 : index
    %c0_2 = arith.constant 0 : index
    %1 = vector.load %arg1[%c0_1, %c0_2] : memref<768x64xbf16, #tpu.memory_space<vmem>>, vector<768x64xbf16>
    %cst = arith.constant dense<0.000000e+00> : vector<16x64xf32>
    %2 = tpu.matmul %0, %1, %cst {dimension_numbers = #tpu.dot_dimension_numbers<[1], [0], [0], [1], [0, 0, 1, 1], [], []>} : vector<16x768xbf16>, vector<768x64xbf16>, vector<16x64xf32> -> vector<16x64xf32>
    %c0_3 = arith.constant 0 : index
    %c0_4 = arith.constant 0 : index
    %3 = vector.load %arg2[%c0_3, %c0_4] : memref<16x64xf32, #tpu.memory_space<vmem>>, vector<16x64xf32>
    %4 = arith.addf %2, %3 : vector<16x64xf32>
    %5 = tpu.iota {dimensions = array<i32: 1>} : vector<8x8xi32>
    %c5_i32 = arith.constant 5 : i32
    %6 = vector.broadcast %c5_i32 : i32 to vector<8x8xi32>
    %7 = arith.cmpi slt, %5, %6 : vector<8x8xi32>
    %cst_5 = arith.constant 0.000000e+00 : f32
    %cst_6 = arith.constant -1.000000e+30 : f32
    %8 = vector.broadcast %cst_5 : f32 to vector<8x8xf32>
    %9 = vector.broadcast %cst_6 : f32 to vector<8x8xf32>
    %10 = arith.select %7, %8, %9 : vector<8x8xi1>, vector<8x8xf32>
    %11 = vector.shape_cast %10 : vector<8x8xf32> to vector<1x8x8xf32>
    %12 = vector.shape_cast %11 : vector<1x8x8xf32> to vector<1x8x8xf32>
    %13 = vector.broadcast %12 : vector<1x8x8xf32> to vector<8x8x8xf32>
    %c0_7 = arith.constant 0 : index
    %c0_8 = arith.constant 0 : index
    %c0_9 = arith.constant 0 : index
    %14 = vector.load %arg3[%c0_7, %c0_8, %c0_9] : memref<2x1x64xf32, #tpu.memory_space<vmem>>, vector<1x1x64xf32>
    %15 = vector.shape_cast %14 : vector<1x1x64xf32> to vector<1x64xf32>
    %c0_10 = arith.constant 0 : index
    %c0_11 = arith.constant 0 : index
    %c0_12 = arith.constant 0 : index
    %16 = vector.load %arg4[%c0_10, %c0_11, %c0_12] : memref<2x1x64xf32, #tpu.memory_space<vmem>>, vector<1x1x64xf32>
    %17 = vector.shape_cast %16 : vector<1x1x64xf32> to vector<1x64xf32>
    %cst_13 = arith.constant dense<0.000000e+00> : vector<16xf32>
    %18 = vector.multi_reduction <add>, %4, %cst_13 [1] : vector<16x64xf32> to vector<16xf32>
    %19 = vector.shape_cast %18 : vector<16xf32> to vector<16x1xf32>
    %cst_14 = arith.constant 6.400000e+01 : f32
    %20 = vector.broadcast %cst_14 : f32 to vector<16x1xf32>
    %21 = arith.divf %19, %20 : vector<16x1xf32>
    %22 = vector.broadcast %21 : vector<16x1xf32> to vector<16x64xf32>
    %23 = arith.subf %4, %22 : vector<16x64xf32>
    %24 = arith.mulf %23, %23 : vector<16x64xf32>
    %cst_15 = arith.constant dense<0.000000e+00> : vector<16xf32>
    %25 = vector.multi_reduction <add>, %24, %cst_15 [1] : vector<16x64xf32> to vector<16xf32>
    %26 = vector.shape_cast %25 : vector<16xf32> to vector<16x1xf32>
    %cst_16 = arith.constant 6.400000e+01 : f32
    %27 = vector.broadcast %cst_16 : f32 to vector<16x1xf32>
    %28 = arith.divf %26, %27 : vector<16x1xf32>
    %29 = vector.broadcast %21 : vector<16x1xf32> to vector<16x64xf32>
    %30 = arith.subf %4, %29 : vector<16x64xf32>
    %cst_17 = arith.constant 9.99999996E-13 : f32
    %31 = vector.broadcast %cst_17 : f32 to vector<16x1xf32>
    %32 = arith.addf %28, %31 : vector<16x1xf32>
    %33 = math.rsqrt %32 : vector<16x1xf32>
    %34 = vector.broadcast %33 : vector<16x1xf32> to vector<16x64xf32>
    %35 = arith.mulf %30, %34 : vector<16x64xf32>
    %36 = vector.broadcast %15 : vector<1x64xf32> to vector<16x64xf32>
    %37 = arith.mulf %35, %36 : vector<16x64xf32>
    %38 = vector.broadcast %17 : vector<1x64xf32> to vector<16x64xf32>
    %39 = arith.addf %37, %38 : vector<16x64xf32>
    %40 = arith.truncf %39 : vector<16x64xf32> to vector<16x64xbf16>
    %c0_18 = arith.constant 0 : index
    %c0_19 = arith.constant 0 : index
    %c0_20 = arith.constant 0 : index
    %41 = vector.load %arg5[%c0_18, %c0_19, %c0_20] : memref<2x64x192xbf16, #tpu.memory_space<vmem>>, vector<1x64x192xbf16>
    %42 = vector.shape_cast %41 : vector<1x64x192xbf16> to vector<64x192xbf16>
    %cst_21 = arith.constant dense<0.000000e+00> : vector<16x192xf32>
    %43 = tpu.matmul %40, %42, %cst_21 {dimension_numbers = #tpu.dot_dimension_numbers<[1], [0], [0], [1], [0, 0, 1, 1], [], []>} : vector<16x64xbf16>, vector<64x192xbf16>, vector<16x192xf32> -> vector<16x192xf32>
    %c0_22 = arith.constant 0 : index
    %c0_23 = arith.constant 0 : index
    %c0_24 = arith.constant 0 : index
    %44 = vector.load %arg6[%c0_22, %c0_23, %c0_24] : memref<2x1x192xf32, #tpu.memory_space<vmem>>, vector<1x1x192xf32>
    %45 = vector.shape_cast %44 : vector<1x1x192xf32> to vector<1x192xf32>
    %46 = vector.broadcast %45 : vector<1x192xf32> to vector<16x192xf32>
    %47 = arith.addf %43, %46 : vector<16x192xf32>
    %48 = vector.extract_strided_slice %47 {offsets = [0, 0], sizes = [16, 64], strides = [1, 1]} : vector<16x192xf32> to vector<16x64xf32>
    %49 = vector.shape_cast %48 : vector<16x64xf32> to vector<2x8x64xf32>
    %50 = vector.extract_strided_slice %47 {offsets = [0, 64], sizes = [16, 64], strides = [1, 1]} : vector<16x192xf32> to vector<16x64xf32>
    %51 = vector.shape_cast %50 : vector<16x64xf32> to vector<2x8x64xf32>
    %52 = vector.extract_strided_slice %47 {offsets = [0, 128], sizes = [16, 64], strides = [1, 1]} : vector<16x192xf32> to vector<16x64xf32>
    %53 = vector.shape_cast %52 : vector<16x64xf32> to vector<2x8x64xf32>
    %54 = vector.extract_strided_slice %49 {offsets = [0, 0, 0], sizes = [2, 8, 16], strides = [1, 1, 1]} : vector<2x8x64xf32> to vector<2x8x16xf32>
    %55 = vector.extract_strided_slice %49 {offsets = [0, 0, 16], sizes = [2, 8, 16], strides = [1, 1, 1]} : vector<2x8x64xf32> to vector<2x8x16xf32>
    %56 = vector.extract_strided_slice %49 {offsets = [0, 0, 32], sizes = [2, 8, 16], strides = [1, 1, 1]} : vector<2x8x64xf32> to vector<2x8x16xf32>
    %57 = vector.extract_strided_slice %49 {offsets = [0, 0, 48], sizes = [2, 8, 16], strides = [1, 1, 1]} : vector<2x8x64xf32> to vector<2x8x16xf32>
    %58 = tpu.concatenate %54, %55, %56, %57 in 0 : vector<2x8x16xf32>, vector<2x8x16xf32>, vector<2x8x16xf32>, vector<2x8x16xf32> -> vector<8x8x16xf32>
    %cst_25 = arith.constant 2.500000e-01 : f32
    %59 = vector.broadcast %cst_25 : f32 to vector<8x8x16xf32>
    %60 = arith.mulf %58, %59 : vector<8x8x16xf32>
    %61 = arith.truncf %60 : vector<8x8x16xf32> to vector<8x8x16xbf16>
    %62 = vector.extract_strided_slice %51 {offsets = [0, 0, 0], sizes = [2, 8, 16], strides = [1, 1, 1]} : vector<2x8x64xf32> to vector<2x8x16xf32>
    %63 = vector.extract_strided_slice %51 {offsets = [0, 0, 16], sizes = [2, 8, 16], strides = [1, 1, 1]} : vector<2x8x64xf32> to vector<2x8x16xf32>
    %64 = vector.extract_strided_slice %51 {offsets = [0, 0, 32], sizes = [2, 8, 16], strides = [1, 1, 1]} : vector<2x8x64xf32> to vector<2x8x16xf32>
    %65 = vector.extract_strided_slice %51 {offsets = [0, 0, 48], sizes = [2, 8, 16], strides = [1, 1, 1]} : vector<2x8x64xf32> to vector<2x8x16xf32>
    %66 = tpu.concatenate %62, %63, %64, %65 in 0 : vector<2x8x16xf32>, vector<2x8x16xf32>, vector<2x8x16xf32>, vector<2x8x16xf32> -> vector<8x8x16xf32>
    %67 = arith.truncf %66 : vector<8x8x16xf32> to vector<8x8x16xbf16>
    %68 = vector.extract_strided_slice %53 {offsets = [0, 0, 0], sizes = [2, 8, 16], strides = [1, 1, 1]} : vector<2x8x64xf32> to vector<2x8x16xf32>
    %69 = vector.extract_strided_slice %53 {offsets = [0, 0, 16], sizes = [2, 8, 16], strides = [1, 1, 1]} : vector<2x8x64xf32> to vector<2x8x16xf32>
    %70 = vector.extract_strided_slice %53 {offsets = [0, 0, 32], sizes = [2, 8, 16], strides = [1, 1, 1]} : vector<2x8x64xf32> to vector<2x8x16xf32>
    %71 = vector.extract_strided_slice %53 {offsets = [0, 0, 48], sizes = [2, 8, 16], strides = [1, 1, 1]} : vector<2x8x64xf32> to vector<2x8x16xf32>
    %72 = tpu.concatenate %68, %69, %70, %71 in 0 : vector<2x8x16xf32>, vector<2x8x16xf32>, vector<2x8x16xf32>, vector<2x8x16xf32> -> vector<8x8x16xf32>
    %73 = arith.truncf %72 : vector<8x8x16xf32> to vector<8x8x16xbf16>
    "tpu.trace_start"() <{level = 10 : i32, message = "bqd,bkd->bqk"}> : () -> ()
    %cst_26 = arith.constant dense<0.000000e+00> : vector<8x8x8xf32>
    %74 = tpu.matmul %61, %67, %cst_26 {dimension_numbers = #tpu.dot_dimension_numbers<[2], [2], [1], [1], [0, 0, 0, 1, 1, 1], [0], [0]>} : vector<8x8x16xbf16>, vector<8x8x16xbf16>, vector<8x8x8xf32> -> vector<8x8x8xf32>
    "tpu.trace_stop"() : () -> ()
    %75 = arith.addf %74, %13 : vector<8x8x8xf32>
    %cst_27 = arith.constant dense<0xFF800000> : vector<8x8xf32>
    %76 = vector.multi_reduction <maximumf>, %75, %cst_27 [2] : vector<8x8x8xf32> to vector<8x8xf32>
    %77 = vector.shape_cast %76 : vector<8x8xf32> to vector<8x8x1xf32>
    %78 = vector.broadcast %77 : vector<8x8x1xf32> to vector<8x8x8xf32>
    %79 = arith.subf %75, %78 : vector<8x8x8xf32>
    %80 = math.exp %79 : vector<8x8x8xf32>
    %cst_28 = arith.constant dense<0.000000e+00> : vector<8x8xf32>
    %81 = vector.multi_reduction <add>, %80, %cst_28 [2] : vector<8x8x8xf32> to vector<8x8xf32>
    %82 = vector.shape_cast %81 : vector<8x8xf32> to vector<8x8x1xf32>
    %83 = tpu.reciprocal %82 {approx = true} : vector<8x8x1xf32> -> vector<8x8x1xf32>
    %84 = vector.broadcast %83 : vector<8x8x1xf32> to vector<8x8x8xf32>
    %85 = arith.mulf %80, %84 : vector<8x8x8xf32>
    %86 = arith.truncf %85 : vector<8x8x8xf32> to vector<8x8x8xbf16>
    "tpu.trace_start"() <{level = 10 : i32, message = "bqk,bkd->bqd"}> : () -> ()
    %cst_29 = arith.constant dense<0.000000e+00> : vector<8x8x16xf32>
    %87 = tpu.matmul %86, %73, %cst_29 {dimension_numbers = #tpu.dot_dimension_numbers<[2], [1], [1], [2], [0, 0, 0, 1, 1, 2], [0], [0]>} : vector<8x8x8xbf16>, vector<8x8x16xbf16>, vector<8x8x16xf32> -> vector<8x8x16xf32>
    "tpu.trace_stop"() : () -> ()
    %88 = vector.extract_strided_slice %87 {offsets = [0, 0, 0], sizes = [2, 8, 16], strides = [1, 1, 1]} : vector<8x8x16xf32> to vector<2x8x16xf32>
    %89 = vector.extract_strided_slice %87 {offsets = [2, 0, 0], sizes = [2, 8, 16], strides = [1, 1, 1]} : vector<8x8x16xf32> to vector<2x8x16xf32>
    %90 = vector.extract_strided_slice %87 {offsets = [4, 0, 0], sizes = [2, 8, 16], strides = [1, 1, 1]} : vector<8x8x16xf32> to vector<2x8x16xf32>
    %91 = vector.extract_strided_slice %87 {offsets = [6, 0, 0], sizes = [2, 8, 16], strides = [1, 1, 1]} : vector<8x8x16xf32> to vector<2x8x16xf32>
    %92 = tpu.concatenate %88, %89, %90, %91 in 2 : vector<2x8x16xf32>, vector<2x8x16xf32>, vector<2x8x16xf32>, vector<2x8x16xf32> -> vector<2x8x64xf32>
    %93 = vector.shape_cast %92 : vector<2x8x64xf32> to vector<16x64xf32>
    %94 = arith.truncf %93 : vector<16x64xf32> to vector<16x64xbf16>
    %c0_30 = arith.constant 0 : index
    %c0_31 = arith.constant 0 : index
    %c0_32 = arith.constant 0 : index
    %95 = vector.load %arg7[%c0_30, %c0_31, %c0_32] : memref<2x64x64xbf16, #tpu.memory_space<vmem>>, vector<1x64x64xbf16>
    %96 = vector.shape_cast %95 : vector<1x64x64xbf16> to vector<64x64xbf16>
    %cst_33 = arith.constant dense<0.000000e+00> : vector<16x64xf32>
    %97 = tpu.matmul %94, %96, %cst_33 {dimension_numbers = #tpu.dot_dimension_numbers<[1], [0], [0], [1], [0, 0, 1, 1], [], []>} : vector<16x64xbf16>, vector<64x64xbf16>, vector<16x64xf32> -> vector<16x64xf32>
    %98 = arith.addf %4, %97 : vector<16x64xf32>
    %c0_34 = arith.constant 0 : index
    %c0_35 = arith.constant 0 : index
    %c0_36 = arith.constant 0 : index
    %99 = vector.load %arg8[%c0_34, %c0_35, %c0_36] : memref<2x1x64xf32, #tpu.memory_space<vmem>>, vector<1x1x64xf32>
    %100 = vector.shape_cast %99 : vector<1x1x64xf32> to vector<1x64xf32>
    %101 = vector.broadcast %100 : vector<1x64xf32> to vector<16x64xf32>
    %102 = arith.addf %98, %101 : vector<16x64xf32>
    %c0_37 = arith.constant 0 : index
    %c0_38 = arith.constant 0 : index
    %c0_39 = arith.constant 0 : index
    %103 = vector.load %arg9[%c0_37, %c0_38, %c0_39] : memref<2x1x64xf32, #tpu.memory_space<vmem>>, vector<1x1x64xf32>
    %104 = vector.shape_cast %103 : vector<1x1x64xf32> to vector<1x64xf32>
    %c0_40 = arith.constant 0 : index
    %c0_41 = arith.constant 0 : index
    %c0_42 = arith.constant 0 : index
    %105 = vector.load %arg10[%c0_40, %c0_41, %c0_42] : memref<2x1x64xf32, #tpu.memory_space<vmem>>, vector<1x1x64xf32>
    %106 = vector.shape_cast %105 : vector<1x1x64xf32> to vector<1x64xf32>
    %cst_43 = arith.constant dense<0.000000e+00> : vector<16xf32>
    %107 = vector.multi_reduction <add>, %102, %cst_43 [1] : vector<16x64xf32> to vector<16xf32>
    %108 = vector.shape_cast %107 : vector<16xf32> to vector<16x1xf32>
    %cst_44 = arith.constant 6.400000e+01 : f32
    %109 = vector.broadcast %cst_44 : f32 to vector<16x1xf32>
    %110 = arith.divf %108, %109 : vector<16x1xf32>
    %111 = vector.broadcast %110 : vector<16x1xf32> to vector<16x64xf32>
    %112 = arith.subf %102, %111 : vector<16x64xf32>
    %113 = arith.mulf %112, %112 : vector<16x64xf32>
    %cst_45 = arith.constant dense<0.000000e+00> : vector<16xf32>
    %114 = vector.multi_reduction <add>, %113, %cst_45 [1] : vector<16x64xf32> to vector<16xf32>
    %115 = vector.shape_cast %114 : vector<16xf32> to vector<16x1xf32>
    %cst_46 = arith.constant 6.400000e+01 : f32
    %116 = vector.broadcast %cst_46 : f32 to vector<16x1xf32>
    %117 = arith.divf %115, %116 : vector<16x1xf32>
    %118 = vector.broadcast %110 : vector<16x1xf32> to vector<16x64xf32>
    %119 = arith.subf %102, %118 : vector<16x64xf32>
    %cst_47 = arith.constant 9.99999996E-13 : f32
    %120 = vector.broadcast %cst_47 : f32 to vector<16x1xf32>
    %121 = arith.addf %117, %120 : vector<16x1xf32>
    %122 = math.rsqrt %121 : vector<16x1xf32>
    %123 = vector.broadcast %122 : vector<16x1xf32> to vector<16x64xf32>
    %124 = arith.mulf %119, %123 : vector<16x64xf32>
    %125 = vector.broadcast %104 : vector<1x64xf32> to vector<16x64xf32>
    %126 = arith.mulf %124, %125 : vector<16x64xf32>
    %127 = vector.broadcast %106 : vector<1x64xf32> to vector<16x64xf32>
    %128 = arith.addf %126, %127 : vector<16x64xf32>
    %129 = arith.truncf %128 : vector<16x64xf32> to vector<16x64xbf16>
    %c0_48 = arith.constant 0 : index
    %c0_49 = arith.constant 0 : index
    %c0_50 = arith.constant 0 : index
    %130 = vector.load %arg11[%c0_48, %c0_49, %c0_50] : memref<2x64x128xbf16, #tpu.memory_space<vmem>>, vector<1x64x128xbf16>
    %131 = vector.shape_cast %130 : vector<1x64x128xbf16> to vector<64x128xbf16>
    %cst_51 = arith.constant dense<0.000000e+00> : vector<16x128xf32>
    %132 = tpu.matmul %129, %131, %cst_51 {dimension_numbers = #tpu.dot_dimension_numbers<[1], [0], [0], [1], [0, 0, 1, 1], [], []>} : vector<16x64xbf16>, vector<64x128xbf16>, vector<16x128xf32> -> vector<16x128xf32>
    %c0_52 = arith.constant 0 : index
    %c0_53 = arith.constant 0 : index
    %c0_54 = arith.constant 0 : index
    %133 = vector.load %arg12[%c0_52, %c0_53, %c0_54] : memref<2x1x128xf32, #tpu.memory_space<vmem>>, vector<1x1x128xf32>
    %134 = vector.shape_cast %133 : vector<1x1x128xf32> to vector<1x128xf32>
    %135 = vector.broadcast %134 : vector<1x128xf32> to vector<16x128xf32>
    %136 = arith.addf %132, %135 : vector<16x128xf32>
    %cst_55 = arith.constant 5.000000e-01 : f32
    %137 = vector.broadcast %cst_55 : f32 to vector<16x128xf32>
    %138 = arith.mulf %137, %136 : vector<16x128xf32>
    %cst_56 = arith.constant 0.707106769 : f32
    %139 = vector.broadcast %cst_56 : f32 to vector<16x128xf32>
    %140 = arith.mulf %136, %139 : vector<16x128xf32>
    %cst_57 = arith.constant 0.000000e+00 : f32
    %141 = vector.broadcast %cst_57 : f32 to vector<16x128xf32>
    %142 = arith.cmpf oge, %140, %141 : vector<16x128xf32>
    %cst_58 = arith.constant 1.000000e+00 : f32
    %cst_59 = arith.constant -1.000000e+00 : f32
    %143 = vector.broadcast %cst_58 : f32 to vector<16x128xf32>
    %144 = vector.broadcast %cst_59 : f32 to vector<16x128xf32>
    %145 = arith.select %142, %143, %144 : vector<16x128xi1>, vector<16x128xf32>
    %146 = math.absf %140 : vector<16x128xf32>
    %cst_60 = arith.constant 0.327591091 : f32
    %147 = vector.broadcast %cst_60 : f32 to vector<16x128xf32>
    %148 = arith.mulf %147, %146 : vector<16x128xf32>
    %cst_61 = arith.constant 1.000000e+00 : f32
    %149 = vector.broadcast %cst_61 : f32 to vector<16x128xf32>
    %150 = arith.addf %149, %148 : vector<16x128xf32>
    %cst_62 = arith.constant 1.000000e+00 : f32
    %151 = vector.broadcast %cst_62 : f32 to vector<16x128xf32>
    %152 = arith.divf %151, %150 : vector<16x128xf32>
    %cst_63 = arith.constant 1.06140542 : f32
    %153 = vector.broadcast %cst_63 : f32 to vector<16x128xf32>
    %154 = arith.mulf %153, %152 : vector<16x128xf32>
    %cst_64 = arith.constant -1.45315206 : f32
    %155 = vector.broadcast %cst_64 : f32 to vector<16x128xf32>
    %156 = arith.addf %154, %155 : vector<16x128xf32>
    %157 = arith.mulf %156, %152 : vector<16x128xf32>
    %cst_65 = arith.constant 1.42141378 : f32
    %158 = vector.broadcast %cst_65 : f32 to vector<16x128xf32>
    %159 = arith.addf %157, %158 : vector<16x128xf32>
    %160 = arith.mulf %159, %152 : vector<16x128xf32>
    %cst_66 = arith.constant -0.284496725 : f32
    %161 = vector.broadcast %cst_66 : f32 to vector<16x128xf32>
    %162 = arith.addf %160, %161 : vector<16x128xf32>
    %163 = arith.mulf %162, %152 : vector<16x128xf32>
    %cst_67 = arith.constant 0.254829586 : f32
    %164 = vector.broadcast %cst_67 : f32 to vector<16x128xf32>
    %165 = arith.addf %163, %164 : vector<16x128xf32>
    %166 = arith.mulf %165, %152 : vector<16x128xf32>
    %cst_68 = arith.constant 0.000000e+00 : f32
    %167 = vector.broadcast %cst_68 : f32 to vector<16x128xf32>
    %168 = arith.subf %167, %146 : vector<16x128xf32>
    %169 = arith.mulf %168, %146 : vector<16x128xf32>
    %170 = math.exp %169 : vector<16x128xf32>
    %171 = arith.mulf %166, %170 : vector<16x128xf32>
    %cst_69 = arith.constant 1.000000e+00 : f32
    %172 = vector.broadcast %cst_69 : f32 to vector<16x128xf32>
    %173 = arith.subf %172, %171 : vector<16x128xf32>
    %174 = arith.mulf %145, %173 : vector<16x128xf32>
    %cst_70 = arith.constant 1.000000e+00 : f32
    %175 = vector.broadcast %cst_70 : f32 to vector<16x128xf32>
    %176 = arith.addf %175, %174 : vector<16x128xf32>
    %177 = arith.mulf %138, %176 : vector<16x128xf32>
    %178 = arith.truncf %177 : vector<16x128xf32> to vector<16x128xbf16>
    %c0_71 = arith.constant 0 : index
    %c0_72 = arith.constant 0 : index
    %c0_73 = arith.constant 0 : index
    %179 = vector.load %arg13[%c0_71, %c0_72, %c0_73] : memref<2x128x64xbf16, #tpu.memory_space<vmem>>, vector<1x128x64xbf16>
    %180 = vector.shape_cast %179 : vector<1x128x64xbf16> to vector<128x64xbf16>
    %cst_74 = arith.constant dense<0.000000e+00> : vector<16x64xf32>
    %181 = tpu.matmul %178, %180, %cst_74 {dimension_numbers = #tpu.dot_dimension_numbers<[1], [0], [0], [1], [0, 0, 1, 1], [], []>} : vector<16x128xbf16>, vector<128x64xbf16>, vector<16x64xf32> -> vector<16x64xf32>
    %182 = arith.addf %102, %181 : vector<16x64xf32>
    %c0_75 = arith.constant 0 : index
    %c0_76 = arith.constant 0 : index
    %c0_77 = arith.constant 0 : index
    %183 = vector.load %arg14[%c0_75, %c0_76, %c0_77] : memref<2x1x64xf32, #tpu.memory_space<vmem>>, vector<1x1x64xf32>
    %184 = vector.shape_cast %183 : vector<1x1x64xf32> to vector<1x64xf32>
    %185 = vector.broadcast %184 : vector<1x64xf32> to vector<16x64xf32>
    %186 = arith.addf %182, %185 : vector<16x64xf32>
    %c1 = arith.constant 1 : index
    %c0_78 = arith.constant 0 : index
    %c0_79 = arith.constant 0 : index
    %187 = vector.load %arg3[%c1, %c0_78, %c0_79] : memref<2x1x64xf32, #tpu.memory_space<vmem>>, vector<1x1x64xf32>
    %188 = vector.shape_cast %187 : vector<1x1x64xf32> to vector<1x64xf32>
    %c1_80 = arith.constant 1 : index
    %c0_81 = arith.constant 0 : index
    %c0_82 = arith.constant 0 : index
    %189 = vector.load %arg4[%c1_80, %c0_81, %c0_82] : memref<2x1x64xf32, #tpu.memory_space<vmem>>, vector<1x1x64xf32>
    %190 = vector.shape_cast %189 : vector<1x1x64xf32> to vector<1x64xf32>
    %cst_83 = arith.constant dense<0.000000e+00> : vector<16xf32>
    %191 = vector.multi_reduction <add>, %186, %cst_83 [1] : vector<16x64xf32> to vector<16xf32>
    %192 = vector.shape_cast %191 : vector<16xf32> to vector<16x1xf32>
    %cst_84 = arith.constant 6.400000e+01 : f32
    %193 = vector.broadcast %cst_84 : f32 to vector<16x1xf32>
    %194 = arith.divf %192, %193 : vector<16x1xf32>
    %195 = vector.broadcast %194 : vector<16x1xf32> to vector<16x64xf32>
    %196 = arith.subf %186, %195 : vector<16x64xf32>
    %197 = arith.mulf %196, %196 : vector<16x64xf32>
    %cst_85 = arith.constant dense<0.000000e+00> : vector<16xf32>
    %198 = vector.multi_reduction <add>, %197, %cst_85 [1] : vector<16x64xf32> to vector<16xf32>
    %199 = vector.shape_cast %198 : vector<16xf32> to vector<16x1xf32>
    %cst_86 = arith.constant 6.400000e+01 : f32
    %200 = vector.broadcast %cst_86 : f32 to vector<16x1xf32>
    %201 = arith.divf %199, %200 : vector<16x1xf32>
    %202 = vector.broadcast %194 : vector<16x1xf32> to vector<16x64xf32>
    %203 = arith.subf %186, %202 : vector<16x64xf32>
    %cst_87 = arith.constant 9.99999996E-13 : f32
    %204 = vector.broadcast %cst_87 : f32 to vector<16x1xf32>
    %205 = arith.addf %201, %204 : vector<16x1xf32>
    %206 = math.rsqrt %205 : vector<16x1xf32>
    %207 = vector.broadcast %206 : vector<16x1xf32> to vector<16x64xf32>
    %208 = arith.mulf %203, %207 : vector<16x64xf32>
    %209 = vector.broadcast %188 : vector<1x64xf32> to vector<16x64xf32>
    %210 = arith.mulf %208, %209 : vector<16x64xf32>
    %211 = vector.broadcast %190 : vector<1x64xf32> to vector<16x64xf32>
    %212 = arith.addf %210, %211 : vector<16x64xf32>
    %213 = arith.truncf %212 : vector<16x64xf32> to vector<16x64xbf16>
    %c1_88 = arith.constant 1 : index
    %c0_89 = arith.constant 0 : index
    %c0_90 = arith.constant 0 : index
    %214 = vector.load %arg5[%c1_88, %c0_89, %c0_90] : memref<2x64x192xbf16, #tpu.memory_space<vmem>>, vector<1x64x192xbf16>
    %215 = vector.shape_cast %214 : vector<1x64x192xbf16> to vector<64x192xbf16>
    %cst_91 = arith.constant dense<0.000000e+00> : vector<16x192xf32>
    %216 = tpu.matmul %213, %215, %cst_91 {dimension_numbers = #tpu.dot_dimension_numbers<[1], [0], [0], [1], [0, 0, 1, 1], [], []>} : vector<16x64xbf16>, vector<64x192xbf16>, vector<16x192xf32> -> vector<16x192xf32>
    %c1_92 = arith.constant 1 : index
    %c0_93 = arith.constant 0 : index
    %c0_94 = arith.constant 0 : index
    %217 = vector.load %arg6[%c1_92, %c0_93, %c0_94] : memref<2x1x192xf32, #tpu.memory_space<vmem>>, vector<1x1x192xf32>
    %218 = vector.shape_cast %217 : vector<1x1x192xf32> to vector<1x192xf32>
    %219 = vector.broadcast %218 : vector<1x192xf32> to vector<16x192xf32>
    %220 = arith.addf %216, %219 : vector<16x192xf32>
    %221 = vector.extract_strided_slice %220 {offsets = [0, 0], sizes = [16, 64], strides = [1, 1]} : vector<16x192xf32> to vector<16x64xf32>
    %222 = vector.shape_cast %221 : vector<16x64xf32> to vector<2x8x64xf32>
    %223 = vector.extract_strided_slice %220 {offsets = [0, 64], sizes = [16, 64], strides = [1, 1]} : vector<16x192xf32> to vector<16x64xf32>
    %224 = vector.shape_cast %223 : vector<16x64xf32> to vector<2x8x64xf32>
    %225 = vector.extract_strided_slice %220 {offsets = [0, 128], sizes = [16, 64], strides = [1, 1]} : vector<16x192xf32> to vector<16x64xf32>
    %226 = vector.shape_cast %225 : vector<16x64xf32> to vector<2x8x64xf32>
    %227 = vector.extract_strided_slice %222 {offsets = [0, 0, 0], sizes = [2, 8, 16], strides = [1, 1, 1]} : vector<2x8x64xf32> to vector<2x8x16xf32>
    %228 = vector.extract_strided_slice %222 {offsets = [0, 0, 16], sizes = [2, 8, 16], strides = [1, 1, 1]} : vector<2x8x64xf32> to vector<2x8x16xf32>
    %229 = vector.extract_strided_slice %222 {offsets = [0, 0, 32], sizes = [2, 8, 16], strides = [1, 1, 1]} : vector<2x8x64xf32> to vector<2x8x16xf32>
    %230 = vector.extract_strided_slice %222 {offsets = [0, 0, 48], sizes = [2, 8, 16], strides = [1, 1, 1]} : vector<2x8x64xf32> to vector<2x8x16xf32>
    %231 = tpu.concatenate %227, %228, %229, %230 in 0 : vector<2x8x16xf32>, vector<2x8x16xf32>, vector<2x8x16xf32>, vector<2x8x16xf32> -> vector<8x8x16xf32>
    %cst_95 = arith.constant 2.500000e-01 : f32
    %232 = vector.broadcast %cst_95 : f32 to vector<8x8x16xf32>
    %233 = arith.mulf %231, %232 : vector<8x8x16xf32>
    %234 = arith.truncf %233 : vector<8x8x16xf32> to vector<8x8x16xbf16>
    %235 = vector.extract_strided_slice %224 {offsets = [0, 0, 0], sizes = [2, 8, 16], strides = [1, 1, 1]} : vector<2x8x64xf32> to vector<2x8x16xf32>
    %236 = vector.extract_strided_slice %224 {offsets = [0, 0, 16], sizes = [2, 8, 16], strides = [1, 1, 1]} : vector<2x8x64xf32> to vector<2x8x16xf32>
    %237 = vector.extract_strided_slice %224 {offsets = [0, 0, 32], sizes = [2, 8, 16], strides = [1, 1, 1]} : vector<2x8x64xf32> to vector<2x8x16xf32>
    %238 = vector.extract_strided_slice %224 {offsets = [0, 0, 48], sizes = [2, 8, 16], strides = [1, 1, 1]} : vector<2x8x64xf32> to vector<2x8x16xf32>
    %239 = tpu.concatenate %235, %236, %237, %238 in 0 : vector<2x8x16xf32>, vector<2x8x16xf32>, vector<2x8x16xf32>, vector<2x8x16xf32> -> vector<8x8x16xf32>
    %240 = arith.truncf %239 : vector<8x8x16xf32> to vector<8x8x16xbf16>
    %241 = vector.extract_strided_slice %226 {offsets = [0, 0, 0], sizes = [2, 8, 16], strides = [1, 1, 1]} : vector<2x8x64xf32> to vector<2x8x16xf32>
    %242 = vector.extract_strided_slice %226 {offsets = [0, 0, 16], sizes = [2, 8, 16], strides = [1, 1, 1]} : vector<2x8x64xf32> to vector<2x8x16xf32>
    %243 = vector.extract_strided_slice %226 {offsets = [0, 0, 32], sizes = [2, 8, 16], strides = [1, 1, 1]} : vector<2x8x64xf32> to vector<2x8x16xf32>
    %244 = vector.extract_strided_slice %226 {offsets = [0, 0, 48], sizes = [2, 8, 16], strides = [1, 1, 1]} : vector<2x8x64xf32> to vector<2x8x16xf32>
    %245 = tpu.concatenate %241, %242, %243, %244 in 0 : vector<2x8x16xf32>, vector<2x8x16xf32>, vector<2x8x16xf32>, vector<2x8x16xf32> -> vector<8x8x16xf32>
    %246 = arith.truncf %245 : vector<8x8x16xf32> to vector<8x8x16xbf16>
    "tpu.trace_start"() <{level = 10 : i32, message = "bqd,bkd->bqk"}> : () -> ()
    %cst_96 = arith.constant dense<0.000000e+00> : vector<8x8x8xf32>
    %247 = tpu.matmul %234, %240, %cst_96 {dimension_numbers = #tpu.dot_dimension_numbers<[2], [2], [1], [1], [0, 0, 0, 1, 1, 1], [0], [0]>} : vector<8x8x16xbf16>, vector<8x8x16xbf16>, vector<8x8x8xf32> -> vector<8x8x8xf32>
    "tpu.trace_stop"() : () -> ()
    %248 = arith.addf %247, %13 : vector<8x8x8xf32>
    %cst_97 = arith.constant dense<0xFF800000> : vector<8x8xf32>
    %249 = vector.multi_reduction <maximumf>, %248, %cst_97 [2] : vector<8x8x8xf32> to vector<8x8xf32>
    %250 = vector.shape_cast %249 : vector<8x8xf32> to vector<8x8x1xf32>
    %251 = vector.broadcast %250 : vector<8x8x1xf32> to vector<8x8x8xf32>
    %252 = arith.subf %248, %251 : vector<8x8x8xf32>
    %253 = math.exp %252 : vector<8x8x8xf32>
    %cst_98 = arith.constant dense<0.000000e+00> : vector<8x8xf32>
    %254 = vector.multi_reduction <add>, %253, %cst_98 [2] : vector<8x8x8xf32> to vector<8x8xf32>
    %255 = vector.shape_cast %254 : vector<8x8xf32> to vector<8x8x1xf32>
    %256 = tpu.reciprocal %255 {approx = true} : vector<8x8x1xf32> -> vector<8x8x1xf32>
    %257 = vector.broadcast %256 : vector<8x8x1xf32> to vector<8x8x8xf32>
    %258 = arith.mulf %253, %257 : vector<8x8x8xf32>
    %259 = arith.truncf %258 : vector<8x8x8xf32> to vector<8x8x8xbf16>
    "tpu.trace_start"() <{level = 10 : i32, message = "bqk,bkd->bqd"}> : () -> ()
    %cst_99 = arith.constant dense<0.000000e+00> : vector<8x8x16xf32>
    %260 = tpu.matmul %259, %246, %cst_99 {dimension_numbers = #tpu.dot_dimension_numbers<[2], [1], [1], [2], [0, 0, 0, 1, 1, 2], [0], [0]>} : vector<8x8x8xbf16>, vector<8x8x16xbf16>, vector<8x8x16xf32> -> vector<8x8x16xf32>
    "tpu.trace_stop"() : () -> ()
    %261 = vector.extract_strided_slice %260 {offsets = [0, 0, 0], sizes = [2, 8, 16], strides = [1, 1, 1]} : vector<8x8x16xf32> to vector<2x8x16xf32>
    %262 = vector.extract_strided_slice %260 {offsets = [2, 0, 0], sizes = [2, 8, 16], strides = [1, 1, 1]} : vector<8x8x16xf32> to vector<2x8x16xf32>
    %263 = vector.extract_strided_slice %260 {offsets = [4, 0, 0], sizes = [2, 8, 16], strides = [1, 1, 1]} : vector<8x8x16xf32> to vector<2x8x16xf32>
    %264 = vector.extract_strided_slice %260 {offsets = [6, 0, 0], sizes = [2, 8, 16], strides = [1, 1, 1]} : vector<8x8x16xf32> to vector<2x8x16xf32>
    %265 = tpu.concatenate %261, %262, %263, %264 in 2 : vector<2x8x16xf32>, vector<2x8x16xf32>, vector<2x8x16xf32>, vector<2x8x16xf32> -> vector<2x8x64xf32>
    %266 = vector.shape_cast %265 : vector<2x8x64xf32> to vector<16x64xf32>
    %267 = arith.truncf %266 : vector<16x64xf32> to vector<16x64xbf16>
    %c1_100 = arith.constant 1 : index
    %c0_101 = arith.constant 0 : index
    %c0_102 = arith.constant 0 : index
    %268 = vector.load %arg7[%c1_100, %c0_101, %c0_102] : memref<2x64x64xbf16, #tpu.memory_space<vmem>>, vector<1x64x64xbf16>
    %269 = vector.shape_cast %268 : vector<1x64x64xbf16> to vector<64x64xbf16>
    %cst_103 = arith.constant dense<0.000000e+00> : vector<16x64xf32>
    %270 = tpu.matmul %267, %269, %cst_103 {dimension_numbers = #tpu.dot_dimension_numbers<[1], [0], [0], [1], [0, 0, 1, 1], [], []>} : vector<16x64xbf16>, vector<64x64xbf16>, vector<16x64xf32> -> vector<16x64xf32>
    %271 = arith.addf %186, %270 : vector<16x64xf32>
    %c1_104 = arith.constant 1 : index
    %c0_105 = arith.constant 0 : index
    %c0_106 = arith.constant 0 : index
    %272 = vector.load %arg8[%c1_104, %c0_105, %c0_106] : memref<2x1x64xf32, #tpu.memory_space<vmem>>, vector<1x1x64xf32>
    %273 = vector.shape_cast %272 : vector<1x1x64xf32> to vector<1x64xf32>
    %274 = vector.broadcast %273 : vector<1x64xf32> to vector<16x64xf32>
    %275 = arith.addf %271, %274 : vector<16x64xf32>
    %c1_107 = arith.constant 1 : index
    %c0_108 = arith.constant 0 : index
    %c0_109 = arith.constant 0 : index
    %276 = vector.load %arg9[%c1_107, %c0_108, %c0_109] : memref<2x1x64xf32, #tpu.memory_space<vmem>>, vector<1x1x64xf32>
    %277 = vector.shape_cast %276 : vector<1x1x64xf32> to vector<1x64xf32>
    %c1_110 = arith.constant 1 : index
    %c0_111 = arith.constant 0 : index
    %c0_112 = arith.constant 0 : index
    %278 = vector.load %arg10[%c1_110, %c0_111, %c0_112] : memref<2x1x64xf32, #tpu.memory_space<vmem>>, vector<1x1x64xf32>
    %279 = vector.shape_cast %278 : vector<1x1x64xf32> to vector<1x64xf32>
    %cst_113 = arith.constant dense<0.000000e+00> : vector<16xf32>
    %280 = vector.multi_reduction <add>, %275, %cst_113 [1] : vector<16x64xf32> to vector<16xf32>
    %281 = vector.shape_cast %280 : vector<16xf32> to vector<16x1xf32>
    %cst_114 = arith.constant 6.400000e+01 : f32
    %282 = vector.broadcast %cst_114 : f32 to vector<16x1xf32>
    %283 = arith.divf %281, %282 : vector<16x1xf32>
    %284 = vector.broadcast %283 : vector<16x1xf32> to vector<16x64xf32>
    %285 = arith.subf %275, %284 : vector<16x64xf32>
    %286 = arith.mulf %285, %285 : vector<16x64xf32>
    %cst_115 = arith.constant dense<0.000000e+00> : vector<16xf32>
    %287 = vector.multi_reduction <add>, %286, %cst_115 [1] : vector<16x64xf32> to vector<16xf32>
    %288 = vector.shape_cast %287 : vector<16xf32> to vector<16x1xf32>
    %cst_116 = arith.constant 6.400000e+01 : f32
    %289 = vector.broadcast %cst_116 : f32 to vector<16x1xf32>
    %290 = arith.divf %288, %289 : vector<16x1xf32>
    %291 = vector.broadcast %283 : vector<16x1xf32> to vector<16x64xf32>
    %292 = arith.subf %275, %291 : vector<16x64xf32>
    %cst_117 = arith.constant 9.99999996E-13 : f32
    %293 = vector.broadcast %cst_117 : f32 to vector<16x1xf32>
    %294 = arith.addf %290, %293 : vector<16x1xf32>
    %295 = math.rsqrt %294 : vector<16x1xf32>
    %296 = vector.broadcast %295 : vector<16x1xf32> to vector<16x64xf32>
    %297 = arith.mulf %292, %296 : vector<16x64xf32>
    %298 = vector.broadcast %277 : vector<1x64xf32> to vector<16x64xf32>
    %299 = arith.mulf %297, %298 : vector<16x64xf32>
    %300 = vector.broadcast %279 : vector<1x64xf32> to vector<16x64xf32>
    %301 = arith.addf %299, %300 : vector<16x64xf32>
    %302 = arith.truncf %301 : vector<16x64xf32> to vector<16x64xbf16>
    %c1_118 = arith.constant 1 : index
    %c0_119 = arith.constant 0 : index
    %c0_120 = arith.constant 0 : index
    %303 = vector.load %arg11[%c1_118, %c0_119, %c0_120] : memref<2x64x128xbf16, #tpu.memory_space<vmem>>, vector<1x64x128xbf16>
    %304 = vector.shape_cast %303 : vector<1x64x128xbf16> to vector<64x128xbf16>
    %cst_121 = arith.constant dense<0.000000e+00> : vector<16x128xf32>
    %305 = tpu.matmul %302, %304, %cst_121 {dimension_numbers = #tpu.dot_dimension_numbers<[1], [0], [0], [1], [0, 0, 1, 1], [], []>} : vector<16x64xbf16>, vector<64x128xbf16>, vector<16x128xf32> -> vector<16x128xf32>
    %c1_122 = arith.constant 1 : index
    %c0_123 = arith.constant 0 : index
    %c0_124 = arith.constant 0 : index
    %306 = vector.load %arg12[%c1_122, %c0_123, %c0_124] : memref<2x1x128xf32, #tpu.memory_space<vmem>>, vector<1x1x128xf32>
    %307 = vector.shape_cast %306 : vector<1x1x128xf32> to vector<1x128xf32>
    %308 = vector.broadcast %307 : vector<1x128xf32> to vector<16x128xf32>
    %309 = arith.addf %305, %308 : vector<16x128xf32>
    %cst_125 = arith.constant 5.000000e-01 : f32
    %310 = vector.broadcast %cst_125 : f32 to vector<16x128xf32>
    %311 = arith.mulf %310, %309 : vector<16x128xf32>
    %cst_126 = arith.constant 0.707106769 : f32
    %312 = vector.broadcast %cst_126 : f32 to vector<16x128xf32>
    %313 = arith.mulf %309, %312 : vector<16x128xf32>
    %cst_127 = arith.constant 0.000000e+00 : f32
    %314 = vector.broadcast %cst_127 : f32 to vector<16x128xf32>
    %315 = arith.cmpf oge, %313, %314 : vector<16x128xf32>
    %cst_128 = arith.constant 1.000000e+00 : f32
    %cst_129 = arith.constant -1.000000e+00 : f32
    %316 = vector.broadcast %cst_128 : f32 to vector<16x128xf32>
    %317 = vector.broadcast %cst_129 : f32 to vector<16x128xf32>
    %318 = arith.select %315, %316, %317 : vector<16x128xi1>, vector<16x128xf32>
    %319 = math.absf %313 : vector<16x128xf32>
    %cst_130 = arith.constant 0.327591091 : f32
    %320 = vector.broadcast %cst_130 : f32 to vector<16x128xf32>
    %321 = arith.mulf %320, %319 : vector<16x128xf32>
    %cst_131 = arith.constant 1.000000e+00 : f32
    %322 = vector.broadcast %cst_131 : f32 to vector<16x128xf32>
    %323 = arith.addf %322, %321 : vector<16x128xf32>
    %cst_132 = arith.constant 1.000000e+00 : f32
    %324 = vector.broadcast %cst_132 : f32 to vector<16x128xf32>
    %325 = arith.divf %324, %323 : vector<16x128xf32>
    %cst_133 = arith.constant 1.06140542 : f32
    %326 = vector.broadcast %cst_133 : f32 to vector<16x128xf32>
    %327 = arith.mulf %326, %325 : vector<16x128xf32>
    %cst_134 = arith.constant -1.45315206 : f32
    %328 = vector.broadcast %cst_134 : f32 to vector<16x128xf32>
    %329 = arith.addf %327, %328 : vector<16x128xf32>
    %330 = arith.mulf %329, %325 : vector<16x128xf32>
    %cst_135 = arith.constant 1.42141378 : f32
    %331 = vector.broadcast %cst_135 : f32 to vector<16x128xf32>
    %332 = arith.addf %330, %331 : vector<16x128xf32>
    %333 = arith.mulf %332, %325 : vector<16x128xf32>
    %cst_136 = arith.constant -0.284496725 : f32
    %334 = vector.broadcast %cst_136 : f32 to vector<16x128xf32>
    %335 = arith.addf %333, %334 : vector<16x128xf32>
    %336 = arith.mulf %335, %325 : vector<16x128xf32>
    %cst_137 = arith.constant 0.254829586 : f32
    %337 = vector.broadcast %cst_137 : f32 to vector<16x128xf32>
    %338 = arith.addf %336, %337 : vector<16x128xf32>
    %339 = arith.mulf %338, %325 : vector<16x128xf32>
    %cst_138 = arith.constant 0.000000e+00 : f32
    %340 = vector.broadcast %cst_138 : f32 to vector<16x128xf32>
    %341 = arith.subf %340, %319 : vector<16x128xf32>
    %342 = arith.mulf %341, %319 : vector<16x128xf32>
    %343 = math.exp %342 : vector<16x128xf32>
    %344 = arith.mulf %339, %343 : vector<16x128xf32>
    %cst_139 = arith.constant 1.000000e+00 : f32
    %345 = vector.broadcast %cst_139 : f32 to vector<16x128xf32>
    %346 = arith.subf %345, %344 : vector<16x128xf32>
    %347 = arith.mulf %318, %346 : vector<16x128xf32>
    %cst_140 = arith.constant 1.000000e+00 : f32
    %348 = vector.broadcast %cst_140 : f32 to vector<16x128xf32>
    %349 = arith.addf %348, %347 : vector<16x128xf32>
    %350 = arith.mulf %311, %349 : vector<16x128xf32>
    %351 = arith.truncf %350 : vector<16x128xf32> to vector<16x128xbf16>
    %c1_141 = arith.constant 1 : index
    %c0_142 = arith.constant 0 : index
    %c0_143 = arith.constant 0 : index
    %352 = vector.load %arg13[%c1_141, %c0_142, %c0_143] : memref<2x128x64xbf16, #tpu.memory_space<vmem>>, vector<1x128x64xbf16>
    %353 = vector.shape_cast %352 : vector<1x128x64xbf16> to vector<128x64xbf16>
    %cst_144 = arith.constant dense<0.000000e+00> : vector<16x64xf32>
    %354 = tpu.matmul %351, %353, %cst_144 {dimension_numbers = #tpu.dot_dimension_numbers<[1], [0], [0], [1], [0, 0, 1, 1], [], []>} : vector<16x128xbf16>, vector<128x64xbf16>, vector<16x64xf32> -> vector<16x64xf32>
    %355 = arith.addf %275, %354 : vector<16x64xf32>
    %c1_145 = arith.constant 1 : index
    %c0_146 = arith.constant 0 : index
    %c0_147 = arith.constant 0 : index
    %356 = vector.load %arg14[%c1_145, %c0_146, %c0_147] : memref<2x1x64xf32, #tpu.memory_space<vmem>>, vector<1x1x64xf32>
    %357 = vector.shape_cast %356 : vector<1x1x64xf32> to vector<1x64xf32>
    %358 = vector.broadcast %357 : vector<1x64xf32> to vector<16x64xf32>
    %359 = arith.addf %355, %358 : vector<16x64xf32>
    %360 = vector.extract_strided_slice %359 {offsets = [0, 0], sizes = [1, 64], strides = [1, 1]} : vector<16x64xf32> to vector<1x64xf32>
    %361 = vector.extract_strided_slice %359 {offsets = [8, 0], sizes = [1, 64], strides = [1, 1]} : vector<16x64xf32> to vector<1x64xf32>
    %362 = tpu.concatenate %360, %361 in 0 : vector<1x64xf32>, vector<1x64xf32> -> vector<2x64xf32>
    %c0_148 = arith.constant 0 : index
    %c0_149 = arith.constant 0 : index
    %363 = vector.load %arg15[%c0_148, %c0_149] : memref<1x64xf32, #tpu.memory_space<vmem>>, vector<1x64xf32>
    %c0_150 = arith.constant 0 : index
    %c0_151 = arith.constant 0 : index
    %364 = vector.load %arg16[%c0_150, %c0_151] : memref<1x64xf32, #tpu.memory_space<vmem>>, vector<1x64xf32>
    %cst_152 = arith.constant dense<0.000000e+00> : vector<2xf32>
    %365 = vector.multi_reduction <add>, %362, %cst_152 [1] : vector<2x64xf32> to vector<2xf32>
    %366 = vector.shape_cast %365 : vector<2xf32> to vector<2x1xf32>
    %cst_153 = arith.constant 6.400000e+01 : f32
    %367 = vector.broadcast %cst_153 : f32 to vector<2x1xf32>
    %368 = arith.divf %366, %367 : vector<2x1xf32>
    %369 = vector.broadcast %368 : vector<2x1xf32> to vector<2x64xf32>
    %370 = arith.subf %362, %369 : vector<2x64xf32>
    %371 = arith.mulf %370, %370 : vector<2x64xf32>
    %cst_154 = arith.constant dense<0.000000e+00> : vector<2xf32>
    %372 = vector.multi_reduction <add>, %371, %cst_154 [1] : vector<2x64xf32> to vector<2xf32>
    %373 = vector.shape_cast %372 : vector<2xf32> to vector<2x1xf32>
    %cst_155 = arith.constant 6.400000e+01 : f32
    %374 = vector.broadcast %cst_155 : f32 to vector<2x1xf32>
    %375 = arith.divf %373, %374 : vector<2x1xf32>
    %376 = vector.broadcast %368 : vector<2x1xf32> to vector<2x64xf32>
    %377 = arith.subf %362, %376 : vector<2x64xf32>
    %cst_156 = arith.constant 9.99999996E-13 : f32
    %378 = vector.broadcast %cst_156 : f32 to vector<2x1xf32>
    %379 = arith.addf %375, %378 : vector<2x1xf32>
    %380 = math.rsqrt %379 : vector<2x1xf32>
    %381 = vector.broadcast %380 : vector<2x1xf32> to vector<2x64xf32>
    %382 = arith.mulf %377, %381 : vector<2x64xf32>
    %383 = vector.broadcast %363 : vector<1x64xf32> to vector<2x64xf32>
    %384 = arith.mulf %382, %383 : vector<2x64xf32>
    %385 = vector.broadcast %364 : vector<1x64xf32> to vector<2x64xf32>
    %386 = arith.addf %384, %385 : vector<2x64xf32>
    %387 = arith.truncf %386 : vector<2x64xf32> to vector<2x64xbf16>
    %c0_157 = arith.constant 0 : index
    %c0_158 = arith.constant 0 : index
    %388 = vector.load %arg17[%c0_157, %c0_158] : memref<64x8xbf16, #tpu.memory_space<vmem>>, vector<64x8xbf16>
    %cst_159 = arith.constant dense<0.000000e+00> : vector<2x8xf32>
    %389 = tpu.matmul %387, %388, %cst_159 {dimension_numbers = #tpu.dot_dimension_numbers<[1], [0], [0], [1], [0, 0, 1, 1], [], []>} : vector<2x64xbf16>, vector<64x8xbf16>, vector<2x8xf32> -> vector<2x8xf32>
    %c0_160 = arith.constant 0 : index
    %c0_161 = arith.constant 0 : index
    %390 = vector.load %arg18[%c0_160, %c0_161] : memref<1x8xf32, #tpu.memory_space<vmem>>, vector<1x8xf32>
    %391 = vector.broadcast %390 : vector<1x8xf32> to vector<2x8xf32>
    %392 = arith.addf %389, %391 : vector<2x8xf32>
    %393 = arith.negf %392 : vector<2x8xf32>
    %394 = math.exp %393 : vector<2x8xf32>
    %cst_162 = arith.constant 1.000000e+00 : f32
    %395 = vector.broadcast %cst_162 : f32 to vector<2x8xf32>
    %396 = arith.addf %395, %394 : vector<2x8xf32>
    %397 = arith.divf %395, %396 : vector<2x8xf32>
    %c0_163 = arith.constant 0 : index
    %c0_164 = arith.constant 0 : index
    %398 = vector.load %arg19[%c0_163, %c0_164] : memref<2x8xf32, #tpu.memory_space<vmem>>, vector<2x8xf32>
    tpu.vector_store %arg19[%c0_163, %c0_164], %397 {strides = array<i32>} : memref<2x8xf32, #tpu.memory_space<vmem>>, vector<2x8xf32>,
    return
  }
}

</mosaic_0001>

<bundles_post_ra>
// kernel: vit_forward.1
= control target key start
LH: loop header
LB: loop body
LE: loop exit
PB: predicated region body
PF: predicated region fallthrough
CT: control target
= control target key end

     0   :  { %s5743_s0 = inlined_call_operand.vmem [shape: bf16[16,768], index: 0, kind: input, shape index: {}]   ;;  %s5744_s1 = inlined_call_operand.vmem [shape: bf16[768,64], index: 1, kind: input, shape index: {}]   ;;  %s5745_s2 = inlined_call_operand.vmem [shape: f32[16,64], index: 2, kind: input, shape index: {}]   ;;  %s5746_s3 = inlined_call_operand.vmem [shape: f32[2,1,64], index: 3, kind: input, shape index: {}]   ;;  %s5747_s4 = inlined_call_operand.vmem [shape: f32[2,1,64], index: 4, kind: input, shape index: {}]   ;;  %s5748_s5 = inlined_call_operand.vmem [shape: bf16[2,64,192], index: 5, kind: input, shape index: {}]   ;;  %s5749_s6 = inlined_call_operand.vmem [shape: f32[2,1,192], index: 6, kind: input, shape index: {}]   ;;  %s5750_s7 = inlined_call_operand.vmem [shape: bf16[2,64,64], index: 7, kind: input, shape index: {}]   ;;  %s5751_s8 = inlined_call_operand.vmem [shape: f32[2,1,64], index: 8, kind: input, shape index: {}]   ;;  %s5752_s9 = inlined_call_operand.vmem [shape: f32[2,1,64], index: 9, kind: input, shape index: {}]   ;;  %s5753_s10 = inlined_call_operand.vmem [shape: f32[2,1,64], index: 10, kind: input, shape index: {}]   ;;  %s5754_s11 = inlined_call_operand.vmem [shape: bf16[2,64,128], index: 11, kind: input, shape index: {}]   ;;  %s5755_s12 = inlined_call_operand.vmem [shape: f32[2,1,128], index: 12, kind: input, shape index: {}]   ;;  %s5756_s13 = inlined_call_operand.vmem [shape: bf16[2,128,64], index: 13, kind: input, shape index: {}]   ;;  %s5757_s14 = inlined_call_operand.vmem [shape: f32[2,1,64], index: 14, kind: input, shape index: {}]   ;;  %s5758_s15 = inlined_call_operand.vmem [shape: f32[1,64], index: 15, kind: input, shape index: {}]   ;;  %s5759_s16 = inlined_call_operand.vmem [shape: f32[1,64], index: 16, kind: input, shape index: {}]   ;;  %s5760_s17 = inlined_call_operand.vmem [shape: bf16[64,8], index: 17, kind: input, shape index: {}]   ;;  %s5761_s18 = inlined_call_operand.vmem [shape: f32[1,8], index: 18, kind: input, shape index: {}]   ;;  %s5762_s19 = inlined_call_operand.hbm [shape: f32[2,8], index: 19, kind: output, shape index: {}]  }
   0x1   :  { %5770 = sst [smem:[#allocation5_spill]] %s5743_s0 }
   0x2   :  { %5771 = sst [smem:[#allocation6_spill]] %s5744_s1 }
   0x3   :  { %5772 = sst [smem:[#allocation7_spill]] %s5745_s2 }
   0x4   :  { %5773 = sst [smem:[#allocation8_spill]] %s5746_s3 }
   0x5   :  { %s5774_s20 = sld [smem:[#allocation6_spill]]  ;;  %s5775_s25 = sld [smem:[#allocation5_spill]] }
   0xb   :  { %v4513_v0 = vld [vmem:[%s5774_s20 + $0x40] sm:$0xff]   ;;  %v4517_v4 = vld [vmem:[%s5774_s20 + $0x48] sm:$0xff]   ;;  %v4521_v8 = vld [vmem:[%s5774_s20 + $0x50] sm:$0xff]  }
   0xc   :  { %v4514_v1 = vld [vmem:[%s5774_s20] sm:$0xff]   ;;  %3975 = vmatprep.subr.bf16.mxu0 %v4513_v0  ;;  %v4518_v5 = vld [vmem:[%s5774_s20 + $0x8] sm:$0xff]   ;;  %v4522_v9 = vld [vmem:[%s5774_s20 + $0x10] sm:$0xff]  }
   0xd   :  { %v4515_v2 = vld [vmem:[%s5774_s20 + $0xc0] sm:$0xff]   ;;  %3976 = vmatpush3.bf16.msra.mxu0 %v4514_v1  ;;  %v4519_v6 = vld [vmem:[%s5774_s20 + $0xc8] sm:$0xff]   ;;  %v4523_v10 = vld [vmem:[%s5774_s20 + $0xd0] sm:$0xff]  }
   0xe   :  { %v4516_v3 = vld [vmem:[%s5774_s20 + $0x80] sm:$0xff]   ;;  %3997 = vmatprep.subr.bf16.mxu1 %v4515_v2  ;;  %3977 = vmatprep.subr.bf16.mxu0 %v4517_v4  ;;  %v4520_v7 = vld [vmem:[%s5774_s20 + $0x88] sm:$0xff]   ;;  %v4524_v11 = vld [vmem:[%s5774_s20 + $0x90] sm:$0xff]  }
   0xf   :  { %3998 = vmatpush3.bf16.msra.mxu1 %v4516_v3  ;;  %v4525_v12 = vld [vmem:[%s5774_s20 + $0x58] sm:$0xff]   ;;  %v4529_v16 = vld [vmem:[%s5774_s20 + $0x60] sm:$0xff]   ;;  %v4533_v20 = vld [vmem:[%s5774_s20 + $0x68] sm:$0xff]  }
  0x10   :  { %3999 = vmatprep.subr.bf16.mxu1 %v4519_v6  ;;  %v4526_v13 = vld [vmem:[%s5774_s20 + $0x18] sm:$0xff]   ;;  %v4530_v17 = vld [vmem:[%s5774_s20 + $0x20] sm:$0xff]   ;;  %v4534_v21 = vld [vmem:[%s5774_s20 + $0x28] sm:$0xff]  }
  0x11   :  { %3978 = vmatpush3.bf16.msra.mxu0 %v4518_v5  ;;  %v4527_v14 = vld [vmem:[%s5774_s20 + $0xd8] sm:$0xff]   ;;  %v4531_v18 = vld [vmem:[%s5774_s20 + $0xe0] sm:$0xff]   ;;  %v4535_v22 = vld [vmem:[%s5774_s20 + $0xe8] sm:$0xff]  }
  0x12   :  { %3979 = vmatprep.subr.bf16.mxu0 %v4521_v8  ;;  %v4528_v15 = vld [vmem:[%s5774_s20 + $0x98] sm:$0xff]   ;;  %v4532_v19 = vld [vmem:[%s5774_s20 + $0xa0] sm:$0xff]   ;;  %v4536_v23 = vld [vmem:[%s5774_s20 + $0xa8] sm:$0xff]  }
  0x13   :  { %4000 = vmatpush3.bf16.msra.mxu1 %v4520_v7  ;;  %v4537_v24 = vld [vmem:[%s5774_s20 + $0x70] sm:$0xff]   ;;  %v4541_v28 = vld [vmem:[%s5774_s20 + $0x78] sm:$0xff]   ;;  %v4548_v34 = vld [vmem:[%s5774_s20 + $0x140] sm:$0xff]  }
  0x14   :  { %4001 = vmatprep.subr.bf16.mxu1 %v4523_v10  ;;  %v4538_v25 = vld [vmem:[%s5774_s20 + $0x30] sm:$0xff]   ;;  %v4542_v29 = vld [vmem:[%s5774_s20 + $0x38] sm:$0xff]   ;;  %v4549_v35 = vld [vmem:[%s5775_s25 + $0x8] ss:$24 sps:$4 sm:$0xff]  }
  0x15   :  { %3980 = vmatpush3.bf16.msra.mxu0 %v4522_v9  ;;  %v4539_v26 = vld [vmem:[%s5774_s20 + $0xf0] sm:$0xff]   ;;  %v4543_v30 = vld [vmem:[%s5774_s20 + $0xf8] sm:$0xff]   ;;  %v4551_v36 = vld [vmem:[%s5775_s25 + $0xc] ss:$24 sps:$4 sm:$0xff]  }
  0x16   :  { %3981 = vmatprep.subr.bf16.mxu0 %v4525_v12  ;;  %v4540_v27 = vld [vmem:[%s5774_s20 + $0xb0] sm:$0xff]   ;;  %v4544_v31 = vld [vmem:[%s5775_s25] ss:$24 sps:$4 sm:$0xff]   ;;  %v4546_v32 = vld [vmem:[%s5775_s25 + $0x4] ss:$24 sps:$4 sm:$0xff]   ;;  %559 = vmatprep.mubr.bf16.mxu1 %v4551_v36 }
  0x17   :  { %4002 = vmatpush3.bf16.msra.mxu1 %v4524_v11  ;;  %v4547_v33 = vld [vmem:[%s5774_s20 + $0xb8] sm:$0xff]   ;;  %518 = vmatprep.mubr.bf16.mxu0 %v4546_v32  ;;  %v4552_v37 = vld [vmem:[%s5774_s20 + $0x100] sm:$0xff]   ;;  %v4553_v38 = vld [vmem:[%s5774_s20 + $0x148] sm:$0xff]  }
  0x18   :  { %4003 = vmatprep.subr.bf16.mxu1 %v4527_v14  ;;  %v4554_v39 = vld [vmem:[%s5774_s20 + $0x108] sm:$0xff]   ;;  %v4555_v40 = vld [vmem:[%s5774_s20 + $0x150] sm:$0xff]   ;;  %v4557_v42 = vld [vmem:[%s5774_s20 + $0x158] sm:$0xff]  }
  0x19   :  { %3982 = vmatpush3.bf16.msra.mxu0 %v4526_v13  ;;  %v4556_v41 = vld [vmem:[%s5774_s20 + $0x110] sm:$0xff]   ;;  %v4558_v43 = vld [vmem:[%s5774_s20 + $0x118] sm:$0xff]   ;;  %v4559_v44 = vld [vmem:[%s5774_s20 + $0x160] sm:$0xff]  }
  0x1a   :  { %3983 = vmatprep.subr.bf16.mxu0 %v4529_v16  ;;  %v4560_v45 = vld [vmem:[%s5774_s20 + $0x120] sm:$0xff]   ;;  %v4561_v46 = vld [vmem:[%s5774_s20 + $0x168] sm:$0xff]   ;;  %v4563_v49 = vld [vmem:[%s5774_s20 + $0x170] sm:$0xff]  }
  0x1b   :  { %4004 = vmatpush3.bf16.msra.mxu1 %v4528_v15  ;;  %v4569_v47 = vld [vmem:[%s5775_s25 + $0x14] ss:$24 sps:$4 sm:$0xff]   ;;  %v4565_v51 = vld [vmem:[%s5774_s20 + $0x178] sm:$0xff]   ;;  %v4567_v53 = vld [vmem:[%s5775_s25 + $0x10] ss:$24 sps:$4 sm:$0xff]  }
  0x1c   :  { %4005 = vmatprep.subr.bf16.mxu1 %v4531_v18  ;;  %v4562_v48 = vld [vmem:[%s5774_s20 + $0x128] sm:$0xff]   ;;  %v4564_v50 = vld [vmem:[%s5774_s20 + $0x130] sm:$0xff]   ;;  %v4566_v52 = vld [vmem:[%s5774_s20 + $0x138] sm:$0xff]  }
  0x1d   :  { %3984 = vmatpush3.bf16.msra.mxu0 %v4530_v17 }
  0x1e   :  { %3985 = vmatprep.subr.bf16.mxu0 %v4533_v20 }
  0x1f   :  { %4006 = vmatpush3.bf16.msra.mxu1 %v4532_v19 }
  0x20   :  { %4007 = vmatprep.subr.bf16.mxu1 %v4535_v22 }
  0x21   :  { %3986 = vmatpush3.bf16.msra.mxu0 %v4534_v21 }
  0x22   :  { %3987 = vmatprep.subr.bf16.mxu0 %v4537_v24 }
  0x23   :  { %4008 = vmatpush3.bf16.msra.mxu1 %v4536_v23 }
  0x24   :  { %4009 = vmatprep.subr.bf16.mxu1 %v4539_v26 }
  0x25   :  { %3988 = vmatpush3.bf16.msra.mxu0 %v4538_v25 }
  0x26   :  { %3989 = vmatprep.subr.bf16.mxu0 %v4541_v28 }
  0x27   :  { %4010 = vmatpush3.bf16.msra.mxu1 %v4540_v27 }
  0x28   :  { %4011 = vmatprep.subr.bf16.mxu1 %v4543_v30 }
  0x29   :  { %3990 = vmatpush3.bf16.msra.mxu0 %v4542_v29 }
  0x2a   :  { %4019 = vmatprep.subr.bf16.mxu0 %v4548_v34 }
  0x2b   :  { %4012 = vmatpush3.bf16.msra.mxu1 %v4547_v33 }
  0x2c   :  { %519 = vmatmul.mubr.bf16.vlgmr.msra.gmra.mrb[0].mxu0 %v4544_v31 }
  0x2d   :  { %4020 = vmatpush3.bf16.msra.mxu0 %v4552_v37  ;;  %600 = vmatprep.mubr.bf16.mxu0 %v4569_v47 }
  0x2e   :  { %560 = vmatmul.mubr.bf16.vlgmr.msra.gmra.mrb[0].mxu1 %v4549_v35  ;;  %4021 = vmatprep.subr.bf16.mxu0 %v4553_v38 }
  0x31   :  { %4022 = vmatpush3.bf16.msra.mxu0 %v4554_v39 }
  0x32   :  { %4023 = vmatprep.subr.bf16.mxu0 %v4555_v40 }
  0x35   :  { %4024 = vmatpush3.bf16.msra.mxu0 %v4556_v41 }
  0x36   :  { %4025 = vmatprep.subr.bf16.mxu0 %v4557_v42 }
  0x39   :  { %4026 = vmatpush3.bf16.msra.mxu0 %v4558_v43 }
  0x3a   :  { %4027 = vmatprep.subr.bf16.mxu0 %v4559_v44 }
  0x3d   :  { %4028 = vmatpush3.bf16.msra.mxu0 %v4560_v45 }
  0x3e   :  { %4029 = vmatprep.subr.bf16.mxu0 %v4561_v46 }
  0x41   :  { %4030 = vmatpush3.bf16.msra.mxu0 %v4562_v48 }
  0x42   :  { %4031 = vmatprep.subr.bf16.mxu0 %v4563_v49 }
  0x45   :  { %4032 = vmatpush3.bf16.msra.mxu0 %v4564_v50 }
  0x46   :  { %4033 = vmatprep.subr.bf16.mxu0 %v4565_v51 }
  0x49   :  { %4034 = vmatpush3.bf16.msra.mxu0 %v4566_v52 }
  0x4c   :  { %601 = vmatmul.mubr.bf16.vlgmr.msra.gmra.mrb[4].mxu0 %v4567_v53 }
  0x4d   :  { %24 = vsyncpa [#allocation3], 0  ;;  %s5776_s21 = sld [smem:[#allocation7_spill]]  ;;  %vm615_vm0 = vcmask 523264   ;;  %v4572_v28 = vld [vmem:[%s5748_s5 + $0x4] ss:$8 sps:$4 sm:$0xff]  }
  0x4e   :  { %v4570_v29 = vld [vmem:[%s5748_s5] ss:$8 sps:$4 sm:$0xff]   ;;  %723 = vmatprep.subr.bf16.mxu1 %v4572_v28  ;;  %v4575_v30 = vld [vmem:[%s5748_s5 + $0x14] ss:$8 sps:$4 sm:$0xff]   ;;  %v4573_v31 = vld [vmem:[%s5748_s5 + $0x10] ss:$8 sps:$4 sm:$0xff]  }
  0x4f   :  { %724 = vmatpush1.bf16.msra.mxu1 %v4570_v29  ;;  %v4578_v32 = vld [vmem:[%s5748_s5 + $0x24] ss:$8 sps:$4 sm:$0xff]   ;;  %v4576_v33 = vld [vmem:[%s5748_s5 + $0x20] ss:$8 sps:$4 sm:$0xff]   ;;  %v4579_v34 = vld [vmem:[%s5748_s5 + $0x30] ss:$8 sps:$4 sm:$0xff]  }
  0x50   :  { %725 = vmatprep.subr.bf16.mxu1 %v4575_v30  ;;  %v4581_v35 = vld [vmem:[%s5748_s5 + $0x34] ss:$8 sps:$4 sm:$0xff]   ;;  %v4756_v36 = vmov 0   ;;  %s5777_s23 = sld [smem:[#allocation8_spill]]  ;;  %v3819_v49 = vld [vmem:[%s5747_s4] ss:$0 sm:$0xff] }
  0x51   :  { %755 = vmatprep.mubr.bf16.mxu1 %v4756_v36  ;;  %s4758_s28 = smov 112   ;;  %vm4759_vm1 = vmmov 0   ;;  %s4760_s29 = smov 80   ;;  %vm841_vm2 = vcmask 130048   ;;  %vm1331_vm3 = vcmask 1043456   ;;  %vm1231_vm5 = vcmask 64512  }
  0x52   :  { %s4761_s0 = smov 96   ;;  %s4762_s30 = smov 64   ;;  %vm1723_vm6 = vcmask 261120   ;;  %vm1726_vm7 = vcmask 392192   ;;  %vm3627_vm12 = vcmask 1040384   ;;  %vm3631_vm13 = vcmask 517120  }
  0x53   :  { %v166_v55 = vld [vmem:[%s5776_s21] sm:$0xff]  ;;  %v167_v60 = vld [vmem:[%s5776_s21 + $0x8] sm:$0xff]  ;;  %726 = vmatpush1.bf16.msra.mxu1 %v4573_v31  ;;  %s5769_s20 = smov 16   ;;  %s5768_s27 = smov 32   ;;  %vm3748_vm14 = vcmask 58368  }
  0x54   :  { %727 = vmatprep.subr.bf16.mxu1 %v4578_v32  ;;  %s5767_s21 = smov 48   ;;  %s5779_s2 = smov 32  }
  0x55   :  { %s5780_s3 = smov 48  }
  0x56   :  { %v3818_v45 = vld [vmem:[%s5777_s23] ss:$0 sm:$0xff] }
  0x57   :  { %728 = vmatpush1.bf16.msra.mxu1 %v4576_v33 }
  0x58   :  { %729 = vmatprep.subr.bf16.mxu1 %v4581_v35 }
  0x5b   :  { %730 = vmatpush1.bf16.msra.mxu1 %v4579_v34 }
  0xff   :  { %v3991_v54 = vpop.f32.mrb[0].mxu0 }
 0x100   :  { %v3992_v56 = vpop.f32.mrb[1].mxu0 }
 0x101   :  { %v3993_v57 = vadd.f32 %v3992_v56, %v3991_v54  ;;  %v3994_v58 = vpop.f32.mrb[2].mxu0  ;;  %v4013_v59 = vpop.f32.mrb[0].mxu1  ;;  %v609_v54 = vlaneseq }
 0x102   :  { %v3995_v61 = vpop.f32.mrb[3].mxu0  ;;  %v4014_v0 = vpop.f32.mrb[1].mxu1 }
 0x103   :  { %v521_v62 = vadd.f32 %v3993_v57, %v166_v55  ;;  %v3996_v63 = vadd.f32 %v3995_v61, %v3994_v58  ;;  %v4015_v1 = vadd.f32 %v4014_v0, %v4013_v59  ;;  %v4016_v2 = vpop.f32.mrb[2].mxu1  ;;  %v5082_v55 = vshrl.u32 %v609_v54, 7  ;;  %v668_v57 = vld [vmem:[%s5749_s6] sm:$0x3] }
 0x104   :  { %v4017_v4 = vpop.f32.mrb[3].mxu1 }
 0x105   :  { %v524_v3 = vadd.f32 %v3996_v63, %v167_v60  ;;  %v562_v5 = vadd.f32 %v4015_v1, %v521_v62  ;;  %v4018_v6 = vadd.f32 %v4017_v4, %v4016_v2  ;;  %v672_v56 = vsub.s32 0, %v5082_v55 }
 0x106   :  { %v676_v58 = vsub.s32 1, %v5082_v55  ;;  %v4757_v60 = vmov 0.0  }
 0x107   :  { %v565_v7 = vadd.f32 %v4018_v6, %v524_v3  ;;  %v673_v59 = vrot.slane %v668_v57, %v672_v56  ;;  %4148 = vmatprep.subr.bf16.mxu1 %v4757_v60  ;;  %4172 = vmatprep.subr.bf16.mxu0 %v4757_v60 }
 0x108   :  { %v677_v62 = vrot.slane %v668_v57, %v676_v58  ;;  %4174 = vmatprep.mubr.msk.bf16.mxu0 %vm4759_vm1, %v4757_v60 }
 0x11f   :  { %v4035_v8 = vpop.f32.mrb[4].mxu0 }
 0x120   :  { %v4036_v9 = vpop.f32.mrb[5].mxu0 }
 0x121   :  { %v4037_v10 = vadd.f32 %v4036_v9, %v4035_v8  ;;  %v4038_v11 = vpop.f32.mrb[6].mxu0 }
 0x122   :  { %v4039_v12 = vpop.f32.mrb[7].mxu0 }
 0x123   :  { %v5037_v13 = vadd.f32 %v4037_v10, %v562_v5  ;;  %v4040_v14 = vadd.f32 %v4039_v12, %v4038_v11 }
 0x125   :  { %v5039_v15 = vadd.f32 %v4040_v14, %v565_v7  ;;  %v616_v16 = vsel %vm615_vm0, %v5037_v13, 0.0 }
 0x126   :  { %617 = vadd.xlane.f32.xlu0 %v616_v16 }
 0x127   :  { %v619_v17 = vsel %vm615_vm0, %v5039_v15, 0.0 }
 0x12a   :  { %620 = vadd.xlane.f32.xlu0 %v619_v17 }
 0x1b3   :  { %v618_v18 = vpop.xlane.xlu0 %617 }
 0x1b4   :  { %v623_v19 = vmul.f32 0.015625, %v618_v18 }
 0x1b6   :  { %v625_v20 = vsub.f32 %v5037_v13, %v623_v19 }
 0x1b7   :  { %v621_v21 = vpop.xlane.xlu0 %620 }
 0x1b8   :  { %v624_v22 = vmul.f32 0.015625, %v621_v21  ;;  %v627_v23 = vmul.f32 %v625_v20, %v625_v20 }
 0x1ba   :  { %v626_v24 = vsub.f32 %v5039_v15, %v624_v22  ;;  %v629_v25 = vsel %vm615_vm0, %v627_v23, 0.0 }
 0x1bb   :  { %630 = vadd.xlane.f32.xlu1 %v629_v25 }
 0x1bc   :  { %v628_v26 = vmul.f32 %v626_v24, %v626_v24 }
 0x1be   :  { %v632_v27 = vsel %vm615_vm0, %v628_v26, 0.0 }
 0x1bf   :  { %633 = vadd.xlane.f32.xlu1 %v632_v27 }
 0x248   :  { %v631_v37 = vpop.xlane.xlu1 %630 }
 0x249   :  { %v635_v38 = vmul.f32 0.015625, %v631_v37 }
 0x24b   :  { %v637_v39 = vadd.f32 1e-12, %v635_v38 }
 0x24c   :  { %v634_v40 = vpop.xlane.xlu1 %633 }
 0x24d   :  { %4630 = vrsqrt.f32 %v637_v39  ;;  %v636_v41 = vmul.f32 0.015625, %v634_v40 }
 0x24f   :  { %v638_v42 = vadd.f32 1e-12, %v636_v41 }
 0x251   :  { %4632 = vrsqrt.f32 %v638_v42 }
 0x257   :  { %v4631_v43 = vpop.eup %4630 }
 0x258   :  { %v641_v44 = vmul.f32 %v4631_v43, %v625_v20 }
 0x25a   :  { %v649_v47 = vmul.f32 %v3818_v45, %v641_v44 }
 0x25b   :  { %v4633_v46 = vpop.eup %4632 }
 0x25c   :  { %v642_v48 = vmul.f32 %v4633_v46, %v626_v24  ;;  %v657_v51 = vadd.f32 %v3819_v49, %v649_v47 }
 0x25e   :  { %v650_v50 = vmul.f32 %v3818_v45, %v642_v48 }
 0x260   :  { %v658_v52 = vadd.f32 %v3819_v49, %v650_v50 }
 0x262   :  { %v659_v53 = vpack.c.bf16 %v658_v52, %v657_v51 }
 0x264   :  { %3828 = vmatmul.mubr.msk.bf16.vlgmr.msra.gmra.mrb[4].mxu1 %vm615_vm0, %v659_v53 }
 0x265   :  { %4150 = vmatprep.mubr.msk.bf16.mxu1 %vm4759_vm1, %v4757_v60 }
 0x337   :  { %v757_v61 = vpop.f32.mrb[4].mxu1 }
 0x338   :  { %v758_v63 = vadd.f32 %v757_v61, %v673_v59  ;;  %v759_v0 = vpop.f32.mrb[5].mxu1 }
 0x339   :  { %v761_v1 = vpop.f32.mrb[6].mxu1  ;;  %v5096_v4 = vadd.f32 %v759_v0, %v677_v62 }
 0x33a   :  { %v762_v2 = vadd.f32 %v761_v1, %v673_v59  ;;  %v763_v3 = vpop.f32.mrb[7].mxu1  ;;  %768 = vrot.lane.b32.xlu0 %v758_v63, %s4758_s28  ;;  %v802_v7 = vpack.c.bf16 %v758_v63, %v758_v63  ;;  %v786_v23 = vmul.f32 0.25, %v758_v63  ;;  %v610_v1 = vand.u32 127, %v609_v54 }
 0x33b   :  { %v5098_v5 = vadd.f32 %v763_v3, %v677_v62  ;;  %v830_v50 = vpack.c.bf16 %v5096_v4, %v5096_v4 }
 0x33c   :  { %770 = vrot.lane.b32.xlu1 %v762_v2, %s4758_s28  ;;  %v803_v8 = vpack.c.bf16 %v762_v2, %v762_v2  ;;  %v794_v26 = vpack.c.bf16 %v786_v23, %v786_v23  ;;  %v787_v29 = vmul.f32 0.25, %v762_v2  ;;  %vm611_vm4 = vcmp.lt.s32.totalorder %v610_v1, 5 }
 0x33d   :  { %v5107_v6 = vpack.i.bf16 %v5098_v5, %v5096_v4  ;;  %v1333_v57 = vsel %vm1331_vm3, %v830_v50, 0  ;;  %v831_v62 = vpack.c.bf16 %v5098_v5, %v5098_v5 }
 0x33e   :  { %780 = vrot.lane.b32.xlu0 %v758_v63, %s4760_s29  ;;  %v795_v30 = vpack.c.bf16 %v787_v29, %v787_v29 }
 0x33f   :  { %v1379_v0 = vsel %vm1331_vm3, %v831_v62, 0 }
 0x340   :  { %774 = vrot.lane.b32.xlu1 %v758_v63, %s4761_s0 }
 0x342   :  { %839 = vrot.lane.b32.xlu0 %v802_v7, %s4762_s30 }
 0x344   :  { %776 = vrot.lane.b32.xlu1 %v762_v2, %s4761_s0 }
 0x348   :  { %782 = vrot.lane.b32.xlu1 %v762_v2, %s4760_s29  ;;  %v4763_v2 = vmov -1e+30  }
 0x349   :  { %v5170_v3 = vsel %vm611_vm4, 0.0, %v4763_v2 }
 0x34c   :  { %889 = vrot.lane.b32.xlu1 %v803_v8, %s4762_s30 }
 0x3ac   :  { %v769_v9 = vpop.permute.xlu0 %768 }
 0x3ad   :  { %v804_v10 = vpack.c.bf16 %v769_v9, %v769_v9  ;;  %v788_v33 = vmul.f32 0.25, %v769_v9 }
 0x3ae   :  { %v771_v11 = vpop.permute.xlu1 %770 }
 0x3af   :  { %v805_v12 = vpack.c.bf16 %v771_v11, %v771_v11  ;;  %938 = vrot.lane.b32.xlu0 %v804_v10, %s4762_s30  ;;  %v796_v37 = vpack.c.bf16 %v788_v33, %v788_v33  ;;  %v789_v41 = vmul.f32 0.25, %v771_v11 }
 0x3b0   :  { %v781_v14 = vpop.permute.xlu0 %780 }
 0x3b1   :  { %987 = vrot.lane.b32.xlu1 %v805_v12, %s4762_s30  ;;  %v808_v21 = vpack.c.bf16 %v781_v14, %v781_v14  ;;  %v797_v45 = vpack.c.bf16 %v789_v41, %v789_v41  ;;  %v792_v47 = vmul.f32 0.25, %v781_v14 }
 0x3b2   :  { %v775_v16 = vpop.permute.xlu1 %774 }
 0x3b3   :  { %v806_v17 = vpack.c.bf16 %v775_v16, %v775_v16  ;;  %v790_v39 = vmul.f32 0.25, %v775_v16  ;;  %v800_v51 = vpack.c.bf16 %v792_v47, %v792_v47 }
 0x3b4   :  { %v840_v18 = vpop.permute.xlu0 %839 }
 0x3b5   :  { %v846_v19 = vsel %vm841_vm2, %v840_v18, 0  ;;  %1036 = vrot.lane.b32.xlu0 %v806_v17, %s4762_s30  ;;  %v798_v43 = vpack.c.bf16 %v790_v39, %v790_v39 }
 0x3b6   :  { %v777_v20 = vpop.permute.xlu1 %776  ;;  %4149 = vmatpush3.bf16.xpose.msra.mxu1 %v846_v19 }
 0x3b7   :  { %v807_v22 = vpack.c.bf16 %v777_v20, %v777_v20  ;;  %4154 = vmatprep.subr.bf16.mxu1 %v4757_v60  ;;  %v791_v49 = vmul.f32 0.25, %v777_v20 }
 0x3b9   :  { %1085 = vrot.lane.b32.xlu1 %v807_v22, %s4762_s30  ;;  %1134 = vrot.lane.b32.xlu0 %v808_v21, %s4762_s30  ;;  %v799_v53 = vpack.c.bf16 %v791_v49, %v791_v49 }
 0x3ba   :  { %v783_v24 = vpop.permute.xlu1 %782 }
 0x3bb   :  { %v809_v25 = vpack.c.bf16 %v783_v24, %v783_v24  ;;  %v793_v61 = vmul.f32 0.25, %v783_v24 }
 0x3bd   :  { %1183 = vrot.lane.b32.xlu1 %v809_v25, %s4762_s30  ;;  %4151 = vmatmul.mubr.msk.bf16.vlgmr.msra.gmra.mrb[8].mxu1 %vm841_vm2, %v794_v26  ;;  %v801_v63 = vpack.c.bf16 %v793_v61, %v793_v61 }
 0x3be   :  { %v890_v27 = vpop.permute.xlu1 %889  ;;  %4156 = vmatprep.mubr.msk.bf16.mxu1 %vm4759_vm1, %v4757_v60 }
 0x3bf   :  { %v895_v28 = vsel %vm841_vm2, %v890_v27, 0 }
 0x3c0   :  { %4155 = vmatpush3.bf16.xpose.msra.mxu1 %v895_v28 }
 0x3c1   :  { %4160 = vmatprep.subr.bf16.mxu1 %v4757_v60 }
 0x3c7   :  { %4157 = vmatmul.mubr.msk.bf16.vlgmr.msra.gmra.mrb[12].mxu1 %vm841_vm2, %v795_v30 }
 0x3c8   :  { %4162 = vmatprep.mubr.msk.bf16.mxu1 %vm4759_vm1, %v4757_v60 }
 0x421   :  { %v939_v31 = vpop.permute.xlu0 %938 }
 0x422   :  { %v944_v32 = vsel %vm841_vm2, %v939_v31, 0 }
 0x423   :  { %4161 = vmatpush3.bf16.xpose.msra.mxu1 %v944_v32  ;;  %v988_v34 = vpop.permute.xlu1 %987 }
 0x424   :  { %4166 = vmatprep.subr.bf16.mxu1 %v4757_v60  ;;  %v993_v40 = vsel %vm841_vm2, %v988_v34, 0 }
 0x427   :  { %v1037_v35 = vpop.permute.xlu0 %1036 }
 0x428   :  { %v1042_v38 = vsel %vm841_vm2, %v1037_v35, 0 }
 0x429   :  { %4173 = vmatpush3.bf16.xpose.msra.mxu0 %v1042_v38 }
 0x42a   :  { %4163 = vmatmul.mubr.msk.bf16.vlgmr.msra.gmra.mrb[16].mxu1 %vm841_vm2, %v796_v37  ;;  %4184 = vmatprep.subr.bf16.mxu0 %v4757_v60 }
 0x42b   :  { %4167 = vmatpush3.bf16.xpose.msra.mxu1 %v993_v40  ;;  %4168 = vmatprep.mubr.msk.bf16.mxu1 %vm4759_vm1, %v4757_v60  ;;  %v1135_v42 = vpop.permute.xlu0 %1134  ;;  %v1086_v44 = vpop.permute.xlu1 %1085 }
 0x42c   :  { %4178 = vmatprep.subr.bf16.mxu1 %v4757_v60  ;;  %v1140_v46 = vsel %vm841_vm2, %v1135_v42, 0  ;;  %v1091_v48 = vsel %vm841_vm2, %v1086_v44, 0 }
 0x42f   :  { %v1184_v52 = vpop.permute.xlu1 %1183 }
 0x430   :  { %4175 = vmatmul.mubr.msk.bf16.vlgmr.msra.gmra.mrb[8].mxu0 %vm841_vm2, %v798_v43  ;;  %v1189_v59 = vsel %vm841_vm2, %v1184_v52, 0 }
 0x431   :  { %4185 = vmatpush3.bf16.xpose.msra.mxu0 %v1140_v46  ;;  %4186 = vmatprep.mubr.msk.bf16.mxu0 %vm4759_vm1, %v4757_v60 }
 0x432   :  { %4169 = vmatmul.mubr.msk.bf16.vlgmr.msra.gmra.mrb[20].mxu1 %vm841_vm2, %v797_v45  ;;  %4196 = vmatprep.subr.bf16.mxu0 %v4757_v60 }
 0x433   :  { %4179 = vmatpush3.bf16.xpose.msra.mxu1 %v1091_v48  ;;  %4180 = vmatprep.mubr.msk.bf16.mxu1 %vm4759_vm1, %v4757_v60 }
 0x434   :  { %4190 = vmatprep.subr.bf16.mxu1 %v4757_v60 }
 0x438   :  { %4187 = vmatmul.mubr.msk.bf16.vlgmr.msra.gmra.mrb[12].mxu0 %vm841_vm2, %v800_v51 }
 0x439   :  { %4197 = vmatpush3.bf16.msra.mxu0 %v1333_v57  ;;  %4198 = vmatprep.mubr.msk.bf16.mxu0 %vm4759_vm1, %v4757_v60 }
 0x43a   :  { %4181 = vmatmul.mubr.msk.bf16.vlgmr.msra.gmra.mrb[24].mxu1 %vm841_vm2, %v799_v53  ;;  %4208 = vmatprep.subr.bf16.mxu0 %v4757_v60 }
 0x43b   :  { %4191 = vmatpush3.bf16.xpose.msra.mxu1 %v1189_v59  ;;  %4192 = vmatprep.mubr.msk.bf16.mxu1 %vm4759_vm1, %v4757_v60 }
 0x43c   :  { %4202 = vmatprep.subr.bf16.mxu1 %v4757_v60 }
 0x442   :  { %4193 = vmatmul.mubr.msk.bf16.vlgmr.msra.gmra.mrb[28].mxu1 %vm841_vm2, %v801_v63 }
 0x443   :  { %4203 = vmatpush3.bf16.msra.mxu1 %v1379_v0  ;;  %4204 = vmatprep.mubr.msk.bf16.mxu1 %vm4759_vm1, %v4757_v60 }
 0x444   :  { %4214 = vmatprep.subr.bf16.mxu1 %v4757_v60 }
 0x490   :  { %v882_v4 = vpop.f32.mrb[8].mxu1 }
 0x491   :  { %v883_v5 = vadd.f32 %v882_v4, %v5170_v3  ;;  %v4152_v7 = vpop.f32.mrb[9].mxu1 }
 0x492   :  { %v885_v8 = vpop.f32.mrb[10].mxu1 }
 0x493   :  { %v4153_v9 = vpop.f32.mrb[11].mxu1  ;;  %v1232_v10 = vsel %vm1231_vm5, %v883_v5, -inf }
 0x494   :  { %1233 = vmax.xlane.f32.xlu0 %v1232_v10 }
 0x49a   :  { %v931_v11 = vpop.f32.mrb[12].mxu1 }
 0x49b   :  { %v932_v12 = vadd.f32 %v931_v11, %v5170_v3  ;;  %v4158_v14 = vpop.f32.mrb[13].mxu1 }
 0x49c   :  { %v934_v16 = vpop.f32.mrb[14].mxu1 }
 0x49d   :  { %v4159_v54 = vpop.f32.mrb[15].mxu1  ;;  %v1235_v17 = vsel %vm1231_vm5, %v932_v12, -inf }
 0x49e   :  { %1236 = vmax.xlane.f32.xlu1 %v1235_v17 }
 0x4fd   :  { %v980_v18 = vpop.f32.mrb[16].mxu1 }
 0x4fe   :  { %v981_v19 = vadd.f32 %v980_v18, %v5170_v3  ;;  %v4164_v20 = vpop.f32.mrb[17].mxu1 }
 0x4ff   :  { %v983_v21 = vpop.f32.mrb[18].mxu1 }
 0x500   :  { %v4165_v22 = vpop.f32.mrb[19].mxu1  ;;  %v1238_v23 = vsel %vm1231_vm5, %v981_v19, -inf }
 0x501   :  { %1239 = vmax.xlane.f32.xlu0 %v1238_v23 }
 0x503   :  { %v1078_v24 = vpop.f32.mrb[8].mxu0 }
 0x504   :  { %v4176_v25 = vpop.f32.mrb[9].mxu0  ;;  %v1079_v32 = vadd.f32 %v1078_v24, %v5170_v3 }
 0x505   :  { %v1029_v26 = vpop.f32.mrb[20].mxu1  ;;  %v1081_v27 = vpop.f32.mrb[10].mxu0 }
 0x506   :  { %v1030_v28 = vadd.f32 %v1029_v26, %v5170_v3  ;;  %v4170_v29 = vpop.f32.mrb[21].mxu1  ;;  %v4177_v30 = vpop.f32.mrb[11].mxu0  ;;  %v1244_v39 = vsel %vm1231_vm5, %v1079_v32, -inf }
 0x507   :  { %v1032_v31 = vpop.f32.mrb[22].mxu1 }
 0x508   :  { %v4171_v33 = vpop.f32.mrb[23].mxu1  ;;  %v1241_v34 = vsel %vm1231_vm5, %v1030_v28, -inf }
 0x509   :  { %1242 = vmax.xlane.f32.xlu0 %v1241_v34 }
 0x50b   :  { %v1176_v35 = vpop.f32.mrb[12].mxu0 }
 0x50c   :  { %v1177_v37 = vadd.f32 %v1176_v35, %v5170_v3  ;;  %v4188_v38 = vpop.f32.mrb[13].mxu0 }
 0x50d   :  { %v1179_v40 = vpop.f32.mrb[14].mxu0  ;;  %1245 = vmax.xlane.f32.xlu0 %v1244_v39  ;;  %v1127_v41 = vpop.f32.mrb[24].mxu1 }
 0x50e   :  { %v5184_v42 = vadd.f32 %v1127_v41, %v5170_v3  ;;  %v4182_v43 = vpop.f32.mrb[25].mxu1  ;;  %v4189_v44 = vpop.f32.mrb[15].mxu0  ;;  %v1250_v47 = vsel %vm1231_vm5, %v1177_v37, -inf }
 0x50f   :  { %v1130_v45 = vpop.f32.mrb[26].mxu1 }
 0x510   :  { %v4183_v46 = vpop.f32.mrb[27].mxu1  ;;  %v1247_v48 = vsel %vm1231_vm5, %v5184_v42, -inf }
 0x511   :  { %1251 = vmax.xlane.f32.xlu0 %v1250_v47  ;;  %1248 = vmax.xlane.f32.xlu1 %v1247_v48 }
 0x515   :  { %v1225_v49 = vpop.f32.mrb[28].mxu1 }
 0x516   :  { %v5190_v50 = vadd.f32 %v1225_v49, %v5170_v3  ;;  %v4194_v51 = vpop.f32.mrb[29].mxu1 }
 0x517   :  { %v1228_v52 = vpop.f32.mrb[30].mxu1 }
 0x518   :  { %v4195_v53 = vpop.f32.mrb[31].mxu1  ;;  %v1253_v57 = vsel %vm1231_vm5, %v5190_v50, -inf }
 0x519   :  { %1254 = vmax.xlane.f32.xlu1 %v1253_v57 }
 0x521   :  { %v1234_v59 = vpop.xlane.xlu0 %1233 }
 0x522   :  { %v1256_v61 = vsub.f32 %v883_v5, %v1234_v59 }
 0x524   :  { %v1264_v62 = vmul.f32 1.442695, %v1256_v61 }
 0x526   :  { %4634 = vpow2.f32 %v1264_v62 }
 0x52b   :  { %v1237_v63 = vpop.xlane.xlu1 %1236 }
 0x52c   :  { %v1257_v0 = vsub.f32 %v932_v12, %v1237_v63 }
 0x52e   :  { %v1266_v1 = vmul.f32 1.442695, %v1257_v0 }
 0x530   :  { %v4635_v2 = vpop.eup %4634  ;;  %4636 = vpow2.f32 %v1266_v1 }
 0x531   :  { %v1280_v4 = vsel %vm1231_vm5, %v4635_v2, 0.0 }
 0x532   :  { %1281 = vadd.xlane.f32.xlu0 %v1280_v4 }
 0x53a   :  { %v4637_v7 = vpop.eup %4636 }
 0x53b   :  { %v1283_v8 = vsel %vm1231_vm5, %v4637_v7, 0.0 }
 0x53c   :  { %1284 = vadd.xlane.f32.xlu1 %v1283_v8 }
 0x58e   :  { %v1240_v9 = vpop.xlane.xlu0 %1239 }
 0x58f   :  { %v1258_v10 = vsub.f32 %v981_v19, %v1240_v9 }
 0x591   :  { %v1268_v11 = vmul.f32 1.442695, %v1258_v10 }
 0x593   :  { %4638 = vpow2.f32 %v1268_v11 }
 0x596   :  { %v1243_v14 = vpop.xlane.xlu0 %1242 }
 0x597   :  { %v1259_v5 = vsub.f32 %v1030_v28, %v1243_v14 }
 0x599   :  { %v1270_v16 = vmul.f32 1.442695, %v1259_v5 }
 0x59a   :  { %v1246_v54 = vpop.xlane.xlu0 %1245 }
 0x59b   :  { %4640 = vpow2.f32 %v1270_v16  ;;  %v1260_v12 = vsub.f32 %v1079_v32, %v1246_v54 }
 0x59d   :  { %v5196_v17 = vpop.eup %4638  ;;  %v1272_v18 = vmul.f32 1.442695, %v1260_v12 }
 0x59e   :  { %v1252_v20 = vpop.xlane.xlu0 %1251  ;;  %v1286_v21 = vsel %vm1231_vm5, %v5196_v17, 0.0  ;;  %v1249_v30 = vpop.xlane.xlu1 %1248 }
 0x59f   :  { %4642 = vpow2.f32 %v1272_v18  ;;  %v1262_v22 = vsub.f32 %v1177_v37, %v1252_v20  ;;  %1287 = vadd.xlane.f32.xlu0 %v1286_v21  ;;  %v1261_v32 = vsub.f32 %v5184_v42, %v1249_v30 }
 0x5a1   :  { %v1276_v23 = vmul.f32 1.442695, %v1262_v22  ;;  %v1274_v35 = vmul.f32 1.442695, %v1261_v32 }
 0x5a3   :  { %4644 = vpow2.f32 %v1276_v23 }
 0x5a5   :  { %v4641_v19 = vpop.eup %4640 }
 0x5a6   :  { %v1289_v24 = vsel %vm1231_vm5, %v4641_v19, 0.0  ;;  %v1255_v31 = vpop.xlane.xlu1 %1254 }
 0x5a7   :  { %1290 = vadd.xlane.f32.xlu1 %v1289_v24  ;;  %v1263_v37 = vsub.f32 %v5190_v50, %v1255_v31 }
 0x5a9   :  { %v5201_v25 = vpop.eup %4642  ;;  %v1278_v40 = vmul.f32 1.442695, %v1263_v37 }
 0x5aa   :  { %v1292_v26 = vsel %vm1231_vm5, %v5201_v25, 0.0 }
 0x5ab   :  { %1293 = vadd.xlane.f32.xlu0 %v1292_v26 }
 0x5ad   :  { %v5205_v27 = vpop.eup %4644 }
 0x5ae   :  { %v1298_v28 = vsel %vm1231_vm5, %v5205_v27, 0.0 }
 0x5af   :  { %1299 = vadd.xlane.f32.xlu0 %v1298_v28 }
 0x5b8   :  { %4459 = vrot.lane.b32.xlu1 %v5107_v6, %s4761_s0 }
 0x5bf   :  { %v1282_v29 = vpop.xlane.xlu0 %1281 }
 0x5c0   :  { %4646 = vrcp.f32 %v1282_v29 }
 0x5c5   :  { %4454 = vrot.lane.b32.xlu0 %v5107_v6, %s4758_s28 }
 0x5c9   :  { %v1285_v33 = vpop.xlane.xlu1 %1284 }
 0x5ca   :  { %v4647_v34 = vpop.eup %4646  ;;  %4648 = vrcp.f32 %v1285_v33 }
 0x5cb   :  { %v1312_v38 = vmul.f32 %v4647_v34, %v4635_v2  ;;  %4650 = vpow2.f32 %v1274_v35 }
 0x5cc   :  { %4652 = vpow2.f32 %v1278_v40 }
 0x5cd   :  { %v1320_v39 = vpack.c.bf16 %v1312_v38, %v1312_v38 }
 0x5cf   :  { %4199 = vmatmul.mubr.msk.bf16.vlgmr.msra.gmra.mrb[16].mxu0 %vm1231_vm5, %v1320_v39 }
 0x5d0   :  { %4210 = vmatprep.mubr.msk.bf16.mxu0 %vm4759_vm1, %v4757_v60 }
 0x5d4   :  { %v4649_v41 = vpop.eup %4648 }
 0x5d5   :  { %v1313_v43 = vmul.f32 %v4649_v41, %v4637_v7  ;;  %v5218_v42 = vpop.eup %4650 }
 0x5d6   :  { %v1295_v45 = vsel %vm1231_vm5, %v5218_v42, 0.0  ;;  %v5225_v46 = vpop.eup %4652 }
 0x5d7   :  { %v1321_v44 = vpack.c.bf16 %v1313_v43, %v1313_v43  ;;  %v1301_v47 = vsel %vm1231_vm5, %v5225_v46, 0.0 }
 0x5d9   :  { %4205 = vmatmul.mubr.msk.bf16.vlgmr.msra.gmra.mrb[32].mxu1 %vm1231_vm5, %v1321_v44 }
 0x5da   :  { %4216 = vmatprep.mubr.msk.bf16.mxu1 %vm4759_vm1, %v4757_v60 }
 0x5dc   :  { %1296 = vadd.xlane.f32.xlu1 %v1295_v45  ;;  %v4582_v45 = vld [vmem:[%s5750_s7] sm:$0xff]  }
 0x5e0   :  { %1302 = vadd.xlane.f32.xlu1 %v1301_v47 }
 0x5f1   :  { %4464 = vrot.lane.b32.xlu1 %v5107_v6, %s4760_s29 }
 0x62c   :  { %v1288_v48 = vpop.xlane.xlu0 %1287 }
 0x62d   :  { %4654 = vrcp.f32 %v1288_v48 }
 0x634   :  { %v1291_v49 = vpop.xlane.xlu1 %1290 }
 0x635   :  { %4656 = vrcp.f32 %v1291_v49 }
 0x637   :  { %v4655_v53 = vpop.eup %4654 }
 0x638   :  { %v1294_v50 = vpop.xlane.xlu0 %1293  ;;  %v4460_v52 = vpop.permute.xlu1 %4459  ;;  %v1314_v1 = vmul.f32 %v4655_v53, %v5196_v17 }
 0x639   :  { %4658 = vrcp.f32 %v1294_v50  ;;  %v4462_v61 = vunpack.i.h.bf16 %v4460_v52  ;;  %v4461_v62 = vunpack.i.l.bf16 %v4460_v52 }
 0x63a   :  { %v1322_v11 = vpack.c.bf16 %v1314_v1, %v1314_v1  ;;  %v4584_v1 = vld [vmem:[%s5750_s7 + $0x10] sm:$0xff]  }
 0x63b   :  { %v835_v7 = vpack.c.bf16 %v4462_v61, %v4462_v61  ;;  %v834_v8 = vpack.c.bf16 %v4461_v62, %v4461_v62 }
 0x63c   :  { %v1300_v51 = vpop.xlane.xlu0 %1299 }
 0x63d   :  { %v1517_v16 = vsel %vm1331_vm3, %v834_v8, 0  ;;  %v1563_v54 = vsel %vm1331_vm3, %v835_v7, 0  ;;  %4660 = vrcp.f32 %v1300_v51 }
 0x63f   :  { %v4657_v57 = vpop.eup %4656 }
 0x640   :  { %v4455_v59 = vpop.permute.xlu0 %4454  ;;  %v1315_v2 = vmul.f32 %v4657_v57, %v4641_v19 }
 0x641   :  { %v4457_v63 = vunpack.i.h.bf16 %v4455_v59  ;;  %v4456_v0 = vunpack.i.l.bf16 %v4455_v59 }
 0x642   :  { %v1323_v14 = vpack.c.bf16 %v1315_v2, %v1315_v2  ;;  %v4585_v2 = vld [vmem:[%s5750_s7 + $0x18] sm:$0xff]  }
 0x643   :  { %v833_v4 = vpack.c.bf16 %v4457_v63, %v4457_v63  ;;  %v832_v6 = vpack.c.bf16 %v4456_v0, %v4456_v0  ;;  %v4659_v5 = vpop.eup %4658  ;;  %v4583_v0 = vld [vmem:[%s5750_s7 + $0x8] sm:$0xff]  }
 0x644   :  { %v1316_v12 = vmul.f32 %v4659_v5, %v5201_v25 }
 0x645   :  { %v1425_v9 = vsel %vm1331_vm3, %v832_v6, 0  ;;  %v1471_v10 = vsel %vm1331_vm3, %v833_v4, 0 }
 0x646   :  { %4209 = vmatpush3.bf16.msra.mxu0 %v1425_v9  ;;  %4215 = vmatpush3.bf16.msra.mxu1 %v1471_v10  ;;  %v1324_v17 = vpack.c.bf16 %v1316_v12, %v1316_v12 }
 0x647   :  { %4220 = vmatprep.subr.bf16.mxu0 %v4757_v60  ;;  %4226 = vmatprep.subr.bf16.mxu1 %v4757_v60  ;;  %v4661_v21 = vpop.eup %4660 }
 0x648   :  { %v1318_v25 = vmul.f32 %v4661_v21, %v5205_v27 }
 0x649   :  { %4211 = vmatmul.mubr.msk.bf16.vlgmr.msra.gmra.mrb[20].mxu0 %vm1231_vm5, %v1322_v11  ;;  %4217 = vmatmul.mubr.msk.bf16.vlgmr.msra.gmra.mrb[36].mxu1 %vm1231_vm5, %v1323_v14 }
 0x64a   :  { %4221 = vmatpush3.bf16.msra.mxu0 %v1517_v16  ;;  %4227 = vmatpush3.bf16.msra.mxu1 %v1563_v54  ;;  %v1326_v33 = vpack.c.bf16 %v1318_v25, %v1318_v25 }
 0x64b   :  { %4222 = vmatprep.mubr.msk.bf16.mxu0 %vm4759_vm1, %v4757_v60  ;;  %4232 = vmatprep.subr.bf16.mxu0 %v4757_v60 }
 0x64c   :  { %4228 = vmatprep.mubr.msk.bf16.mxu1 %vm4759_vm1, %v4757_v60  ;;  %4238 = vmatprep.subr.bf16.mxu1 %v4757_v60 }
 0x651   :  { %4223 = vmatmul.mubr.msk.bf16.vlgmr.msra.gmra.mrb[24].mxu0 %vm1231_vm5, %v1324_v17 }
 0x652   :  { %4234 = vmatprep.mubr.msk.bf16.mxu0 %vm4759_vm1, %v4757_v60 }
 0x669   :  { %v1297_v18 = vpop.xlane.xlu1 %1296 }
 0x66a   :  { %4662 = vrcp.f32 %v1297_v18 }
 0x66d   :  { %v1303_v20 = vpop.xlane.xlu1 %1302 }
 0x66e   :  { %4664 = vrcp.f32 %v1303_v20 }
 0x671   :  { %v4465_v22 = vpop.permute.xlu1 %4464 }
 0x672   :  { %v4467_v23 = vunpack.i.h.bf16 %v4465_v22  ;;  %v4466_v19 = vunpack.i.l.bf16 %v4465_v22 }
 0x674   :  { %v4663_v24 = vpop.eup %4662  ;;  %v836_v26 = vpack.c.bf16 %v4466_v19, %v4466_v19  ;;  %v837_v29 = vpack.c.bf16 %v4467_v23, %v4467_v23 }
 0x675   :  { %v1317_v28 = vmul.f32 %v4663_v24, %v5218_v42 }
 0x676   :  { %v1609_v30 = vsel %vm1331_vm3, %v836_v26, 0  ;;  %v1655_v34 = vsel %vm1331_vm3, %v837_v29, 0 }
 0x677   :  { %4233 = vmatpush3.bf16.msra.mxu0 %v1609_v30  ;;  %v1325_v31 = vpack.c.bf16 %v1317_v28, %v1317_v28 }
 0x678   :  { %v4665_v32 = vpop.eup %4664  ;;  %4244 = vmatprep.subr.bf16.mxu0 %v4757_v60 }
 0x679   :  { %4229 = vmatmul.mubr.msk.bf16.vlgmr.msra.gmra.mrb[40].mxu1 %vm1231_vm5, %v1325_v31  ;;  %v1319_v27 = vmul.f32 %v4665_v32, %v5225_v46 }
 0x67a   :  { %4239 = vmatpush3.bf16.msra.mxu1 %v1655_v34  ;;  %4235 = vmatmul.mubr.msk.bf16.vlgmr.msra.gmra.mrb[28].mxu0 %vm1231_vm5, %v1326_v33 }
 0x67b   :  { %4240 = vmatprep.mubr.msk.bf16.mxu1 %vm4759_vm1, %v4757_v60  ;;  %4252 = vmatprep.mubr.msk.bf16.mxu0 %vm4759_vm1, %v4757_v60  ;;  %v1327_v35 = vpack.c.bf16 %v1319_v27, %v1319_v27 }
 0x67c   :  { %4256 = vmatprep.subr.bf16.mxu1 %v4757_v60  ;;  %4245 = vmatpush3.bf16.msra.mxu0 %v4582_v45 }
 0x67d   :  { %4246 = vmatprep.subr.bf16.mxu0 %v4757_v60 }
 0x680   :  { %4247 = vmatpush3.bf16.msra.mxu0 %v4583_v0 }
 0x681   :  { %4241 = vmatmul.mubr.msk.bf16.vlgmr.msra.gmra.mrb[44].mxu1 %vm1231_vm5, %v1327_v35  ;;  %4248 = vmatprep.subr.bf16.mxu0 %v4757_v60 }
 0x682   :  { %4264 = vmatprep.mubr.msk.bf16.mxu1 %vm4759_vm1, %v4757_v60 }
 0x684   :  { %4249 = vmatpush3.bf16.msra.mxu0 %v4584_v1 }
 0x685   :  { %4250 = vmatprep.subr.bf16.mxu0 %v4757_v60 }
 0x688   :  { %4251 = vmatpush3.bf16.msra.mxu0 %v4585_v2 }
 0x689   :  { %4268 = vmatprep.subr.bf16.mxu0 %v4757_v60 }
 0x6a2   :  { %v5266_v37 = vpop.f32.mrb[16].mxu0 }
 0x6a3   :  { %v4200_v38 = vpop.f32.mrb[17].mxu0 }
 0x6a4   :  { %v1372_v39 = vpop.f32.mrb[18].mxu0 }
 0x6a5   :  { %v4201_v40 = vpop.f32.mrb[19].mxu0 }
 0x6ac   :  { %v1415_v41 = vpop.f32.mrb[32].mxu1 }
 0x6ad   :  { %v4206_v43 = vpop.f32.mrb[33].mxu1 }
 0x6ae   :  { %v1418_v44 = vpop.f32.mrb[34].mxu1 }
 0x6af   :  { %v4207_v42 = vpop.f32.mrb[35].mxu1 }
 0x71c   :  { %v1461_v46 = vpop.f32.mrb[20].mxu0  ;;  %v1507_v47 = vpop.f32.mrb[36].mxu1 }
 0x71d   :  { %v4468_v48 = vpack.i.bf16 %v1507_v47, %v1461_v46  ;;  %v4212_v49 = vpop.f32.mrb[21].mxu0  ;;  %v4218_v50 = vpop.f32.mrb[37].mxu1 }
 0x71e   :  { %v1464_v51 = vpop.f32.mrb[22].mxu0  ;;  %v1510_v52 = vpop.f32.mrb[38].mxu1 }
 0x71f   :  { %v4213_v53 = vpop.f32.mrb[23].mxu0  ;;  %4469 = vrot.lane.b32.xlu1 %v4468_v48, %s5769_s20  ;;  %v4219_v57 = vpop.f32.mrb[39].mxu1 }
 0x724   :  { %v1553_v59 = vpop.f32.mrb[24].mxu0 }
 0x725   :  { %v4224_v61 = vpop.f32.mrb[25].mxu0 }
 0x726   :  { %v1556_v62 = vpop.f32.mrb[26].mxu0  ;;  %v4587_v61 = vld [vmem:[%s5754_s11 + $0x8] sm:$0xff]  }
 0x727   :  { %v4225_v63 = vpop.f32.mrb[27].mxu0  ;;  %v4588_v62 = vld [vmem:[%s5754_s11 + $0x10] sm:$0xff]  }
 0x728   :  { %v4589_v63 = vld [vmem:[%s5754_s11 + $0x18] sm:$0xff]  }
 0x74c   :  { %v1599_v4 = vpop.f32.mrb[40].mxu1 }
 0x74d   :  { %v4473_v6 = vpack.i.bf16 %v1599_v4, %v1553_v59  ;;  %v4230_v7 = vpop.f32.mrb[41].mxu1  ;;  %v1645_v8 = vpop.f32.mrb[28].mxu0  ;;  %v4586_v59 = vld [vmem:[%s5754_s11] sm:$0xff]  }
 0x74e   :  { %v1602_v9 = vpop.f32.mrb[42].mxu1  ;;  %v4236_v10 = vpop.f32.mrb[29].mxu0  ;;  %4257 = vmatpush3.bf16.msra.mxu1 %v4586_v59 }
 0x74f   :  { %v1648_v11 = vpop.f32.mrb[30].mxu0  ;;  %4474 = vrot.lane.b32.xlu0 %v4473_v6, %s5768_s27  ;;  %v4231_v14 = vpop.f32.mrb[43].mxu1  ;;  %4258 = vmatprep.subr.bf16.mxu1 %v4757_v60  ;;  %v3851_v10 = vld [vmem:[%s5752_s9] ss:$0 sm:$0xff] }
 0x750   :  { %v4237_v5 = vpop.f32.mrb[31].mxu0 }
 0x752   :  { %4259 = vmatpush3.bf16.msra.mxu1 %v4587_v61 }
 0x753   :  { %4260 = vmatprep.subr.bf16.mxu1 %v4757_v60 }
 0x754   :  { %v1691_v16 = vpop.f32.mrb[44].mxu1 }
 0x755   :  { %v4478_v54 = vpack.i.bf16 %v1691_v16, %v1645_v8  ;;  %v4242_v12 = vpop.f32.mrb[45].mxu1  ;;  %v3852_v16 = vld [vmem:[%s5753_s10] ss:$0 sm:$0xff] }
 0x756   :  { %v1694_v17 = vpop.f32.mrb[46].mxu1  ;;  %4261 = vmatpush3.bf16.msra.mxu1 %v4588_v62 }
 0x757   :  { %4479 = vrot.lane.b32.xlu1 %v4478_v54, %s5767_s21  ;;  %v4243_v18 = vpop.f32.mrb[47].mxu1  ;;  %4262 = vmatprep.subr.bf16.mxu1 %v4757_v60 }
 0x75a   :  { %4263 = vmatpush3.bf16.msra.mxu1 %v4589_v63 }
 0x791   :  { %v4470_v20 = vpop.permute.xlu1 %4469 }
 0x792   :  { %v4472_v22 = vunpack.i.h.bf16 %v4470_v20  ;;  %v4471_v23 = vunpack.i.l.bf16 %v4470_v20  ;;  %v4590_v20 = vld [vmem:[%s5756_s13] sm:$0xff]  }
 0x794   :  { %v1722_v26 = vsel %vm841_vm2, %v1415_v41, %v4472_v22  ;;  %v1721_v28 = vsel %vm841_vm2, %v5266_v37, %v4471_v23  ;;  %v3850_v37 = vld [vmem:[%s5751_s8] ss:$0 sm:$0xff]  ;;  %v4592_v22 = vld [vmem:[%s5756_s13 + $0x10] sm:$0xff]  }
 0x795   :  { %v4594_v23 = vld [vmem:[%s5756_s13 + $0x20] sm:$0xff]  }
 0x7c1   :  { %v4475_v21 = vpop.permute.xlu0 %4474 }
 0x7c2   :  { %v4477_v19 = vunpack.i.h.bf16 %v4475_v21  ;;  %v4476_v24 = vunpack.i.l.bf16 %v4475_v21  ;;  %v4591_v21 = vld [vmem:[%s5756_s13 + $0x8] sm:$0xff]  }
 0x7c4   :  { %v1725_v31 = vsel %vm1723_vm6, %v1722_v26, %v4477_v19  ;;  %v1724_v32 = vsel %vm1723_vm6, %v1721_v28, %v4476_v24  ;;  %v4595_v19 = vld [vmem:[%s5756_s13 + $0x28] sm:$0xff]   ;;  %v4596_v24 = vld [vmem:[%s5756_s13 + $0x30] sm:$0xff]   ;;  %v3853_v26 = vld [vmem:[%s5755_s12] ss:$0 sm:$0xff] }
 0x7c9   :  { %v4480_v25 = vpop.permute.xlu1 %4479 }
 0x7ca   :  { %v4482_v29 = vunpack.i.h.bf16 %v4480_v25  ;;  %v4481_v30 = vunpack.i.l.bf16 %v4480_v25  ;;  %v4597_v25 = vld [vmem:[%s5756_s13 + $0x38] sm:$0xff]  }
 0x7cc   :  { %v1728_v33 = vsel %vm1726_vm7, %v1725_v31, %v4482_v29  ;;  %v1727_v34 = vsel %vm1726_vm7, %v1724_v32, %v4481_v30 }
 0x7cd   :  { %v1729_v27 = vpack.c.bf16 %v1728_v33, %v1727_v34 }
 0x7cf   :  { %4253 = vmatmul.mubr.msk.bf16.vlgmr.msra.gmra.mrb[32].mxu0 %vm615_vm0, %v1729_v27 }
 0x7d0   :  { %4284 = vmatprep.mubr.msk.bf16.mxu0 %vm4759_vm1, %v4757_v60  ;;  %4269 = vmatpush3.bf16.msra.mxu0 %v4590_v20 }
 0x7d1   :  { %4270 = vmatprep.subr.bf16.mxu0 %v4757_v60 }
 0x7d4   :  { %4271 = vmatpush3.bf16.msra.mxu0 %v4591_v21 }
 0x7d5   :  { %4272 = vmatprep.subr.bf16.mxu0 %v4757_v60 }
 0x7d8   :  { %4273 = vmatpush3.bf16.msra.mxu0 %v4592_v22 }
 0x7d9   :  { %4274 = vmatprep.subr.bf16.mxu0 %v4757_v60 }
 0x8a2   :  { %v1799_v35 = vpop.f32.mrb[32].mxu0 }
 0x8a3   :  { %v1806_v38 = vadd.f32 %v1799_v35, %v5037_v13  ;;  %v4254_v39 = vpop.f32.mrb[33].mxu0 }
 0x8a4   :  { %v1802_v40 = vpop.f32.mrb[34].mxu0 }
 0x8a5   :  { %v5301_v41 = vadd.f32 %v3850_v37, %v1806_v38  ;;  %v1807_v43 = vadd.f32 %v1802_v40, %v5039_v15  ;;  %v4255_v44 = vpop.f32.mrb[35].mxu0 }
 0x8a7   :  { %v5304_v42 = vadd.f32 %v3850_v37, %v1807_v43  ;;  %v1819_v45 = vsel %vm615_vm0, %v5301_v41, 0.0 }
 0x8a8   :  { %1820 = vadd.xlane.f32.xlu0 %v1819_v45 }
 0x8a9   :  { %v1822_v46 = vsel %vm615_vm0, %v5304_v42, 0.0 }
 0x8aa   :  { %1823 = vadd.xlane.f32.xlu1 %v1822_v46 }
 0x935   :  { %v1821_v47 = vpop.xlane.xlu0 %1820 }
 0x936   :  { %v1825_v48 = vmul.f32 0.015625, %v1821_v47 }
 0x937   :  { %v1824_v13 = vpop.xlane.xlu1 %1823 }
 0x938   :  { %v1827_v49 = vsub.f32 %v5301_v41, %v1825_v48  ;;  %v1826_v50 = vmul.f32 0.015625, %v1824_v13 }
 0x93a   :  { %v1828_v51 = vsub.f32 %v5304_v42, %v1826_v50  ;;  %v1829_v15 = vmul.f32 %v1827_v49, %v1827_v49 }
 0x93c   :  { %v1831_v52 = vsel %vm615_vm0, %v1829_v15, 0.0  ;;  %v1830_v53 = vmul.f32 %v1828_v51, %v1828_v51 }
 0x93d   :  { %1832 = vadd.xlane.f32.xlu0 %v1831_v52 }
 0x93e   :  { %v1834_v57 = vsel %vm615_vm0, %v1830_v53, 0.0 }
 0x941   :  { %1835 = vadd.xlane.f32.xlu0 %v1834_v57 }
 0x9ca   :  { %v1833_v0 = vpop.xlane.xlu0 %1832 }
 0x9cb   :  { %v1837_v1 = vmul.f32 0.015625, %v1833_v0 }
 0x9cd   :  { %v1839_v2 = vadd.f32 1e-12, %v1837_v1 }
 0x9ce   :  { %v1836_v4 = vpop.xlane.xlu0 %1835 }
 0x9cf   :  { %4666 = vrsqrt.f32 %v1839_v2  ;;  %v1838_v6 = vmul.f32 0.015625, %v1836_v4 }
 0x9d1   :  { %v1840_v7 = vadd.f32 1e-12, %v1838_v6 }
 0x9d3   :  { %4668 = vrsqrt.f32 %v1840_v7 }
 0x9d9   :  { %v4667_v8 = vpop.eup %4666 }
 0x9da   :  { %v1843_v9 = vmul.f32 %v4667_v8, %v1827_v49 }
 0x9dc   :  { %v1851_v14 = vmul.f32 %v3851_v10, %v1843_v9 }
 0x9dd   :  { %v4669_v11 = vpop.eup %4668 }
 0x9de   :  { %v1844_v5 = vmul.f32 %v4669_v11, %v1828_v51  ;;  %v1859_v12 = vadd.f32 %v3852_v16, %v1851_v14 }
 0x9e0   :  { %v1852_v54 = vmul.f32 %v3851_v10, %v1844_v5 }
 0x9e2   :  { %v1860_v17 = vadd.f32 %v3852_v16, %v1852_v54  ;;  %v4767_v54 = vmov -1.0  }
 0x9e4   :  { %v1861_v18 = vpack.c.bf16 %v1860_v17, %v1859_v12 }
 0x9e6   :  { %4265 = vmatmul.mubr.msk.bf16.vlgmr.msra.gmra.mrb[48].mxu1 %vm615_vm0, %v1861_v18 }
 0x9e7   :  { %2260 = vmatprep.mubr.bf16.mxu1 %v4756_v36  ;;  %v4593_v36 = vld [vmem:[%s5756_s13 + $0x18] sm:$0xff]  }
 0x9e8   :  { %4275 = vmatpush3.bf16.msra.mxu0 %v4593_v36 }
 0x9e9   :  { %4276 = vmatprep.subr.bf16.mxu0 %v4757_v60 }
 0x9ec   :  { %4277 = vmatpush3.bf16.msra.mxu0 %v4594_v23 }
 0x9ed   :  { %4278 = vmatprep.subr.bf16.mxu0 %v4757_v60 }
 0x9f0   :  { %4279 = vmatpush3.bf16.msra.mxu0 %v4595_v19 }
 0x9f1   :  { %4280 = vmatprep.subr.bf16.mxu0 %v4757_v60 }
 0x9f4   :  { %4281 = vmatpush3.bf16.msra.mxu0 %v4596_v24 }
 0x9f5   :  { %4282 = vmatprep.subr.bf16.mxu0 %v4757_v60 }
 0x9f8   :  { %4283 = vmatpush3.bf16.msra.mxu0 %v4597_v25 }
 0x9f9   :  { %4300 = vmatprep.subr.bf16.mxu0 %v4757_v60 }
 0xab9   :  { %v1938_v28 = vpop.f32.mrb[48].mxu1 }
 0xaba   :  { %v1939_v29 = vadd.f32 %v3853_v26, %v1938_v28  ;;  %v4266_v30 = vpop.f32.mrb[49].mxu1 }
 0xabb   :  { %v1941_v31 = vpop.f32.mrb[50].mxu1 }
 0xabc   :  { %v1947_v32 = vmul.f32 0.70710677, %v1939_v29  ;;  %v1942_v33 = vadd.f32 %v3853_v26, %v1941_v31  ;;  %v4267_v34 = vpop.f32.mrb[51].mxu1  ;;  %v1945_v23 = vmul.f32 0.5, %v1939_v29  ;;  %v3867_v31 = vld [vmem:[%s5757_s14] ss:$0 sm:$0xff] }
 0xabe   :  { %v1953_v27 = vand.u32 2147483647, %v1947_v32  ;;  %v1948_v35 = vmul.f32 0.70710677, %v1942_v33  ;;  %vm1949_vm8 = vcmp.ge.f32.partialorder %v1947_v32, 0.0  ;;  %v1946_v19 = vmul.f32 0.5, %v1942_v33 }
 0xabf   :  { %v1951_v12 = vsel %vm1949_vm8, 1.0, %v4767_v54 }
 0xac0   :  { %v1955_v37 = vmul.f32 0.3275911, %v1953_v27  ;;  %v1954_v38 = vand.u32 2147483647, %v1948_v35  ;;  %v1981_v44 = vsub.f32 0.0, %v1953_v27  ;;  %vm1950_vm9 = vcmp.ge.f32.partialorder %v1948_v35, 0.0 }
 0xac1   :  { %v1952_v21 = vsel %vm1950_vm9, 1.0, %v4767_v54 }
 0xac2   :  { %v1957_v39 = vadd.f32 1.0, %v1955_v37  ;;  %v1956_v40 = vmul.f32 0.3275911, %v1954_v38  ;;  %v1982_v45 = vsub.f32 0.0, %v1954_v38  ;;  %v1983_v47 = vmul.f32 %v1981_v44, %v1953_v27 }
 0xac4   :  { %4670 = vrcp.f32 %v1957_v39  ;;  %v1958_v43 = vadd.f32 1.0, %v1956_v40  ;;  %v1984_v50 = vmul.f32 %v1982_v45, %v1954_v38  ;;  %v1985_v51 = vmul.f32 1.442695, %v1983_v47 }
 0xac6   :  { %4672 = vrcp.f32 %v1958_v43  ;;  %v1987_v59 = vmul.f32 1.442695, %v1984_v50  ;;  %v4598_v50 = vld [vmem:[%s5748_s5 + $0x40] ss:$8 sps:$4 sm:$0xff]  }
 0xac7   :  { %4674 = vpow2.f32 %v1985_v51  ;;  %v4603_v51 = vld [vmem:[%s5748_s5 + $0x54] ss:$8 sps:$4 sm:$0xff]  }
 0xac8   :  { %4676 = vpow2.f32 %v1987_v59  ;;  %v4609_v59 = vld [vmem:[%s5748_s5 + $0x74] ss:$8 sps:$4 sm:$0xff]  }
 0xace   :  { %v4671_v46 = vpop.eup %4670 }
 0xacf   :  { %v1963_v48 = vmul.f32 1.0614054, %v4671_v46 }
 0xad0   :  { %v4673_v13 = vpop.eup %4672 }
 0xad1   :  { %v1965_v49 = vadd.f32 -1.4531521, %v1963_v48  ;;  %v1964_v15 = vmul.f32 1.0614054, %v4673_v13  ;;  %v4675_v9 = vpop.eup %4674 }
 0xad2   :  { %v4677_v5 = vpop.eup %4676 }
 0xad3   :  { %v1967_v52 = vmul.f32 %v4671_v46, %v1965_v49  ;;  %v1966_v53 = vadd.f32 -1.4531521, %v1964_v15  ;;  %v4600_v49 = vld [vmem:[%s5748_s5 + $0x44] ss:$8 sps:$4 sm:$0xff]   ;;  %v4601_v15 = vld [vmem:[%s5748_s5 + $0x50] ss:$8 sps:$4 sm:$0xff]  }
 0xad4   :  { %2228 = vmatprep.subr.bf16.mxu1 %v4600_v49 }
 0xad5   :  { %v1969_v57 = vadd.f32 1.4214138, %v1967_v52  ;;  %v1968_v61 = vmul.f32 %v4673_v13, %v1966_v53  ;;  %2229 = vmatpush1.bf16.msra.mxu1 %v4598_v50  ;;  %v4606_v52 = vld [vmem:[%s5748_s5 + $0x64] ss:$8 sps:$4 sm:$0xff]   ;;  %v4604_v53 = vld [vmem:[%s5748_s5 + $0x60] ss:$8 sps:$4 sm:$0xff]  }
 0xad6   :  { %2230 = vmatprep.subr.bf16.mxu1 %v4603_v51 }
 0xad7   :  { %v1971_v62 = vmul.f32 %v4671_v46, %v1969_v57  ;;  %v1970_v63 = vadd.f32 1.4214138, %v1968_v61  ;;  %v4607_v57 = vld [vmem:[%s5748_s5 + $0x70] ss:$8 sps:$4 sm:$0xff]  }
 0xad9   :  { %v1973_v0 = vadd.f32 -0.28449672, %v1971_v62  ;;  %v1972_v1 = vmul.f32 %v4673_v13, %v1970_v63  ;;  %2231 = vmatpush1.bf16.msra.mxu1 %v4601_v15 }
 0xada   :  { %2232 = vmatprep.subr.bf16.mxu1 %v4606_v52 }
 0xadb   :  { %v1975_v2 = vmul.f32 %v4671_v46, %v1973_v0  ;;  %v1974_v4 = vadd.f32 -0.28449672, %v1972_v1 }
 0xadd   :  { %v1977_v6 = vadd.f32 0.2548296, %v1975_v2  ;;  %v1976_v7 = vmul.f32 %v4673_v13, %v1974_v4  ;;  %2233 = vmatpush1.bf16.msra.mxu1 %v4604_v53 }
 0xade   :  { %2234 = vmatprep.subr.bf16.mxu1 %v4609_v59 }
 0xadf   :  { %v1979_v8 = vmul.f32 %v4671_v46, %v1977_v6  ;;  %v1978_v10 = vadd.f32 0.2548296, %v1976_v7  ;;  %v3870_v6 = vld [vmem:[%s5777_s23 + $0x1] ss:$0 sm:$0xff] }
 0xae1   :  { %v1989_v11 = vmul.f32 %v4675_v9, %v1979_v8  ;;  %v1980_v14 = vmul.f32 %v4673_v13, %v1978_v10  ;;  %2235 = vmatpush1.bf16.msra.mxu1 %v4607_v57 }
 0xae2   :  { %4288 = vmatprep.subr.bf16.mxu1 %v4757_v60 }
 0xae3   :  { %v1991_v16 = vsub.f32 1.0, %v1989_v11  ;;  %v1990_v17 = vmul.f32 %v4677_v5, %v1980_v14  ;;  %v3871_v11 = vld [vmem:[%s5747_s4 + $0x1] ss:$0 sm:$0xff] }
 0xae5   :  { %v1993_v18 = vmul.f32 %v1991_v16, %v1951_v12  ;;  %v1992_v20 = vsub.f32 1.0, %v1990_v17  ;;  %v3880_v17 = vld [vmem:[%s5749_s6 + $0x2] sm:$0x3] }
 0xae7   :  { %v1995_v22 = vadd.f32 1.0, %v1993_v18  ;;  %v1994_v36 = vmul.f32 %v1992_v20, %v1952_v21  ;;  %v2178_v18 = vrot.slane %v3880_v17, %v672_v56  ;;  %v2182_v21 = vrot.slane %v3880_v17, %v676_v58 }
 0xae9   :  { %v1996_v24 = vadd.f32 1.0, %v1994_v36  ;;  %v1997_v25 = vmul.f32 %v1995_v22, %v1945_v23 }
 0xaeb   :  { %v1998_v26 = vmul.f32 %v1996_v24, %v1946_v19 }
 0xaed   :  { %v1999_v28 = vpack.c.bf16 %v1998_v26, %v1997_v25 }
 0xaef   :  { %4285 = vmatmul.mubr.bf16.vlgmr.msra.gmra.mrb[36].mxu0 %v1999_v28 }
 0xaf0   :  { %4302 = vmatprep.mubr.msk.bf16.mxu0 %vm4759_vm1, %v4757_v60 }
 0xbc2   :  { %v2098_v30 = vpop.f32.mrb[36].mxu0 }
 0xbc3   :  { %v2105_v32 = vadd.f32 %v2098_v30, %v5301_v41  ;;  %v4286_v34 = vpop.f32.mrb[37].mxu0 }
 0xbc4   :  { %v2101_v27 = vpop.f32.mrb[38].mxu0 }
 0xbc5   :  { %v5380_v35 = vadd.f32 %v3867_v31, %v2105_v32  ;;  %v2106_v29 = vadd.f32 %v2101_v27, %v5304_v42  ;;  %v4287_v33 = vpop.f32.mrb[39].mxu0 }
 0xbc7   :  { %v5383_v37 = vadd.f32 %v3867_v31, %v2106_v29  ;;  %v2120_v38 = vsel %vm615_vm0, %v5380_v35, 0.0 }
 0xbc8   :  { %2121 = vadd.xlane.f32.xlu0 %v2120_v38 }
 0xbc9   :  { %v2123_v39 = vsel %vm615_vm0, %v5383_v37, 0.0 }
 0xbca   :  { %2124 = vadd.xlane.f32.xlu1 %v2123_v39 }
 0xc55   :  { %v2122_v40 = vpop.xlane.xlu0 %2121 }
 0xc56   :  { %v2126_v43 = vmul.f32 0.015625, %v2122_v40 }
 0xc57   :  { %v2125_v41 = vpop.xlane.xlu1 %2124 }
 0xc58   :  { %v2128_v44 = vsub.f32 %v5380_v35, %v2126_v43  ;;  %v2127_v45 = vmul.f32 0.015625, %v2125_v41 }
 0xc5a   :  { %v2129_v46 = vsub.f32 %v5383_v37, %v2127_v45  ;;  %v2130_v42 = vmul.f32 %v2128_v44, %v2128_v44 }
 0xc5c   :  { %v2132_v47 = vsel %vm615_vm0, %v2130_v42, 0.0  ;;  %v2131_v48 = vmul.f32 %v2129_v46, %v2129_v46 }
 0xc5d   :  { %2133 = vadd.xlane.f32.xlu0 %v2132_v47 }
 0xc5e   :  { %v2135_v13 = vsel %vm615_vm0, %v2131_v48, 0.0 }
 0xc5f   :  { %2136 = vadd.xlane.f32.xlu1 %v2135_v13 }
 0xcea   :  { %v2134_v61 = vpop.xlane.xlu0 %2133 }
 0xceb   :  { %v2138_v62 = vmul.f32 0.015625, %v2134_v61 }
 0xcec   :  { %v2137_v63 = vpop.xlane.xlu1 %2136 }
 0xced   :  { %v2140_v0 = vadd.f32 1e-12, %v2138_v62  ;;  %v2139_v1 = vmul.f32 0.015625, %v2137_v63 }
 0xcef   :  { %4678 = vrsqrt.f32 %v2140_v0  ;;  %v2141_v2 = vadd.f32 1e-12, %v2139_v1 }
 0xcf1   :  { %4680 = vrsqrt.f32 %v2141_v2 }
 0xcf9   :  { %v4679_v4 = vpop.eup %4678 }
 0xcfa   :  { %v2144_v7 = vmul.f32 %v4679_v4, %v2128_v44 }
 0xcfb   :  { %v4681_v8 = vpop.eup %4680 }
 0xcfc   :  { %v2152_v9 = vmul.f32 %v3870_v6, %v2144_v7  ;;  %v2145_v10 = vmul.f32 %v4681_v8, %v2129_v46 }
 0xcfe   :  { %v2153_v14 = vmul.f32 %v3870_v6, %v2145_v10  ;;  %v2160_v5 = vadd.f32 %v3871_v11, %v2152_v9 }
 0xd00   :  { %v2161_v16 = vadd.f32 %v3871_v11, %v2153_v14 }
 0xd02   :  { %v2162_v12 = vpack.c.bf16 %v2161_v16, %v2160_v5 }
 0xd04   :  { %3889 = vmatmul.mubr.msk.bf16.vlgmr.msra.gmra.mrb[52].mxu1 %vm615_vm0, %v2162_v12 }
 0xd05   :  { %4290 = vmatprep.mubr.msk.bf16.mxu1 %vm4759_vm1, %v4757_v60 }
 0xdd7   :  { %v2262_v20 = vpop.f32.mrb[52].mxu1 }
 0xdd8   :  { %v2263_v22 = vadd.f32 %v2262_v20, %v2178_v18  ;;  %v2264_v36 = vpop.f32.mrb[53].mxu1 }
 0xdd9   :  { %v2266_v23 = vpop.f32.mrb[54].mxu1  ;;  %v5435_v25 = vadd.f32 %v2264_v36, %v2182_v21 }
 0xdda   :  { %v2267_v19 = vadd.f32 %v2266_v23, %v2178_v18  ;;  %v2268_v24 = vpop.f32.mrb[55].mxu1  ;;  %2273 = vrot.lane.b32.xlu0 %v2263_v22, %s4758_s28  ;;  %v2307_v55 = vpack.c.bf16 %v2263_v22, %v2263_v22  ;;  %v2291_v41 = vmul.f32 0.25, %v2263_v22 }
 0xddb   :  { %v5437_v26 = vadd.f32 %v2268_v24, %v2182_v21  ;;  %v2335_v5 = vpack.c.bf16 %v5435_v25, %v5435_v25 }
 0xddc   :  { %2275 = vrot.lane.b32.xlu1 %v2267_v19, %s4758_s28  ;;  %v2308_v58 = vpack.c.bf16 %v2267_v19, %v2267_v19  ;;  %v2299_v46 = vpack.c.bf16 %v2291_v41, %v2291_v41  ;;  %v2292_v48 = vmul.f32 0.25, %v2267_v19 }
 0xddd   :  { %v5442_v56 = vpack.i.bf16 %v5437_v26, %v5435_v25  ;;  %v2336_v12 = vpack.c.bf16 %v5437_v26, %v5437_v26  ;;  %v2835_v18 = vsel %vm1331_vm3, %v2335_v5, 0 }
 0xdde   :  { %2285 = vrot.lane.b32.xlu0 %v2263_v22, %s4760_s29  ;;  %v2300_v13 = vpack.c.bf16 %v2292_v48, %v2292_v48 }
 0xddf   :  { %v2881_v20 = vsel %vm1331_vm3, %v2336_v12, 0 }
 0xde0   :  { %2279 = vrot.lane.b32.xlu1 %v2263_v22, %s4761_s0 }
 0xde2   :  { %2344 = vrot.lane.b32.xlu0 %v2307_v55, %s4762_s30 }
 0xde4   :  { %2281 = vrot.lane.b32.xlu1 %v2267_v19, %s4761_s0 }
 0xde8   :  { %2287 = vrot.lane.b32.xlu1 %v2267_v19, %s4760_s29 }
 0xdec   :  { %2393 = vrot.lane.b32.xlu1 %v2308_v58, %s4762_s30 }
 0xe4c   :  { %v2274_v28 = vpop.permute.xlu0 %2273 }
 0xe4d   :  { %v2309_v30 = vpack.c.bf16 %v2274_v28, %v2274_v28  ;;  %v2293_v15 = vmul.f32 0.25, %v2274_v28 }
 0xe4e   :  { %v2276_v31 = vpop.permute.xlu1 %2275 }
 0xe4f   :  { %v2310_v32 = vpack.c.bf16 %v2276_v31, %v2276_v31  ;;  %2442 = vrot.lane.b32.xlu0 %v2309_v30, %s4762_s30  ;;  %v2294_v53 = vmul.f32 0.25, %v2276_v31  ;;  %v2301_v59 = vpack.c.bf16 %v2293_v15, %v2293_v15 }
 0xe50   :  { %v5451_v34 = vpop.permute.xlu0 %2285 }
 0xe51   :  { %2491 = vrot.lane.b32.xlu1 %v2310_v32, %s4762_s30  ;;  %v2313_v40 = vpack.c.bf16 %v5451_v34, %v5451_v34  ;;  %v2302_v61 = vpack.c.bf16 %v2294_v53, %v2294_v53  ;;  %v2297_v10 = vmul.f32 0.25, %v5451_v34 }
 0xe52   :  { %v2280_v27 = vpop.permute.xlu1 %2279 }
 0xe53   :  { %v2311_v29 = vpack.c.bf16 %v2280_v27, %v2280_v27  ;;  %v2295_v0 = vmul.f32 0.25, %v2280_v27  ;;  %v2305_v16 = vpack.c.bf16 %v2297_v10, %v2297_v10 }
 0xe54   :  { %v2345_v33 = vpop.permute.xlu0 %2344 }
 0xe55   :  { %v2350_v38 = vsel %vm841_vm2, %v2345_v33, 0  ;;  %2540 = vrot.lane.b32.xlu0 %v2311_v29, %s4762_s30  ;;  %v2303_v6 = vpack.c.bf16 %v2295_v0, %v2295_v0 }
 0xe56   :  { %v2282_v39 = vpop.permute.xlu1 %2281  ;;  %4289 = vmatpush3.bf16.xpose.msra.mxu1 %v2350_v38 }
 0xe57   :  { %v2312_v43 = vpack.c.bf16 %v2282_v39, %v2282_v39  ;;  %4294 = vmatprep.subr.bf16.mxu1 %v4757_v60  ;;  %v2296_v2 = vmul.f32 0.25, %v2282_v39 }
 0xe59   :  { %2589 = vrot.lane.b32.xlu1 %v2312_v43, %s4762_s30  ;;  %2638 = vrot.lane.b32.xlu0 %v2313_v40, %s4762_s30  ;;  %v2304_v8 = vpack.c.bf16 %v2296_v2, %v2296_v2 }
 0xe5a   :  { %v2288_v44 = vpop.permute.xlu1 %2287 }
 0xe5b   :  { %v2314_v45 = vpack.c.bf16 %v2288_v44, %v2288_v44  ;;  %v2298_v14 = vmul.f32 0.25, %v2288_v44 }
 0xe5d   :  { %2687 = vrot.lane.b32.xlu1 %v2314_v45, %s4762_s30  ;;  %4291 = vmatmul.mubr.msk.bf16.vlgmr.msra.gmra.mrb[56].mxu1 %vm841_vm2, %v2299_v46  ;;  %v2306_v17 = vpack.c.bf16 %v2298_v14, %v2298_v14 }
 0xe5e   :  { %v2394_v42 = vpop.permute.xlu1 %2393  ;;  %4296 = vmatprep.mubr.msk.bf16.mxu1 %vm4759_vm1, %v4757_v60 }
 0xe5f   :  { %v2399_v47 = vsel %vm841_vm2, %v2394_v42, 0 }
 0xe60   :  { %4295 = vmatpush3.bf16.xpose.msra.mxu1 %v2399_v47 }
 0xe61   :  { %4306 = vmatprep.subr.bf16.mxu1 %v4757_v60 }
 0xe67   :  { %4297 = vmatmul.mubr.msk.bf16.vlgmr.msra.gmra.mrb[60].mxu1 %vm841_vm2, %v2300_v13 }
 0xe68   :  { %4308 = vmatprep.mubr.msk.bf16.mxu1 %vm4759_vm1, %v4757_v60 }
 0xec1   :  { %v2443_v49 = vpop.permute.xlu0 %2442 }
 0xec2   :  { %v2448_v50 = vsel %vm841_vm2, %v2443_v49, 0 }
 0xec3   :  { %v2492_v51 = vpop.permute.xlu1 %2491  ;;  %4301 = vmatpush3.bf16.xpose.msra.mxu0 %v2448_v50 }
 0xec4   :  { %v2497_v52 = vsel %vm841_vm2, %v2492_v51, 0  ;;  %4312 = vmatprep.subr.bf16.mxu0 %v4757_v60 }
 0xec5   :  { %4307 = vmatpush3.bf16.xpose.msra.mxu1 %v2497_v52 }
 0xec6   :  { %4318 = vmatprep.subr.bf16.mxu1 %v4757_v60 }
 0xec7   :  { %v2541_v57 = vpop.permute.xlu0 %2540 }
 0xec8   :  { %v2546_v62 = vsel %vm841_vm2, %v2541_v57, 0 }
 0xeca   :  { %4303 = vmatmul.mubr.msk.bf16.vlgmr.msra.gmra.mrb[40].mxu0 %vm841_vm2, %v2301_v59 }
 0xecb   :  { %v2590_v63 = vpop.permute.xlu1 %2589  ;;  %4313 = vmatpush3.bf16.xpose.msra.mxu0 %v2546_v62  ;;  %4314 = vmatprep.mubr.msk.bf16.mxu0 %vm4759_vm1, %v4757_v60  ;;  %v2639_v4 = vpop.permute.xlu0 %2638 }
 0xecc   :  { %v2595_v1 = vsel %vm841_vm2, %v2590_v63, 0  ;;  %4309 = vmatmul.mubr.msk.bf16.vlgmr.msra.gmra.mrb[64].mxu1 %vm841_vm2, %v2302_v61  ;;  %4324 = vmatprep.subr.bf16.mxu0 %v4757_v60  ;;  %v2644_v9 = vsel %vm841_vm2, %v2639_v4, 0 }
 0xecd   :  { %4319 = vmatpush3.bf16.xpose.msra.mxu1 %v2595_v1  ;;  %4320 = vmatprep.mubr.msk.bf16.mxu1 %vm4759_vm1, %v4757_v60 }
 0xece   :  { %4330 = vmatprep.subr.bf16.mxu1 %v4757_v60 }
 0xecf   :  { %v2688_v7 = vpop.permute.xlu1 %2687 }
 0xed0   :  { %v2693_v11 = vsel %vm841_vm2, %v2688_v7, 0 }
 0xed2   :  { %4315 = vmatmul.mubr.msk.bf16.vlgmr.msra.gmra.mrb[44].mxu0 %vm841_vm2, %v2303_v6 }
 0xed3   :  { %4325 = vmatpush3.bf16.xpose.msra.mxu0 %v2644_v9  ;;  %4326 = vmatprep.mubr.msk.bf16.mxu0 %vm4759_vm1, %v4757_v60 }
 0xed4   :  { %4321 = vmatmul.mubr.msk.bf16.vlgmr.msra.gmra.mrb[68].mxu1 %vm841_vm2, %v2304_v8  ;;  %4336 = vmatprep.subr.bf16.mxu0 %v4757_v60 }
 0xed5   :  { %4331 = vmatpush3.bf16.xpose.msra.mxu1 %v2693_v11  ;;  %4332 = vmatprep.mubr.msk.bf16.mxu1 %vm4759_vm1, %v4757_v60 }
 0xed6   :  { %4342 = vmatprep.subr.bf16.mxu1 %v4757_v60 }
 0xeda   :  { %4327 = vmatmul.mubr.msk.bf16.vlgmr.msra.gmra.mrb[48].mxu0 %vm841_vm2, %v2305_v16 }
 0xedb   :  { %4337 = vmatpush3.bf16.msra.mxu0 %v2835_v18  ;;  %4338 = vmatprep.mubr.msk.bf16.mxu0 %vm4759_vm1, %v4757_v60 }
 0xedc   :  { %4333 = vmatmul.mubr.msk.bf16.vlgmr.msra.gmra.mrb[72].mxu1 %vm841_vm2, %v2306_v17  ;;  %4348 = vmatprep.subr.bf16.mxu0 %v4757_v60 }
 0xedd   :  { %4343 = vmatpush3.bf16.msra.mxu1 %v2881_v20  ;;  %4344 = vmatprep.mubr.msk.bf16.mxu1 %vm4759_vm1, %v4757_v60 }
 0xede   :  { %4354 = vmatprep.subr.bf16.mxu1 %v4757_v60 }
 0xf30   :  { %v2386_v21 = vpop.f32.mrb[56].mxu1 }
 0xf31   :  { %v2387_v22 = vadd.f32 %v2386_v21, %v5170_v3  ;;  %v4292_v36 = vpop.f32.mrb[57].mxu1 }
 0xf32   :  { %v2389_v23 = vpop.f32.mrb[58].mxu1 }
 0xf33   :  { %v4293_v19 = vpop.f32.mrb[59].mxu1  ;;  %v2735_v24 = vsel %vm1231_vm5, %v2387_v22, -inf }
 0xf34   :  { %2736 = vmax.xlane.f32.xlu0 %v2735_v24 }
 0xf3a   :  { %v2435_v25 = vpop.f32.mrb[60].mxu1 }
 0xf3b   :  { %v2436_v26 = vadd.f32 %v2435_v25, %v5170_v3  ;;  %v4298_v55 = vpop.f32.mrb[61].mxu1 }
 0xf3c   :  { %v2438_v58 = vpop.f32.mrb[62].mxu1 }
 0xf3d   :  { %v4299_v28 = vpop.f32.mrb[63].mxu1  ;;  %v2738_v30 = vsel %vm1231_vm5, %v2436_v26, -inf }
 0xf3e   :  { %2739 = vmax.xlane.f32.xlu1 %v2738_v30 }
 0xf9d   :  { %v2484_v31 = vpop.f32.mrb[40].mxu0 }
 0xf9e   :  { %v2485_v32 = vadd.f32 %v2484_v31, %v5170_v3  ;;  %v4304_v34 = vpop.f32.mrb[41].mxu0 }
 0xf9f   :  { %v2487_v27 = vpop.f32.mrb[42].mxu0  ;;  %v2533_v29 = vpop.f32.mrb[64].mxu1 }
 0xfa0   :  { %v2534_v33 = vadd.f32 %v2533_v29, %v5170_v3  ;;  %v4305_v38 = vpop.f32.mrb[43].mxu0  ;;  %v4310_v39 = vpop.f32.mrb[65].mxu1  ;;  %v2741_v40 = vsel %vm1231_vm5, %v2485_v32, -inf }
 0xfa1   :  { %2742 = vmax.xlane.f32.xlu0 %v2741_v40  ;;  %v2536_v43 = vpop.f32.mrb[66].mxu1 }
 0xfa2   :  { %v4311_v41 = vpop.f32.mrb[67].mxu1  ;;  %v2744_v44 = vsel %vm1231_vm5, %v2534_v33, -inf }
 0xfa5   :  { %v2582_v45 = vpop.f32.mrb[44].mxu0  ;;  %2745 = vmax.xlane.f32.xlu0 %v2744_v44 }
 0xfa6   :  { %v2583_v46 = vadd.f32 %v2582_v45, %v5170_v3  ;;  %v4316_v42 = vpop.f32.mrb[45].mxu0 }
 0xfa7   :  { %v2585_v47 = vpop.f32.mrb[46].mxu0  ;;  %v2631_v48 = vpop.f32.mrb[68].mxu1 }
 0xfa8   :  { %v2632_v13 = vadd.f32 %v2631_v48, %v5170_v3  ;;  %v4317_v49 = vpop.f32.mrb[47].mxu0  ;;  %v4322_v50 = vpop.f32.mrb[69].mxu1  ;;  %v2747_v51 = vsel %vm1231_vm5, %v2583_v46, -inf }
 0xfa9   :  { %2748 = vmax.xlane.f32.xlu0 %v2747_v51  ;;  %v2634_v15 = vpop.f32.mrb[70].mxu1 }
 0xfaa   :  { %v4323_v52 = vpop.f32.mrb[71].mxu1  ;;  %v2750_v53 = vsel %vm1231_vm5, %v2632_v13, -inf }
 0xfab   :  { %2751 = vmax.xlane.f32.xlu1 %v2750_v53 }
 0xfad   :  { %v2680_v57 = vpop.f32.mrb[48].mxu0 }
 0xfae   :  { %v2681_v59 = vadd.f32 %v2680_v57, %v5170_v3  ;;  %v4328_v61 = vpop.f32.mrb[49].mxu0 }
 0xfaf   :  { %v2683_v62 = vpop.f32.mrb[50].mxu0  ;;  %v2729_v63 = vpop.f32.mrb[72].mxu1 }
 0xfb0   :  { %v5523_v0 = vadd.f32 %v2729_v63, %v5170_v3  ;;  %v4329_v1 = vpop.f32.mrb[51].mxu0  ;;  %v4334_v2 = vpop.f32.mrb[73].mxu1  ;;  %v2753_v4 = vsel %vm1231_vm5, %v2681_v59, -inf }
 0xfb1   :  { %2754 = vmax.xlane.f32.xlu0 %v2753_v4  ;;  %v2732_v6 = vpop.f32.mrb[74].mxu1 }
 0xfb2   :  { %v4335_v7 = vpop.f32.mrb[75].mxu1  ;;  %v2756_v8 = vsel %vm1231_vm5, %v5523_v0, -inf }
 0xfb3   :  { %2757 = vmax.xlane.f32.xlu1 %v2756_v8 }
 0xfc1   :  { %v2737_v9 = vpop.xlane.xlu0 %2736 }
 0xfc2   :  { %v2759_v10 = vsub.f32 %v2387_v22, %v2737_v9 }
 0xfc4   :  { %v2767_v11 = vmul.f32 1.442695, %v2759_v10 }
 0xfc6   :  { %4682 = vpow2.f32 %v2767_v11 }
 0xfcb   :  { %v2740_v14 = vpop.xlane.xlu1 %2739 }
 0xfcc   :  { %v2760_v5 = vsub.f32 %v2436_v26, %v2740_v14 }
 0xfce   :  { %v2769_v16 = vmul.f32 1.442695, %v2760_v5 }
 0xfd0   :  { %v4683_v3 = vpop.eup %4682  ;;  %4684 = vpow2.f32 %v2769_v16 }
 0xfd1   :  { %v2783_v12 = vsel %vm1231_vm5, %v4683_v3, 0.0 }
 0xfd2   :  { %2784 = vadd.xlane.f32.xlu0 %v2783_v12 }
 0xfda   :  { %v4685_v17 = vpop.eup %4684 }
 0xfdb   :  { %v2786_v18 = vsel %vm1231_vm5, %v4685_v17, 0.0 }
 0xfdc   :  { %2787 = vadd.xlane.f32.xlu1 %v2786_v18 }
0x102e   :  { %v2743_v20 = vpop.xlane.xlu0 %2742 }
0x102f   :  { %v2761_v21 = vsub.f32 %v2485_v32, %v2743_v20 }
0x1031   :  { %v2771_v36 = vmul.f32 1.442695, %v2761_v21 }
0x1032   :  { %v2746_v23 = vpop.xlane.xlu0 %2745 }
0x1033   :  { %4686 = vpow2.f32 %v2771_v36  ;;  %v2762_v22 = vsub.f32 %v2534_v33, %v2746_v23 }
0x1035   :  { %v2773_v19 = vmul.f32 1.442695, %v2762_v22 }
0x1036   :  { %v2749_v24 = vpop.xlane.xlu0 %2748 }
0x1037   :  { %4688 = vpow2.f32 %v2773_v19  ;;  %v2763_v25 = vsub.f32 %v2583_v46, %v2749_v24 }
0x1038   :  { %v2752_v26 = vpop.xlane.xlu1 %2751 }
0x1039   :  { %v2775_v55 = vmul.f32 1.442695, %v2763_v25  ;;  %v2764_v58 = vsub.f32 %v2632_v13, %v2752_v26 }
0x103b   :  { %4690 = vpow2.f32 %v2775_v55  ;;  %v2777_v28 = vmul.f32 1.442695, %v2764_v58 }
0x103d   :  { %v4687_v30 = vpop.eup %4686  ;;  %4692 = vpow2.f32 %v2777_v28 }
0x103e   :  { %v2755_v31 = vpop.xlane.xlu0 %2754  ;;  %v2789_v34 = vsel %vm1231_vm5, %v4687_v30, 0.0 }
0x103f   :  { %v2765_v27 = vsub.f32 %v2681_v59, %v2755_v31  ;;  %2790 = vadd.xlane.f32.xlu0 %v2789_v34 }
0x1040   :  { %v2758_v46 = vpop.xlane.xlu1 %2757 }
0x1041   :  { %v4689_v32 = vpop.eup %4688  ;;  %v2779_v29 = vmul.f32 1.442695, %v2765_v27  ;;  %v2766_v42 = vsub.f32 %v5523_v0, %v2758_v46 }
0x1042   :  { %v2792_v33 = vsel %vm1231_vm5, %v4689_v32, 0.0 }
0x1043   :  { %4694 = vpow2.f32 %v2779_v29  ;;  %2793 = vadd.xlane.f32.xlu1 %v2792_v33  ;;  %v2781_v49 = vmul.f32 1.442695, %v2766_v42 }
0x1045   :  { %v5532_v38 = vpop.eup %4690 }
0x1046   :  { %v2795_v39 = vsel %vm1231_vm5, %v5532_v38, 0.0 }
0x1047   :  { %v5536_v40 = vpop.eup %4692  ;;  %2796 = vadd.xlane.f32.xlu0 %v2795_v39 }
0x1048   :  { %v2798_v43 = vsel %vm1231_vm5, %v5536_v40, 0.0 }
0x1049   :  { %2799 = vadd.xlane.f32.xlu1 %v2798_v43 }
0x104d   :  { %v5540_v41 = vpop.eup %4694 }
0x104e   :  { %v2801_v44 = vsel %vm1231_vm5, %v5540_v41, 0.0 }
0x104f   :  { %2802 = vadd.xlane.f32.xlu0 %v2801_v44 }
0x105a   :  { %4489 = vrot.lane.b32.xlu1 %v5442_v56, %s4761_s0 }
0x105f   :  { %v2785_v45 = vpop.xlane.xlu0 %2784 }
0x1060   :  { %4696 = vrcp.f32 %v2785_v45 }
0x1065   :  { %4484 = vrot.lane.b32.xlu0 %v5442_v56, %s4758_s28 }
0x1069   :  { %v2788_v47 = vpop.xlane.xlu1 %2787 }
0x106a   :  { %v4697_v48 = vpop.eup %4696  ;;  %4698 = vrcp.f32 %v2788_v47 }
0x106b   :  { %v2815_v13 = vmul.f32 %v4697_v48, %v4683_v3  ;;  %4700 = vpow2.f32 %v2781_v49 }
0x106d   :  { %v2823_v50 = vpack.c.bf16 %v2815_v13, %v2815_v13 }
0x106f   :  { %4339 = vmatmul.mubr.msk.bf16.vlgmr.msra.gmra.mrb[52].mxu0 %vm1231_vm5, %v2823_v50 }
0x1070   :  { %4350 = vmatprep.mubr.msk.bf16.mxu0 %vm4759_vm1, %v4757_v60 }
0x1074   :  { %v4699_v51 = vpop.eup %4698 }
0x1075   :  { %v2816_v15 = vmul.f32 %v4699_v51, %v4685_v17  ;;  %v5553_v53 = vpop.eup %4700  ;;  %v4610_v51 = vld [vmem:[%s5750_s7 + $0x20] sm:$0xff]  }
0x1076   :  { %v2804_v57 = vsel %vm1231_vm5, %v5553_v53, 0.0 }
0x1077   :  { %v2824_v52 = vpack.c.bf16 %v2816_v15, %v2816_v15 }
0x1079   :  { %4345 = vmatmul.mubr.msk.bf16.vlgmr.msra.gmra.mrb[76].mxu1 %vm1231_vm5, %v2824_v52 }
0x107a   :  { %4356 = vmatprep.mubr.msk.bf16.mxu1 %vm4759_vm1, %v4757_v60 }
0x107e   :  { %2805 = vadd.xlane.f32.xlu1 %v2804_v57 }
0x108f   :  { %4494 = vrot.lane.b32.xlu1 %v5442_v56, %s4760_s29  ;;  %s5778_s29 = smov 16  }
0x10cc   :  { %v2791_v59 = vpop.xlane.xlu0 %2790 }
0x10cd   :  { %4702 = vrcp.f32 %v2791_v59 }
0x10d0   :  { %v2794_v61 = vpop.xlane.xlu1 %2793 }
0x10d1   :  { %4704 = vrcp.f32 %v2794_v61  ;;  %v4611_v61 = vld [vmem:[%s5750_s7 + $0x28] sm:$0xff]  }
0x10d4   :  { %v2797_v62 = vpop.xlane.xlu0 %2796 }
0x10d5   :  { %4706 = vrcp.f32 %v2797_v62 }
0x10d6   :  { %v2800_v63 = vpop.xlane.xlu1 %2799 }
0x10d7   :  { %4708 = vrcp.f32 %v2800_v63  ;;  %v4703_v2 = vpop.eup %4702 }
0x10d8   :  { %v2817_v11 = vmul.f32 %v4703_v2, %v4687_v30 }
0x10da   :  { %v4490_v1 = vpop.permute.xlu1 %4489  ;;  %v2825_v20 = vpack.c.bf16 %v2817_v11, %v2817_v11 }
0x10db   :  { %v4705_v4 = vpop.eup %4704  ;;  %v4492_v7 = vunpack.i.h.bf16 %v4490_v1  ;;  %v4491_v8 = vunpack.i.l.bf16 %v4490_v1 }
0x10dc   :  { %v2803_v0 = vpop.xlane.xlu0 %2802  ;;  %v2818_v14 = vmul.f32 %v4705_v4, %v4689_v32 }
0x10dd   :  { %v2340_v16 = vpack.c.bf16 %v4492_v7, %v4492_v7  ;;  %v2339_v3 = vpack.c.bf16 %v4491_v8, %v4491_v8  ;;  %4710 = vrcp.f32 %v2803_v0  ;;  %v4612_v0 = vld [vmem:[%s5750_s7 + $0x30] sm:$0xff]  }
0x10de   :  { %v2826_v21 = vpack.c.bf16 %v2818_v14, %v2818_v14  ;;  %v4613_v14 = vld [vmem:[%s5750_s7 + $0x38] sm:$0xff]  }
0x10df   :  { %v4707_v18 = vpop.eup %4706  ;;  %v3019_v23 = vsel %vm1331_vm3, %v2339_v3, 0  ;;  %v3065_v22 = vsel %vm1331_vm3, %v2340_v16, 0 }
0x10e0   :  { %v4485_v6 = vpop.permute.xlu0 %4484  ;;  %v2819_v19 = vmul.f32 %v4707_v18, %v5532_v38 }
0x10e1   :  { %v4487_v9 = vunpack.i.h.bf16 %v4485_v6  ;;  %v4486_v10 = vunpack.i.l.bf16 %v4485_v6  ;;  %v4709_v36 = vpop.eup %4708 }
0x10e2   :  { %v2820_v24 = vmul.f32 %v4709_v36, %v5536_v40  ;;  %v2827_v25 = vpack.c.bf16 %v2819_v19, %v2819_v19 }
0x10e3   :  { %v2338_v56 = vpack.c.bf16 %v4487_v9, %v4487_v9  ;;  %v2337_v5 = vpack.c.bf16 %v4486_v10, %v4486_v10 }
0x10e4   :  { %v2828_v26 = vpack.c.bf16 %v2820_v24, %v2820_v24 }
0x10e5   :  { %v2927_v12 = vsel %vm1331_vm3, %v2337_v5, 0  ;;  %v2973_v17 = vsel %vm1331_vm3, %v2338_v56, 0 }
0x10e6   :  { %4349 = vmatpush3.bf16.msra.mxu0 %v2927_v12  ;;  %4355 = vmatpush3.bf16.msra.mxu1 %v2973_v17 }
0x10e7   :  { %4360 = vmatprep.subr.bf16.mxu0 %v4757_v60  ;;  %4366 = vmatprep.subr.bf16.mxu1 %v4757_v60  ;;  %v4711_v58 = vpop.eup %4710 }
0x10e8   :  { %v2821_v34 = vmul.f32 %v4711_v58, %v5540_v41 }
0x10e9   :  { %4351 = vmatmul.mubr.msk.bf16.vlgmr.msra.gmra.mrb[56].mxu0 %vm1231_vm5, %v2825_v20  ;;  %4357 = vmatmul.mubr.msk.bf16.vlgmr.msra.gmra.mrb[80].mxu1 %vm1231_vm5, %v2826_v21 }
0x10ea   :  { %4361 = vmatpush3.bf16.msra.mxu0 %v3019_v23  ;;  %4367 = vmatpush3.bf16.msra.mxu1 %v3065_v22  ;;  %v2829_v39 = vpack.c.bf16 %v2821_v34, %v2821_v34 }
0x10eb   :  { %4362 = vmatprep.mubr.msk.bf16.mxu0 %vm4759_vm1, %v4757_v60  ;;  %4368 = vmatprep.mubr.msk.bf16.mxu1 %vm4759_vm1, %v4757_v60 }
0x10ec   :  { %4372 = vmatprep.subr.bf16.mxu0 %v4757_v60  ;;  %4378 = vmatprep.subr.bf16.mxu1 %v4757_v60 }
0x10f1   :  { %4363 = vmatmul.mubr.msk.bf16.vlgmr.msra.gmra.mrb[60].mxu0 %vm1231_vm5, %v2827_v25  ;;  %4369 = vmatmul.mubr.msk.bf16.vlgmr.msra.gmra.mrb[84].mxu1 %vm1231_vm5, %v2828_v26 }
0x10f2   :  { %4374 = vmatprep.mubr.msk.bf16.mxu0 %vm4759_vm1, %v4757_v60  ;;  %4380 = vmatprep.mubr.msk.bf16.mxu1 %vm4759_vm1, %v4757_v60 }
0x110b   :  { %v2806_v55 = vpop.xlane.xlu1 %2805 }
0x110c   :  { %4712 = vrcp.f32 %v2806_v55 }
0x110f   :  { %v4495_v28 = vpop.permute.xlu1 %4494 }
0x1110   :  { %v4497_v30 = vunpack.i.h.bf16 %v4495_v28  ;;  %v4496_v31 = vunpack.i.l.bf16 %v4495_v28 }
0x1112   :  { %v2342_v27 = vpack.c.bf16 %v4497_v30, %v4497_v30  ;;  %v2341_v32 = vpack.c.bf16 %v4496_v31, %v4496_v31 }
0x1114   :  { %v3111_v29 = vsel %vm1331_vm3, %v2341_v32, 0  ;;  %v3157_v33 = vsel %vm1331_vm3, %v2342_v27, 0 }
0x1115   :  { %4373 = vmatpush3.bf16.msra.mxu0 %v3111_v29  ;;  %4379 = vmatpush3.bf16.msra.mxu1 %v3157_v33 }
0x1116   :  { %v4713_v38 = vpop.eup %4712  ;;  %4384 = vmatprep.subr.bf16.mxu0 %v4757_v60  ;;  %4396 = vmatprep.subr.bf16.mxu1 %v4757_v60 }
0x1117   :  { %v2822_v40 = vmul.f32 %v4713_v38, %v5553_v53  ;;  %v3920_v38 = vld [vmem:[%s5751_s8 + $0x1] ss:$0 sm:$0xff] }
0x1118   :  { %4375 = vmatmul.mubr.msk.bf16.vlgmr.msra.gmra.mrb[64].mxu0 %vm1231_vm5, %v2829_v39 }
0x1119   :  { %v2830_v43 = vpack.c.bf16 %v2822_v40, %v2822_v40  ;;  %4392 = vmatprep.mubr.msk.bf16.mxu0 %vm4759_vm1, %v4757_v60  ;;  %4385 = vmatpush3.bf16.msra.mxu0 %v4610_v51 }
0x111a   :  { %4386 = vmatprep.subr.bf16.mxu0 %v4757_v60 }
0x111b   :  { %4381 = vmatmul.mubr.msk.bf16.vlgmr.msra.gmra.mrb[88].mxu1 %vm1231_vm5, %v2830_v43 }
0x111c   :  { %4404 = vmatprep.mubr.msk.bf16.mxu1 %vm4759_vm1, %v4757_v60 }
0x111d   :  { %4387 = vmatpush3.bf16.msra.mxu0 %v4611_v61  ;;  %v4616_v61 = vld [vmem:[%s5754_s11 + $0x30] sm:$0xff]  }
0x111e   :  { %4388 = vmatprep.subr.bf16.mxu0 %v4757_v60 }
0x1121   :  { %4389 = vmatpush3.bf16.msra.mxu0 %v4612_v0 }
0x1122   :  { %4390 = vmatprep.subr.bf16.mxu0 %v4757_v60 }
0x1125   :  { %4391 = vmatpush3.bf16.msra.mxu0 %v4613_v14 }
0x1126   :  { %4408 = vmatprep.subr.bf16.mxu0 %v4757_v60 }
0x1142   :  { %v2871_v41 = vpop.f32.mrb[52].mxu0 }
0x1143   :  { %v4340_v44 = vpop.f32.mrb[53].mxu0 }
0x1144   :  { %v2874_v45 = vpop.f32.mrb[54].mxu0 }
0x1145   :  { %v4341_v46 = vpop.f32.mrb[55].mxu0 }
0x114c   :  { %v2917_v42 = vpop.f32.mrb[76].mxu1 }
0x114d   :  { %v4346_v47 = vpop.f32.mrb[77].mxu1 }
0x114e   :  { %v2920_v48 = vpop.f32.mrb[78].mxu1 }
0x114f   :  { %v4347_v13 = vpop.f32.mrb[79].mxu1 }
0x11bc   :  { %v2963_v49 = vpop.f32.mrb[56].mxu0  ;;  %v3009_v50 = vpop.f32.mrb[80].mxu1 }
0x11bd   :  { %v4498_v15 = vpack.i.bf16 %v3009_v50, %v2963_v49  ;;  %v4352_v52 = vpop.f32.mrb[57].mxu0  ;;  %v4358_v53 = vpop.f32.mrb[81].mxu1 }
0x11be   :  { %v2966_v57 = vpop.f32.mrb[58].mxu0  ;;  %v3012_v59 = vpop.f32.mrb[82].mxu1 }
0x11bf   :  { %v4353_v62 = vpop.f32.mrb[59].mxu0  ;;  %4499 = vrot.lane.b32.xlu1 %v4498_v15, %s5778_s29  ;;  %v4359_v63 = vpop.f32.mrb[83].mxu1  ;;  %v4614_v57 = vld [vmem:[%s5754_s11 + $0x20] sm:$0xff]   ;;  %v4615_v59 = vld [vmem:[%s5754_s11 + $0x28] sm:$0xff]  }
0x11c0   :  { %4397 = vmatpush3.bf16.msra.mxu1 %v4614_v57  ;;  %v4617_v62 = vld [vmem:[%s5754_s11 + $0x38] sm:$0xff]  }
0x11c1   :  { %4398 = vmatprep.subr.bf16.mxu1 %v4757_v60 }
0x11c4   :  { %v3055_v1 = vpop.f32.mrb[60].mxu0  ;;  %v3101_v2 = vpop.f32.mrb[84].mxu1  ;;  %4399 = vmatpush3.bf16.msra.mxu1 %v4615_v59 }
0x11c5   :  { %v4503_v4 = vpack.i.bf16 %v3101_v2, %v3055_v1  ;;  %v4364_v6 = vpop.f32.mrb[61].mxu0  ;;  %v4370_v7 = vpop.f32.mrb[85].mxu1  ;;  %4400 = vmatprep.subr.bf16.mxu1 %v4757_v60 }
0x11c6   :  { %v3058_v8 = vpop.f32.mrb[62].mxu0  ;;  %v3104_v9 = vpop.f32.mrb[86].mxu1 }
0x11c7   :  { %v4365_v10 = vpop.f32.mrb[63].mxu0  ;;  %4504 = vrot.lane.b32.xlu0 %v4503_v4, %s5779_s2  ;;  %v4371_v11 = vpop.f32.mrb[87].mxu1  ;;  %v3923_v9 = vld [vmem:[%s5752_s9 + $0x1] ss:$0 sm:$0xff] }
0x11c8   :  { %4401 = vmatpush3.bf16.msra.mxu1 %v4616_v61 }
0x11c9   :  { %4402 = vmatprep.subr.bf16.mxu1 %v4757_v60 }
0x11cc   :  { %4403 = vmatpush3.bf16.msra.mxu1 %v4617_v62 }
0x11cd   :  { %4428 = vmatprep.subr.bf16.mxu1 %v4757_v60 }
0x11eb   :  { %v3147_v56 = vpop.f32.mrb[64].mxu0 }
0x11ec   :  { %v4376_v5 = vpop.f32.mrb[65].mxu0 }
0x11ed   :  { %v3150_v16 = vpop.f32.mrb[66].mxu0 }
0x11ee   :  { %v4377_v3 = vpop.f32.mrb[67].mxu0  ;;  %v3193_v12 = vpop.f32.mrb[88].mxu1 }
0x11ef   :  { %v4508_v17 = vpack.i.bf16 %v3193_v12, %v3147_v56  ;;  %v4382_v18 = vpop.f32.mrb[89].mxu1  ;;  %v3924_v56 = vld [vmem:[%s5753_s10 + $0x1] ss:$0 sm:$0xff] }
0x11f0   :  { %v3196_v20 = vpop.f32.mrb[90].mxu1  ;;  %v4619_v18 = vld [vmem:[%s5756_s13 + $0x48] sm:$0xff]  }
0x11f1   :  { %4509 = vrot.lane.b32.xlu1 %v4508_v17, %s5780_s3  ;;  %v4383_v21 = vpop.f32.mrb[91].mxu1  ;;  %v4618_v17 = vld [vmem:[%s5756_s13 + $0x40] sm:$0xff]   ;;  %v4620_v20 = vld [vmem:[%s5756_s13 + $0x50] sm:$0xff]  }
0x11f2   :  { %v4621_v21 = vld [vmem:[%s5756_s13 + $0x58] sm:$0xff]  }
0x1231   :  { %v4500_v36 = vpop.permute.xlu1 %4499 }
0x1232   :  { %v4502_v22 = vunpack.i.h.bf16 %v4500_v36  ;;  %v4501_v19 = vunpack.i.l.bf16 %v4500_v36  ;;  %v4622_v36 = vld [vmem:[%s5756_s13 + $0x60] sm:$0xff]  }
0x1234   :  { %v3224_v55 = vsel %vm841_vm2, %v2917_v42, %v4502_v22  ;;  %v3223_v58 = vsel %vm841_vm2, %v2871_v41, %v4501_v19  ;;  %v4624_v22 = vld [vmem:[%s5756_s13 + $0x70] sm:$0xff]   ;;  %v4625_v19 = vld [vmem:[%s5756_s13 + $0x78] sm:$0xff]  }
0x1239   :  { %v4505_v23 = vpop.permute.xlu0 %4504 }
0x123a   :  { %v4507_v24 = vunpack.i.h.bf16 %v4505_v23  ;;  %v4506_v25 = vunpack.i.l.bf16 %v4505_v23  ;;  %v4623_v23 = vld [vmem:[%s5756_s13 + $0x68] sm:$0xff]  }
0x123c   :  { %v3226_v31 = vsel %vm1723_vm6, %v3224_v55, %v4507_v24  ;;  %v3225_v34 = vsel %vm1723_vm6, %v3223_v58, %v4506_v25  ;;  %v3934_v24 = vld [vmem:[%s5755_s12 + $0x1] ss:$0 sm:$0xff] }
0x1263   :  { %v4510_v26 = vpop.permute.xlu1 %4509 }
0x1264   :  { %v4512_v28 = vunpack.i.h.bf16 %v4510_v26  ;;  %v4511_v30 = vunpack.i.l.bf16 %v4510_v26 }
0x1266   :  { %v3228_v27 = vsel %vm1726_vm7, %v3226_v31, %v4512_v28  ;;  %v3227_v32 = vsel %vm1726_vm7, %v3225_v34, %v4511_v30 }
0x1267   :  { %v3229_v29 = vpack.c.bf16 %v3228_v27, %v3227_v32 }
0x1269   :  { %4393 = vmatmul.mubr.msk.bf16.vlgmr.msra.gmra.mrb[68].mxu0 %vm615_vm0, %v3229_v29 }
0x126a   :  { %4424 = vmatprep.mubr.msk.bf16.mxu0 %vm4759_vm1, %v4757_v60  ;;  %4409 = vmatpush3.bf16.msra.mxu0 %v4618_v17 }
0x126b   :  { %4410 = vmatprep.subr.bf16.mxu0 %v4757_v60 }
0x126e   :  { %4411 = vmatpush3.bf16.msra.mxu0 %v4619_v18 }
0x126f   :  { %4412 = vmatprep.subr.bf16.mxu0 %v4757_v60 }
0x1272   :  { %4413 = vmatpush3.bf16.msra.mxu0 %v4620_v20 }
0x1273   :  { %4414 = vmatprep.subr.bf16.mxu0 %v4757_v60 }
0x1276   :  { %4415 = vmatpush3.bf16.msra.mxu0 %v4621_v21 }
0x1277   :  { %4416 = vmatprep.subr.bf16.mxu0 %v4757_v60 }
0x127a   :  { %4417 = vmatpush3.bf16.msra.mxu0 %v4622_v36 }
0x127b   :  { %4418 = vmatprep.subr.bf16.mxu0 %v4757_v60 }
0x127e   :  { %4419 = vmatpush3.bf16.msra.mxu0 %v4623_v23 }
0x127f   :  { %4420 = vmatprep.subr.bf16.mxu0 %v4757_v60 }
0x1282   :  { %4421 = vmatpush3.bf16.msra.mxu0 %v4624_v22 }
0x1283   :  { %4422 = vmatprep.subr.bf16.mxu0 %v4757_v60 }
0x1286   :  { %4423 = vmatpush3.bf16.msra.mxu0 %v4625_v19 }
0x133c   :  { %v3300_v33 = vpop.f32.mrb[68].mxu0 }
0x133d   :  { %v3307_v39 = vadd.f32 %v3300_v33, %v5380_v35  ;;  %v4394_v40 = vpop.f32.mrb[69].mxu0 }
0x133e   :  { %v3303_v43 = vpop.f32.mrb[70].mxu0 }
0x133f   :  { %v5627_v41 = vadd.f32 %v3920_v38, %v3307_v39  ;;  %v3308_v44 = vadd.f32 %v3303_v43, %v5383_v37  ;;  %v4395_v45 = vpop.f32.mrb[71].mxu0 }
0x1341   :  { %v5630_v46 = vadd.f32 %v3920_v38, %v3308_v44  ;;  %v3323_v42 = vsel %vm615_vm0, %v5627_v41, 0.0 }
0x1342   :  { %3324 = vadd.xlane.f32.xlu0 %v3323_v42 }
0x1343   :  { %v3326_v47 = vsel %vm615_vm0, %v5630_v46, 0.0 }
0x1344   :  { %3327 = vadd.xlane.f32.xlu1 %v3326_v47 }
0x13cf   :  { %v3325_v48 = vpop.xlane.xlu0 %3324 }
0x13d0   :  { %v3329_v13 = vmul.f32 0.015625, %v3325_v48 }
0x13d1   :  { %v3328_v35 = vpop.xlane.xlu1 %3327 }
0x13d2   :  { %v3331_v49 = vsub.f32 %v5627_v41, %v3329_v13  ;;  %v3330_v50 = vmul.f32 0.015625, %v3328_v35 }
0x13d4   :  { %v3332_v51 = vsub.f32 %v5630_v46, %v3330_v50  ;;  %v3333_v37 = vmul.f32 %v3331_v49, %v3331_v49 }
0x13d6   :  { %v3335_v15 = vsel %vm615_vm0, %v3333_v37, 0.0  ;;  %v3334_v52 = vmul.f32 %v3332_v51, %v3332_v51 }
0x13d7   :  { %3336 = vadd.xlane.f32.xlu0 %v3335_v15 }
0x13d8   :  { %v3338_v53 = vsel %vm615_vm0, %v3334_v52, 0.0 }
0x13db   :  { %3339 = vadd.xlane.f32.xlu0 %v3338_v53 }
0x1464   :  { %v3337_v63 = vpop.xlane.xlu0 %3336 }
0x1465   :  { %v3341_v0 = vmul.f32 0.015625, %v3337_v63 }
0x1467   :  { %v3343_v1 = vadd.f32 1e-12, %v3341_v0 }
0x1468   :  { %v3340_v2 = vpop.xlane.xlu0 %3339 }
0x1469   :  { %4714 = vrsqrt.f32 %v3343_v1  ;;  %v3342_v4 = vmul.f32 0.015625, %v3340_v2 }
0x146b   :  { %v3344_v6 = vadd.f32 1e-12, %v3342_v4 }
0x146d   :  { %4716 = vrsqrt.f32 %v3344_v6 }
0x1473   :  { %v4715_v7 = vpop.eup %4714 }
0x1474   :  { %v3347_v8 = vmul.f32 %v4715_v7, %v3331_v49 }
0x1476   :  { %v3355_v11 = vmul.f32 %v3923_v9, %v3347_v8 }
0x1477   :  { %v4717_v10 = vpop.eup %4716 }
0x1478   :  { %v3348_v14 = vmul.f32 %v4717_v10, %v3332_v51  ;;  %v3363_v16 = vadd.f32 %v3924_v56, %v3355_v11 }
0x147a   :  { %v3356_v5 = vmul.f32 %v3923_v9, %v3348_v14 }
0x147c   :  { %v3364_v3 = vadd.f32 %v3924_v56, %v3356_v5 }
0x147e   :  { %v3365_v12 = vpack.c.bf16 %v3364_v3, %v3363_v16 }
0x1480   :  { %4405 = vmatmul.mubr.msk.bf16.vlgmr.msra.gmra.mrb[92].mxu1 %vm615_vm0, %v3365_v12 }
0x1481   :  { %4436 = vmatprep.mubr.msk.bf16.mxu1 %vm4759_vm1, %v4757_v60 }
0x1553   :  { %v3444_v25 = vpop.f32.mrb[92].mxu1 }
0x1554   :  { %v3445_v26 = vadd.f32 %v3934_v24, %v3444_v25  ;;  %v4406_v55 = vpop.f32.mrb[93].mxu1 }
0x1555   :  { %v3447_v58 = vpop.f32.mrb[94].mxu1 }
0x1556   :  { %v3453_v28 = vmul.f32 0.70710677, %v3445_v26  ;;  %v3448_v30 = vadd.f32 %v3934_v24, %v3447_v58  ;;  %v4407_v31 = vpop.f32.mrb[95].mxu1  ;;  %v3451_v17 = vmul.f32 0.5, %v3445_v26 }
0x1558   :  { %v3459_v34 = vand.u32 2147483647, %v3453_v28  ;;  %v3454_v27 = vmul.f32 0.70710677, %v3448_v30  ;;  %vm3455_vm10 = vcmp.ge.f32.partialorder %v3453_v28, 0.0  ;;  %v3452_v18 = vmul.f32 0.5, %v3448_v30 }
0x1559   :  { %v3457_v11 = vsel %vm3455_vm10, 1.0, %v4767_v54 }
0x155a   :  { %v3461_v32 = vmul.f32 0.3275911, %v3459_v34  ;;  %v3460_v29 = vand.u32 2147483647, %v3454_v27  ;;  %v3487_v40 = vsub.f32 0.0, %v3459_v34  ;;  %vm3456_vm11 = vcmp.ge.f32.partialorder %v3454_v27, 0.0 }
0x155b   :  { %v3458_v16 = vsel %vm3456_vm11, 1.0, %v4767_v54  ;;  %v3965_v54 = vld [vmem:[%s5757_s14 + $0x1] ss:$0 sm:$0xff] }
0x155c   :  { %v3463_v33 = vadd.f32 1.0, %v3461_v32  ;;  %v3462_v38 = vmul.f32 0.3275911, %v3460_v29  ;;  %v3488_v43 = vsub.f32 0.0, %v3460_v29  ;;  %v3489_v45 = vmul.f32 %v3487_v40, %v3459_v34  ;;  %v4629_v40 = vld [vmem:[%s5760_s17 + $0x18] sm:$0xff]  }
0x155e   :  { %4718 = vrcp.f32 %v3463_v33  ;;  %v3464_v39 = vadd.f32 1.0, %v3462_v38  ;;  %v3490_v13 = vmul.f32 %v3488_v43, %v3460_v29  ;;  %v3491_v35 = vmul.f32 1.442695, %v3489_v45  ;;  %v4627_v38 = vld [vmem:[%s5760_s17 + $0x8] sm:$0xff]  }
0x1560   :  { %4720 = vrcp.f32 %v3464_v39  ;;  %v3493_v15 = vmul.f32 1.442695, %v3490_v13  ;;  %v4628_v39 = vld [vmem:[%s5760_s17 + $0x10] sm:$0xff]   ;;  %v3967_v13 = vld [vmem:[%s5759_s16] ss:$0 sm:$0xff] }
0x1561   :  { %4722 = vpow2.f32 %v3491_v35 }
0x1562   :  { %4724 = vpow2.f32 %v3493_v15 }
0x1568   :  { %v4719_v44 = vpop.eup %4718 }
0x1569   :  { %v3469_v42 = vmul.f32 1.0614054, %v4719_v44 }
0x156a   :  { %v4721_v47 = vpop.eup %4720 }
0x156b   :  { %v3471_v48 = vadd.f32 -1.4531521, %v3469_v42  ;;  %v3470_v49 = vmul.f32 1.0614054, %v4721_v47  ;;  %v4723_v4 = vpop.eup %4722 }
0x156c   :  { %v4725_v9 = vpop.eup %4724 }
0x156d   :  { %v3473_v50 = vmul.f32 %v4719_v44, %v3471_v48  ;;  %v3472_v51 = vadd.f32 -1.4531521, %v3470_v49 }
0x156f   :  { %v3475_v37 = vadd.f32 1.4214138, %v3473_v50  ;;  %v3474_v52 = vmul.f32 %v4721_v47, %v3472_v51  ;;  %v3968_v50 = vld [vmem:[%s5761_s18] ss:$0 sm:$0xff] }
0x1571   :  { %v3477_v53 = vmul.f32 %v4719_v44, %v3475_v37  ;;  %v3476_v57 = vadd.f32 1.4214138, %v3474_v52 }
0x1573   :  { %v3479_v59 = vadd.f32 -0.28449672, %v3477_v53  ;;  %v3478_v61 = vmul.f32 %v4721_v47, %v3476_v57 }
0x1575   :  { %v3481_v62 = vmul.f32 %v4719_v44, %v3479_v59  ;;  %v3480_v63 = vadd.f32 -0.28449672, %v3478_v61 }
0x1577   :  { %v3483_v0 = vadd.f32 0.2548296, %v3481_v62  ;;  %v3482_v1 = vmul.f32 %v4721_v47, %v3480_v63 }
0x1579   :  { %v3485_v2 = vmul.f32 %v4719_v44, %v3483_v0  ;;  %v3484_v6 = vadd.f32 0.2548296, %v3482_v1 }
0x157b   :  { %v3495_v7 = vmul.f32 %v4723_v4, %v3485_v2  ;;  %v3486_v8 = vmul.f32 %v4721_v47, %v3484_v6  ;;  %v3966_v47 = vld [vmem:[%s5758_s15] ss:$0 sm:$0xff]  ;;  %s4768_s15 = smov [#allocation2]  }
0x157c   :  { %s3756_s16 = sshll.u32 %s4768_s15, 4  ;;  %s3757_s16 = int_to_ptr.vmem [resolvable:$true] %s3756_s16 }
0x157d   :  { %v3497_v10 = vsub.f32 1.0, %v3495_v7  ;;  %v3496_v14 = vmul.f32 %v4725_v9, %v3486_v8  ;;  %s4732_s24 = scalar_lea.vmem %s3757_s16, 32  ;;  %p4737_p1 = scmp.lt.s32.totalorder %s3757_s16, %s3757_s16 }
0x157e   :  { %p4733_p0 = scmp.ne.s32.totalorder %s3757_s16, %s4732_s24  ;;  %p4738_p2 = scmp.lt.s32.totalorder %s4732_s24, %s4732_s24 }
0x157f   :  { %v3499_v56 = vmul.f32 %v3497_v10, %v3457_v11  ;;  %v3498_v5 = vsub.f32 1.0, %v3496_v14 }
0x1580   :  { %p4739_p3 = por %p4738_p2, %p4737_p1 }
0x1581   :  { %v3501_v3 = vadd.f32 1.0, %v3499_v56  ;;  %v3500_v12 = vmul.f32 %v3498_v5, %v3458_v16 }
0x1582   :  { %p4740_p4 = pnand %p4739_p3, %p4733_p0 }
0x1583   :  { %v3502_v20 = vadd.f32 1.0, %v3500_v12  ;;  %v3503_v21 = vmul.f32 %v3501_v3, %v3451_v17 }
0x1585   :  { %v3504_v36 = vmul.f32 %v3502_v20, %v3452_v18 }
0x1587   :  { %v3505_v23 = vpack.c.bf16 %v3504_v36, %v3503_v21 }
0x1589   :  { %4425 = vmatmul.mubr.bf16.vlgmr.msra.gmra.mrb[72].mxu0 %v3505_v23 }
0x165c   :  { %v3605_v22 = vpop.f32.mrb[72].mxu0 }
0x165d   :  { %v4426_v19 = vpop.f32.mrb[73].mxu0  ;;  %v3612_v25 = vadd.f32 %v3605_v22, %v5627_v41 }
0x165e   :  { %v3608_v24 = vpop.f32.mrb[74].mxu0 }
0x165f   :  { %v3613_v55 = vadd.f32 %v3608_v24, %v5630_v46  ;;  %v4427_v58 = vpop.f32.mrb[75].mxu0  ;;  %v3622_v26 = vadd.f32 %v3965_v54, %v3612_v25  ;;  %v4626_v46 = vld [vmem:[%s5760_s17] sm:$0xff]  }
0x1660   :  { %4429 = vmatpush3.bf16.msra.mxu1 %v4626_v46 }
0x1661   :  { %v3623_v28 = vadd.f32 %v3965_v54, %v3613_v55  ;;  %4430 = vmatprep.subr.bf16.mxu1 %v4757_v60 }
0x1663   :  { %v3625_v30 = vrot.slane %v3623_v28, 7 }
0x1664   :  { %4431 = vmatpush3.bf16.msra.mxu1 %v4627_v38 }
0x1665   :  { %v3628_v31 = vsel %vm3627_vm12, %v3622_v26, %v3625_v30  ;;  %4432 = vmatprep.subr.bf16.mxu1 %v4757_v60 }
0x1666   :  { %v3632_v34 = vsel %vm3631_vm13, %v3628_v31, 0.0 }
0x1667   :  { %3633 = vadd.xlane.f32.xlu0 %v3632_v34 }
0x1668   :  { %4433 = vmatpush3.bf16.msra.mxu1 %v4628_v39 }
0x1669   :  { %4434 = vmatprep.subr.bf16.mxu1 %v4757_v60 }
0x166c   :  { %4435 = vmatpush3.bf16.msra.mxu1 %v4629_v40 }
0x16f4   :  { %v3634_v27 = vpop.xlane.xlu0 %3633 }
0x16f5   :  { %v3635_v32 = vmul.f32 0.015625, %v3634_v27 }
0x16f7   :  { %v3636_v29 = vsub.f32 %v3628_v31, %v3635_v32 }
0x16f9   :  { %v3637_v33 = vmul.f32 %v3636_v29, %v3636_v29 }
0x16fb   :  { %v3638_v41 = vsel %vm3631_vm13, %v3637_v33, 0.0 }
0x16fc   :  { %3639 = vadd.xlane.f32.xlu1 %v3638_v41 }
0x1789   :  { %v3640_v43 = vpop.xlane.xlu1 %3639 }
0x178a   :  { %v3641_v44 = vmul.f32 0.015625, %v3640_v43 }
0x178c   :  { %v3642_v45 = vadd.f32 1e-12, %v3641_v44 }
0x178e   :  { %4726 = vrsqrt.f32 %v3642_v45 }
0x1798   :  { %v4727_v42 = vpop.eup %4726 }
0x1799   :  { %v3644_v48 = vmul.f32 %v4727_v42, %v3636_v29 }
0x179b   :  { %v3651_v60 = vmul.f32 %v3966_v47, %v3644_v48 }
0x179d   :  { %v3658_v35 = vadd.f32 %v3967_v13, %v3651_v60 }
0x179f   :  { %v3659_v49 = vpack.c.bf16 %v3658_v35, %v3658_v35 }
0x17a1   :  { %4437 = vmatmul.mubr.msk.bf16.vlgmr.msra.gmra.mrb[96].mxu1 %vm615_vm0, %v3659_v49 }
0x1874   :  { %v3736_v51 = vpop.f32.mrb[96].mxu1 }
0x1875   :  { %v3737_v37 = vadd.f32 %v3968_v50, %v3736_v51  ;;  %v4438_v15 = vpop.f32.mrb[97].mxu1 }
0x1876   :  { %v3739_v52 = vpop.f32.mrb[98].mxu1 }
0x1877   :  { %v3974_v53 = vmul.f32 -1.442695, %v3737_v37  ;;  %v4439_v57 = vpop.f32.mrb[99].mxu1 }
0x1879   :  { %4728 = vpow2.f32 %v3974_v53 }
0x1883   :  { %v4729_v59 = vpop.eup %4728 }
0x1884   :  { %v3745_v61 = vadd.f32 1.0, %v4729_v59 }
0x1886   :  { %4730 = vrcp.f32 %v3745_v61 }
0x1890   :  { %v4731_v62 = vpop.eup %4730 }
0x1891   :  { %3749 = vst.msk [vmem:[#allocation2] sm:$0x3] %vm3748_vm14, %v4731_v62 }
0x1892   :  { %4743 = shalt.err (!%p4740_p4)
}
0x1893   :  { %s4744_s7 = scalar_lea.hbm %s5762_s19, 32 }
0x1894   :  { %p4745_p5 = scmp.ne.s32.totalorder %s5762_s19, %s4744_s7  ;;  %p4748_p6 = scmp.lt.u32.totalorder %s4744_s7, %s5762_s19 }
0x1896   :  { %p4750_p7 = pnand %p4748_p6, %p4745_p5 }
0x1898   :  { %4753 = shalt.err (!%p4750_p7)
}
0x1899   :  { %3759 = dma.vmem_to_hbm [thread:$0]  %s3757_s16, 32, %s5762_s19, [#allocation3]  }
0x189a   :  { %4754 = dma.done.wait [#allocation3], 32  }
0x189b   :  { %4755 = vsyncadd [#allocation3], 4294967264 }
0x189c   :  { %3763 = vsyncpa [#allocation3], 1 }

</bundles_post_ra>
